<compile_context>
chip_gen: v5e
topology: v5e:2x2
jax: 0.10.0
libtpu: 0.0.40
codegen_flags: <defaults>
</compile_context>

<pallas_src>
import jax
import jax.numpy as jnp
from jax import lax
from jax.experimental import pallas as pl
from jax.experimental.pallas import tpu as pltpu


def seq2seq_kernel(enc_ref, dec_ref,
                   w_ih_e, w_hh_e, gib_e, bhn_e,
                   w_ih_d, w_hh_d, gib_d, bhn_d,
                   w_proj, b_proj,
                   out_ref,
                   gi_e_scr, gi_d_scr, h_all_scr):
    S_enc, Bp, Ip = enc_ref.shape
    S_dec = dec_ref.shape[0]
    Hp = w_hh_e.shape[0]

    # ---- bulk precompute of the input-side gates: 2 bf16 matmuls (S*B rows) instead of
    # S_enc+S_dec tiny per-step ones.  gib already contains b_ih (all gates) + b_hh (r,z).
    gi_e = jnp.dot(enc_ref[...].reshape(S_enc * Bp, Ip), w_ih_e[...],
                   preferred_element_type=jnp.float32) + gib_e[...]
    gi_e_scr[...] = gi_e.reshape(S_enc, Bp, 3 * Hp)

    gi_d = jnp.dot(dec_ref[...].reshape(S_dec * Bp, Ip), w_ih_d[...],
                   preferred_element_type=jnp.float32) + gib_d[...]
    gi_d_scr[...] = gi_d.reshape(S_dec, Bp, 3 * Hp)

    # Hoist loop-invariants off the serial recurrences: load each bf16 recurrent weight ONCE
    # per phase (previously re-emitted as vlds in every unrolled step) and pre-broadcast the
    # (1,Hp)->(Bp,Hp) n-gate bias (broadcasts are not CSE'd).
    w_hh_e_v = w_hh_e[...]
    w_hh_d_v = w_hh_d[...]
    bhn_e_b = jnp.broadcast_to(bhn_e[...], (Bp, Hp))
    bhn_d_b = jnp.broadcast_to(bhn_d[...], (Bp, Hp))

    def recur_step(gi, h, w_hh_v, bhn_b):
        # PyTorch GRU convention; gate slices are 128-aligned (Hp = 128).
        # bf16 MXU operands, f32 accumulation, f32 elementwise / nonlinearities.
        gh = jnp.dot(h.astype(jnp.bfloat16), w_hh_v,
                     preferred_element_type=jnp.float32)
        rz = jax.nn.sigmoid(gi[:, 0:2 * Hp] + gh[:, 0:2 * Hp])   # fused r/z: one EUP slab
        r = rz[:, 0:Hp]
        z = rz[:, Hp:2 * Hp]
        n = jnp.tanh(gi[:, 2 * Hp:3 * Hp] + r * (gh[:, 2 * Hp:3 * Hp] + bhn_b))
        return (1.0 - z) * n + z * h

    # encoder: initial hidden state = zeros (PyTorch GRU default); h carried in vregs (f32).
    h0 = jnp.zeros((Bp, Hp), jnp.float32)

    def enc_body(t, h):
        return recur_step(gi_e_scr[t], h, w_hh_e_v, bhn_e_b)

    h = lax.fori_loop(0, S_enc, enc_body, h0, unroll=True)

    # decoder: GRUCell per step, hidden states stashed time-major (full-tile f32 stores).
    def dec_body(t, h):
        h = recur_step(gi_d_scr[t], h, w_hh_d_v, bhn_d_b)
        h_all_scr[t] = h
        return h

    lax.fori_loop(0, S_dec, dec_body, h, unroll=True)

    # ---- bulk output projection (dropout p=0.0 -> identity; no residual), one lane-dense store.
    out = jnp.dot(h_all_scr[...].reshape(S_dec * Bp, Hp).astype(jnp.bfloat16),
                  w_proj[...], preferred_element_type=jnp.float32) + b_proj[...]
    out_ref[...] = out.reshape(S_dec, Bp, Ip).astype(out_ref.dtype)


def _round_up(x, m):
    return ((x + m - 1) // m) * m


def seq2seq_forward(encoder_inputs, decoder_inputs, params):
    """encoder_inputs:(B,S_enc,I)  decoder_inputs:(B,S_dec,I)  ->  (B,S_dec,I)"""
    B, S_enc, I = encoder_inputs.shape
    _, S_dec, _ = decoder_inputs.shape
    Ip = params["w_ih_e_p"].shape[0]
    Hp = params["w_hh_e_p"].shape[0]
    Bp = max(8, _round_up(B, 8))

    def prep(x):
        # batch-first -> time-major, zero-pad batch to Bp / features to Ip, cast to bf16 (MXU
        # operand).  allow_input_fusion below lets XLA fuse these producers into the kernel op.
        x = jnp.transpose(x, (1, 0, 2)).astype(jnp.float32)
        x = jnp.pad(x, ((0, 0), (0, Bp - B), (0, Ip - I)))
        return x.astype(jnp.bfloat16)

    enc_tm = prep(encoder_inputs)
    dec_tm = prep(decoder_inputs)

    args = (enc_tm, dec_tm,
            params["w_ih_e_p"], params["w_hh_e_p"], params["gib_e"], params["bhn_e"],
            params["w_ih_d_p"], params["w_hh_d_p"], params["gib_d"], params["bhn_d"],
            params["w_proj_p"], params["b_proj_p"])

    vmem = pl.BlockSpec(memory_space=pltpu.MemorySpace.VMEM)  # everything VMEM-resident (<1.5 MiB)

    out_tm = pl.pallas_call(
        seq2seq_kernel,
        out_shape=jax.ShapeDtypeStruct((S_dec, Bp, Ip), jnp.float32),
        in_specs=[vmem] * len(args),
        out_specs=vmem,
        scratch_shapes=[
            pltpu.VMEM((S_enc, Bp, 3 * Hp), jnp.float32),   # precomputed encoder input gates
            pltpu.VMEM((S_dec, Bp, 3 * Hp), jnp.float32),   # precomputed decoder input gates
            pltpu.VMEM((S_dec, Bp, Hp), jnp.float32),       # decoder hidden states
        ],
        compiler_params=pltpu.CompilerParams(
            # Let the transpose/pad/cast producers of the two activation operands fuse into the
            # pallas_call instead of standing as separate tiny HLO ops (latency-bound workload).
            allow_input_fusion=[True, True] + [False] * (len(args) - 2),
        ),
    )(*args)

    # slice away pad lanes/rows, back to batch-first (mirrors torch.transpose(outputs, 0, 1)).
    return jnp.transpose(out_tm[:, :B, :I], (1, 0, 2))


def init_params(key, num_joints, rnn_size, lane=128):
    """Uniform(-1/sqrt(H), 1/sqrt(H)) init matching the PyTorch parameter shapes, plus
    padded / pre-transposed / bias-folded bf16 copies for the kernel and raw f32 copies
    for the reference."""
    I = num_joints * 3
    H = rnn_size
    assert H == I, "decoder GRUCell is declared with input dim == rnn_size"
    bound = 1.0 / float(H) ** 0.5
    ks = jax.random.split(key, 10)

    def u(k_, shape):
        return jax.random.uniform(k_, shape, jnp.float32, -bound, bound)

    # encoder nn.GRU (num_layers=1): weight_ih_l0 (3H,I), weight_hh_l0 (3H,H), biases (3H,)
    w_ih_e = u(ks[0], (3 * H, I)); w_hh_e = u(ks[1], (3 * H, H))
    b_ih_e = u(ks[2], (3 * H,));   b_hh_e = u(ks[3], (3 * H,))
    # decoder nn.GRUCell(rnn_size, rnn_size)
    w_ih_d = u(ks[4], (3 * H, H)); w_hh_d = u(ks[5], (3 * H, H))
    b_ih_d = u(ks[6], (3 * H,));   b_hh_d = u(ks[7], (3 * H,))
    # projector nn.Linear(rnn_size, input_size)
    w_proj = u(ks[8], (I, H));     b_proj = u(ks[9], (I,))

    Ip = _round_up(I, lane)
    Hp = _round_up(H, lane)

    def pad_w_t(w, in_dim, in_p):
        # (3H, in_dim) -> transposed (in_p, 3Hp), zero-padded PER GATE so slices stay aligned;
        # cast to bf16 (MXU operand; zero padding is exact in bf16).
        wt = w.T  # (in_dim, 3H)
        gates = [jnp.pad(wt[:, g * H:(g + 1) * H], ((0, in_p - in_dim), (0, Hp - H)))
                 for g in range(3)]
        return jnp.concatenate(gates, axis=1).astype(jnp.bfloat16)

    def gi_bias(b_ih, b_hh):
        # b_ih for all gates + b_hh for r,z gates (b_hh_n must stay inside r*(...)); kept f32.
        parts = []
        for g in range(3):
            bi = jnp.pad(b_ih[g * H:(g + 1) * H], (0, Hp - H))
            bh = jnp.pad(b_hh[g * H:(g + 1) * H], (0, Hp - H))
            parts.append(bi + bh if g < 2 else bi)
        return jnp.concatenate(parts).reshape(1, 3 * Hp)

    def bhh_n(b_hh):
        return jnp.pad(b_hh[2 * H:3 * H], (0, Hp - H)).reshape(1, Hp)

    kernel_params = {
        "w_ih_e_p": pad_w_t(w_ih_e, I, Ip),
        "w_hh_e_p": pad_w_t(w_hh_e, H, Hp),
        "gib_e": gi_bias(b_ih_e, b_hh_e),
        "bhn_e": bhh_n(b_hh_e),
        "w_ih_d_p": pad_w_t(w_ih_d, H, Ip),   # decoder input dim == H == I, Ip == Hp
        "w_hh_d_p": pad_w_t(w_hh_d, H, Hp),
        "gib_d": gi_bias(b_ih_d, b_hh_d),
        "bhn_d": bhh_n(b_hh_d),
        "w_proj_p": jnp.pad(w_proj.T, ((0, Hp - H), (0, Ip - I))).astype(jnp.bfloat16),  # (Hp,Ip)
        "b_proj_p": jnp.pad(b_proj, (0, Ip - I)).reshape(1, Ip),
    }
    ref_params = {
        "w_ih_e_t": w_ih_e.T, "w_hh_e_t": w_hh_e.T,
        "b_ih_e": b_ih_e.reshape(1, -1), "b_hh_e": b_hh_e.reshape(1, -1),
        "w_ih_d_t": w_ih_d.T, "w_hh_d_t": w_hh_d.T,
        "b_ih_d": b_ih_d.reshape(1, -1), "b_hh_d": b_hh_d.reshape(1, -1),
        "w_proj_t": w_proj.T, "b_proj": b_proj.reshape(1, -1),
    }
    return kernel_params, ref_params


def _reference_forward(encoder_inputs, decoder_inputs, p):
    """Pure-JAX f32 reference of the same semantics (silent correctness check)."""
    H = p["w_hh_e_t"].shape[0]
    B = encoder_inputs.shape[0]

    def step(x, h, wi, wh, bi, bh):
        gi = x @ wi + bi
        gh = h @ wh + bh
        r = jax.nn.sigmoid(gi[:, :H] + gh[:, :H])
        z = jax.nn.sigmoid(gi[:, H:2 * H] + gh[:, H:2 * H])
        n = jnp.tanh(gi[:, 2 * H:] + r * gh[:, 2 * H:])
        return (1.0 - z) * n + z * h

    h = jnp.zeros((B, H), jnp.float32)
    for t in range(encoder_inputs.shape[1]):
        h = step(encoder_inputs[:, t, :], h, p["w_ih_e_t"], p["w_hh_e_t"],
                 p["b_ih_e"], p["b_hh_e"])
    outs = []
    for t in range(decoder_inputs.shape[1]):
        h = step(decoder_inputs[:, t, :], h, p["w_ih_d_t"], p["w_hh_d_t"],
                 p["b_ih_d"], p["b_hh_d"])
        outs.append(h @ p["w_proj_t"] + p["b_proj"])
    return jnp.stack(outs, axis=1)


if __name__ == "__main__":
    num_joints = 21                 # module default -> input_size = 63
    rnn_size = num_joints * 3       # 63, matches decoder GRUCell input dim
    B, S_enc, S_dec = 2, 8, 7       # small shapes; S_dec = target_seq_length - 1
    I = num_joints * 3

    key = jax.random.PRNGKey(0)
    k_p, k_e, k_d = jax.random.split(key, 3)
    kernel_params, ref_params = init_params(k_p, num_joints, rnn_size)
    encoder_inputs = jax.random.normal(k_e, (B, S_enc, I), jnp.float32)
    decoder_inputs = jax.random.normal(k_d, (B, S_dec, I), jnp.float32)

    fwd = jax.jit(seq2seq_forward)  # fuses the tiny host-side pad/transpose/slice ops
    out = fwd(encoder_inputs, decoder_inputs, kernel_params)
    out = jax.block_until_ready(out)

    ref = _reference_forward(encoder_inputs, decoder_inputs, ref_params)
    assert out.shape == (B, S_dec, I)
    # bf16 MXU operands (f32 accumulate / f32 elementwise) vs. pure-f32 reference -> ~1e-2 error.
    assert jnp.allclose(out, ref, atol=5e-2, rtol=5e-2), float(jnp.max(jnp.abs(out - ref)))
    print("KERNEL_OK")
</pallas_src>

<mosaic_0001>
module attributes {stable_mosaic.version = 11 : i64} {
  func.func @seq2seq_kernel(%arg0: memref<8x8x128xbf16, #tpu.memory_space<vmem>>, %arg1: memref<7x8x128xbf16, #tpu.memory_space<vmem>>, %arg2: memref<128x384xbf16, #tpu.memory_space<vmem>>, %arg3: memref<128x384xbf16, #tpu.memory_space<vmem>>, %arg4: memref<1x384xf32, #tpu.memory_space<vmem>>, %arg5: memref<1x128xf32, #tpu.memory_space<vmem>>, %arg6: memref<128x384xbf16, #tpu.memory_space<vmem>>, %arg7: memref<128x384xbf16, #tpu.memory_space<vmem>>, %arg8: memref<1x384xf32, #tpu.memory_space<vmem>>, %arg9: memref<1x128xf32, #tpu.memory_space<vmem>>, %arg10: memref<128x128xbf16, #tpu.memory_space<vmem>>, %arg11: memref<1x128xf32, #tpu.memory_space<vmem>>, %arg12: memref<7x8x128xf32, #tpu.memory_space<vmem>>, %arg13: memref<8x8x384xf32, #tpu.memory_space<vmem>>, %arg14: memref<7x8x384xf32, #tpu.memory_space<vmem>>, %arg15: memref<7x8x128xf32, #tpu.memory_space<vmem>>) attributes {dimension_semantics = [], scalar_prefetch = 0 : i64, scratch_operands = 3 : i64, tpu.core_type = #tpu.core_type<tc>} {
    %c0 = arith.constant 0 : index
    %c0_0 = arith.constant 0 : index
    %c0_1 = arith.constant 0 : index
    %0 = vector.load %arg0[%c0, %c0_0, %c0_1] : memref<8x8x128xbf16, #tpu.memory_space<vmem>>, vector<8x8x128xbf16>
    %1 = vector.shape_cast %0 : vector<8x8x128xbf16> to vector<64x128xbf16>
    %c0_2 = arith.constant 0 : index
    %c0_3 = arith.constant 0 : index
    %2 = vector.load %arg2[%c0_2, %c0_3] : memref<128x384xbf16, #tpu.memory_space<vmem>>, vector<128x384xbf16>
    %cst = arith.constant dense<0.000000e+00> : vector<64x384xf32>
    %3 = tpu.matmul %1, %2, %cst {dimension_numbers = #tpu.dot_dimension_numbers<[1], [0], [0], [1], [0, 0, 1, 1], [], []>} : vector<64x128xbf16>, vector<128x384xbf16>, vector<64x384xf32> -> vector<64x384xf32>
    %c0_4 = arith.constant 0 : index
    %c0_5 = arith.constant 0 : index
    %4 = vector.load %arg4[%c0_4, %c0_5] : memref<1x384xf32, #tpu.memory_space<vmem>>, vector<1x384xf32>
    %5 = vector.broadcast %4 : vector<1x384xf32> to vector<64x384xf32>
    %6 = arith.addf %3, %5 : vector<64x384xf32>
    %7 = vector.shape_cast %6 : vector<64x384xf32> to vector<8x8x384xf32>
    %c0_6 = arith.constant 0 : index
    %c0_7 = arith.constant 0 : index
    %c0_8 = arith.constant 0 : index
    %8 = vector.load %arg13[%c0_6, %c0_7, %c0_8] : memref<8x8x384xf32, #tpu.memory_space<vmem>>, vector<8x8x384xf32>
    tpu.vector_store %arg13[%c0_6, %c0_7, %c0_8], %7 {strides = array<i32>} : memref<8x8x384xf32, #tpu.memory_space<vmem>>, vector<8x8x384xf32>,
    %c0_9 = arith.constant 0 : index
    %c0_10 = arith.constant 0 : index
    %c0_11 = arith.constant 0 : index
    %9 = vector.load %arg1[%c0_9, %c0_10, %c0_11] : memref<7x8x128xbf16, #tpu.memory_space<vmem>>, vector<7x8x128xbf16>
    %10 = vector.shape_cast %9 : vector<7x8x128xbf16> to vector<56x128xbf16>
    %c0_12 = arith.constant 0 : index
    %c0_13 = arith.constant 0 : index
    %11 = vector.load %arg6[%c0_12, %c0_13] : memref<128x384xbf16, #tpu.memory_space<vmem>>, vector<128x384xbf16>
    %cst_14 = arith.constant dense<0.000000e+00> : vector<56x384xf32>
    %12 = tpu.matmul %10, %11, %cst_14 {dimension_numbers = #tpu.dot_dimension_numbers<[1], [0], [0], [1], [0, 0, 1, 1], [], []>} : vector<56x128xbf16>, vector<128x384xbf16>, vector<56x384xf32> -> vector<56x384xf32>
    %c0_15 = arith.constant 0 : index
    %c0_16 = arith.constant 0 : index
    %13 = vector.load %arg8[%c0_15, %c0_16] : memref<1x384xf32, #tpu.memory_space<vmem>>, vector<1x384xf32>
    %14 = vector.broadcast %13 : vector<1x384xf32> to vector<56x384xf32>
    %15 = arith.addf %12, %14 : vector<56x384xf32>
    %16 = vector.shape_cast %15 : vector<56x384xf32> to vector<7x8x384xf32>
    %c0_17 = arith.constant 0 : index
    %c0_18 = arith.constant 0 : index
    %c0_19 = arith.constant 0 : index
    %17 = vector.load %arg14[%c0_17, %c0_18, %c0_19] : memref<7x8x384xf32, #tpu.memory_space<vmem>>, vector<7x8x384xf32>
    tpu.vector_store %arg14[%c0_17, %c0_18, %c0_19], %16 {strides = array<i32>} : memref<7x8x384xf32, #tpu.memory_space<vmem>>, vector<7x8x384xf32>,
    %c0_20 = arith.constant 0 : index
    %c0_21 = arith.constant 0 : index
    %18 = vector.load %arg3[%c0_20, %c0_21] : memref<128x384xbf16, #tpu.memory_space<vmem>>, vector<128x384xbf16>
    %c0_22 = arith.constant 0 : index
    %c0_23 = arith.constant 0 : index
    %19 = vector.load %arg7[%c0_22, %c0_23] : memref<128x384xbf16, #tpu.memory_space<vmem>>, vector<128x384xbf16>
    %c0_24 = arith.constant 0 : index
    %c0_25 = arith.constant 0 : index
    %20 = vector.load %arg5[%c0_24, %c0_25] : memref<1x128xf32, #tpu.memory_space<vmem>>, vector<1x128xf32>
    %21 = vector.shape_cast %20 : vector<1x128xf32> to vector<1x128xf32>
    %22 = vector.broadcast %21 : vector<1x128xf32> to vector<8x128xf32>
    %c0_26 = arith.constant 0 : index
    %c0_27 = arith.constant 0 : index
    %23 = vector.load %arg9[%c0_26, %c0_27] : memref<1x128xf32, #tpu.memory_space<vmem>>, vector<1x128xf32>
    %24 = vector.shape_cast %23 : vector<1x128xf32> to vector<1x128xf32>
    %25 = vector.broadcast %24 : vector<1x128xf32> to vector<8x128xf32>
    %cst_28 = arith.constant 0.000000e+00 : f32
    %26 = vector.broadcast %cst_28 : f32 to vector<8x128xf32>
    %c0_i32 = arith.constant 0 : i32
    %27 = arith.index_cast %c0_i32 : i32 to index
    %c0_29 = arith.constant 0 : index
    %c0_30 = arith.constant 0 : index
    %28 = vector.load %arg13[%27, %c0_29, %c0_30] : memref<8x8x384xf32, #tpu.memory_space<vmem>>, vector<1x8x384xf32>
    %29 = vector.shape_cast %28 : vector<1x8x384xf32> to vector<8x384xf32>
    %30 = arith.truncf %26 : vector<8x128xf32> to vector<8x128xbf16>
    %cst_31 = arith.constant dense<0.000000e+00> : vector<8x384xf32>
    %31 = tpu.matmul %30, %18, %cst_31 {dimension_numbers = #tpu.dot_dimension_numbers<[1], [0], [0], [1], [0, 0, 1, 1], [], []>} : vector<8x128xbf16>, vector<128x384xbf16>, vector<8x384xf32> -> vector<8x384xf32>
    %32 = vector.extract_strided_slice %29 {offsets = [0, 0], sizes = [8, 256], strides = [1, 1]} : vector<8x384xf32> to vector<8x256xf32>
    %33 = vector.extract_strided_slice %31 {offsets = [0, 0], sizes = [8, 256], strides = [1, 1]} : vector<8x384xf32> to vector<8x256xf32>
    %34 = arith.addf %32, %33 : vector<8x256xf32>
    %35 = arith.negf %34 : vector<8x256xf32>
    %36 = math.exp %35 : vector<8x256xf32>
    %cst_32 = arith.constant 1.000000e+00 : f32
    %37 = vector.broadcast %cst_32 : f32 to vector<8x256xf32>
    %38 = arith.addf %37, %36 : vector<8x256xf32>
    %39 = arith.divf %37, %38 : vector<8x256xf32>
    %40 = vector.extract_strided_slice %39 {offsets = [0, 0], sizes = [8, 128], strides = [1, 1]} : vector<8x256xf32> to vector<8x128xf32>
    %41 = vector.extract_strided_slice %39 {offsets = [0, 128], sizes = [8, 128], strides = [1, 1]} : vector<8x256xf32> to vector<8x128xf32>
    %42 = vector.extract_strided_slice %29 {offsets = [0, 256], sizes = [8, 128], strides = [1, 1]} : vector<8x384xf32> to vector<8x128xf32>
    %43 = vector.extract_strided_slice %31 {offsets = [0, 256], sizes = [8, 128], strides = [1, 1]} : vector<8x384xf32> to vector<8x128xf32>
    %44 = arith.addf %43, %22 : vector<8x128xf32>
    %45 = arith.mulf %40, %44 : vector<8x128xf32>
    %46 = arith.addf %42, %45 : vector<8x128xf32>
    %47 = math.tanh %46 : vector<8x128xf32>
    %cst_33 = arith.constant 1.000000e+00 : f32
    %48 = vector.broadcast %cst_33 : f32 to vector<8x128xf32>
    %49 = arith.subf %48, %41 : vector<8x128xf32>
    %50 = arith.mulf %49, %47 : vector<8x128xf32>
    %51 = arith.mulf %41, %26 : vector<8x128xf32>
    %52 = arith.addf %50, %51 : vector<8x128xf32>
    %c1_i32 = arith.constant 1 : i32
    %53 = arith.index_cast %c1_i32 : i32 to index
    %c0_34 = arith.constant 0 : index
    %c0_35 = arith.constant 0 : index
    %54 = vector.load %arg13[%53, %c0_34, %c0_35] : memref<8x8x384xf32, #tpu.memory_space<vmem>>, vector<1x8x384xf32>
    %55 = vector.shape_cast %54 : vector<1x8x384xf32> to vector<8x384xf32>
    %56 = arith.truncf %52 : vector<8x128xf32> to vector<8x128xbf16>
    %cst_36 = arith.constant dense<0.000000e+00> : vector<8x384xf32>
    %57 = tpu.matmul %56, %18, %cst_36 {dimension_numbers = #tpu.dot_dimension_numbers<[1], [0], [0], [1], [0, 0, 1, 1], [], []>} : vector<8x128xbf16>, vector<128x384xbf16>, vector<8x384xf32> -> vector<8x384xf32>
    %58 = vector.extract_strided_slice %55 {offsets = [0, 0], sizes = [8, 256], strides = [1, 1]} : vector<8x384xf32> to vector<8x256xf32>
    %59 = vector.extract_strided_slice %57 {offsets = [0, 0], sizes = [8, 256], strides = [1, 1]} : vector<8x384xf32> to vector<8x256xf32>
    %60 = arith.addf %58, %59 : vector<8x256xf32>
    %61 = arith.negf %60 : vector<8x256xf32>
    %62 = math.exp %61 : vector<8x256xf32>
    %cst_37 = arith.constant 1.000000e+00 : f32
    %63 = vector.broadcast %cst_37 : f32 to vector<8x256xf32>
    %64 = arith.addf %63, %62 : vector<8x256xf32>
    %65 = arith.divf %63, %64 : vector<8x256xf32>
    %66 = vector.extract_strided_slice %65 {offsets = [0, 0], sizes = [8, 128], strides = [1, 1]} : vector<8x256xf32> to vector<8x128xf32>
    %67 = vector.extract_strided_slice %65 {offsets = [0, 128], sizes = [8, 128], strides = [1, 1]} : vector<8x256xf32> to vector<8x128xf32>
    %68 = vector.extract_strided_slice %55 {offsets = [0, 256], sizes = [8, 128], strides = [1, 1]} : vector<8x384xf32> to vector<8x128xf32>
    %69 = vector.extract_strided_slice %57 {offsets = [0, 256], sizes = [8, 128], strides = [1, 1]} : vector<8x384xf32> to vector<8x128xf32>
    %70 = arith.addf %69, %22 : vector<8x128xf32>
    %71 = arith.mulf %66, %70 : vector<8x128xf32>
    %72 = arith.addf %68, %71 : vector<8x128xf32>
    %73 = math.tanh %72 : vector<8x128xf32>
    %cst_38 = arith.constant 1.000000e+00 : f32
    %74 = vector.broadcast %cst_38 : f32 to vector<8x128xf32>
    %75 = arith.subf %74, %67 : vector<8x128xf32>
    %76 = arith.mulf %75, %73 : vector<8x128xf32>
    %77 = arith.mulf %67, %52 : vector<8x128xf32>
    %78 = arith.addf %76, %77 : vector<8x128xf32>
    %c2_i32 = arith.constant 2 : i32
    %79 = arith.index_cast %c2_i32 : i32 to index
    %c0_39 = arith.constant 0 : index
    %c0_40 = arith.constant 0 : index
    %80 = vector.load %arg13[%79, %c0_39, %c0_40] : memref<8x8x384xf32, #tpu.memory_space<vmem>>, vector<1x8x384xf32>
    %81 = vector.shape_cast %80 : vector<1x8x384xf32> to vector<8x384xf32>
    %82 = arith.truncf %78 : vector<8x128xf32> to vector<8x128xbf16>
    %cst_41 = arith.constant dense<0.000000e+00> : vector<8x384xf32>
    %83 = tpu.matmul %82, %18, %cst_41 {dimension_numbers = #tpu.dot_dimension_numbers<[1], [0], [0], [1], [0, 0, 1, 1], [], []>} : vector<8x128xbf16>, vector<128x384xbf16>, vector<8x384xf32> -> vector<8x384xf32>
    %84 = vector.extract_strided_slice %81 {offsets = [0, 0], sizes = [8, 256], strides = [1, 1]} : vector<8x384xf32> to vector<8x256xf32>
    %85 = vector.extract_strided_slice %83 {offsets = [0, 0], sizes = [8, 256], strides = [1, 1]} : vector<8x384xf32> to vector<8x256xf32>
    %86 = arith.addf %84, %85 : vector<8x256xf32>
    %87 = arith.negf %86 : vector<8x256xf32>
    %88 = math.exp %87 : vector<8x256xf32>
    %cst_42 = arith.constant 1.000000e+00 : f32
    %89 = vector.broadcast %cst_42 : f32 to vector<8x256xf32>
    %90 = arith.addf %89, %88 : vector<8x256xf32>
    %91 = arith.divf %89, %90 : vector<8x256xf32>
    %92 = vector.extract_strided_slice %91 {offsets = [0, 0], sizes = [8, 128], strides = [1, 1]} : vector<8x256xf32> to vector<8x128xf32>
    %93 = vector.extract_strided_slice %91 {offsets = [0, 128], sizes = [8, 128], strides = [1, 1]} : vector<8x256xf32> to vector<8x128xf32>
    %94 = vector.extract_strided_slice %81 {offsets = [0, 256], sizes = [8, 128], strides = [1, 1]} : vector<8x384xf32> to vector<8x128xf32>
    %95 = vector.extract_strided_slice %83 {offsets = [0, 256], sizes = [8, 128], strides = [1, 1]} : vector<8x384xf32> to vector<8x128xf32>
    %96 = arith.addf %95, %22 : vector<8x128xf32>
    %97 = arith.mulf %92, %96 : vector<8x128xf32>
    %98 = arith.addf %94, %97 : vector<8x128xf32>
    %99 = math.tanh %98 : vector<8x128xf32>
    %cst_43 = arith.constant 1.000000e+00 : f32
    %100 = vector.broadcast %cst_43 : f32 to vector<8x128xf32>
    %101 = arith.subf %100, %93 : vector<8x128xf32>
    %102 = arith.mulf %101, %99 : vector<8x128xf32>
    %103 = arith.mulf %93, %78 : vector<8x128xf32>
    %104 = arith.addf %102, %103 : vector<8x128xf32>
    %c3_i32 = arith.constant 3 : i32
    %105 = arith.index_cast %c3_i32 : i32 to index
    %c0_44 = arith.constant 0 : index
    %c0_45 = arith.constant 0 : index
    %106 = vector.load %arg13[%105, %c0_44, %c0_45] : memref<8x8x384xf32, #tpu.memory_space<vmem>>, vector<1x8x384xf32>
    %107 = vector.shape_cast %106 : vector<1x8x384xf32> to vector<8x384xf32>
    %108 = arith.truncf %104 : vector<8x128xf32> to vector<8x128xbf16>
    %cst_46 = arith.constant dense<0.000000e+00> : vector<8x384xf32>
    %109 = tpu.matmul %108, %18, %cst_46 {dimension_numbers = #tpu.dot_dimension_numbers<[1], [0], [0], [1], [0, 0, 1, 1], [], []>} : vector<8x128xbf16>, vector<128x384xbf16>, vector<8x384xf32> -> vector<8x384xf32>
    %110 = vector.extract_strided_slice %107 {offsets = [0, 0], sizes = [8, 256], strides = [1, 1]} : vector<8x384xf32> to vector<8x256xf32>
    %111 = vector.extract_strided_slice %109 {offsets = [0, 0], sizes = [8, 256], strides = [1, 1]} : vector<8x384xf32> to vector<8x256xf32>
    %112 = arith.addf %110, %111 : vector<8x256xf32>
    %113 = arith.negf %112 : vector<8x256xf32>
    %114 = math.exp %113 : vector<8x256xf32>
    %cst_47 = arith.constant 1.000000e+00 : f32
    %115 = vector.broadcast %cst_47 : f32 to vector<8x256xf32>
    %116 = arith.addf %115, %114 : vector<8x256xf32>
    %117 = arith.divf %115, %116 : vector<8x256xf32>
    %118 = vector.extract_strided_slice %117 {offsets = [0, 0], sizes = [8, 128], strides = [1, 1]} : vector<8x256xf32> to vector<8x128xf32>
    %119 = vector.extract_strided_slice %117 {offsets = [0, 128], sizes = [8, 128], strides = [1, 1]} : vector<8x256xf32> to vector<8x128xf32>
    %120 = vector.extract_strided_slice %107 {offsets = [0, 256], sizes = [8, 128], strides = [1, 1]} : vector<8x384xf32> to vector<8x128xf32>
    %121 = vector.extract_strided_slice %109 {offsets = [0, 256], sizes = [8, 128], strides = [1, 1]} : vector<8x384xf32> to vector<8x128xf32>
    %122 = arith.addf %121, %22 : vector<8x128xf32>
    %123 = arith.mulf %118, %122 : vector<8x128xf32>
    %124 = arith.addf %120, %123 : vector<8x128xf32>
    %125 = math.tanh %124 : vector<8x128xf32>
    %cst_48 = arith.constant 1.000000e+00 : f32
    %126 = vector.broadcast %cst_48 : f32 to vector<8x128xf32>
    %127 = arith.subf %126, %119 : vector<8x128xf32>
    %128 = arith.mulf %127, %125 : vector<8x128xf32>
    %129 = arith.mulf %119, %104 : vector<8x128xf32>
    %130 = arith.addf %128, %129 : vector<8x128xf32>
    %c4_i32 = arith.constant 4 : i32
    %131 = arith.index_cast %c4_i32 : i32 to index
    %c0_49 = arith.constant 0 : index
    %c0_50 = arith.constant 0 : index
    %132 = vector.load %arg13[%131, %c0_49, %c0_50] : memref<8x8x384xf32, #tpu.memory_space<vmem>>, vector<1x8x384xf32>
    %133 = vector.shape_cast %132 : vector<1x8x384xf32> to vector<8x384xf32>
    %134 = arith.truncf %130 : vector<8x128xf32> to vector<8x128xbf16>
    %cst_51 = arith.constant dense<0.000000e+00> : vector<8x384xf32>
    %135 = tpu.matmul %134, %18, %cst_51 {dimension_numbers = #tpu.dot_dimension_numbers<[1], [0], [0], [1], [0, 0, 1, 1], [], []>} : vector<8x128xbf16>, vector<128x384xbf16>, vector<8x384xf32> -> vector<8x384xf32>
    %136 = vector.extract_strided_slice %133 {offsets = [0, 0], sizes = [8, 256], strides = [1, 1]} : vector<8x384xf32> to vector<8x256xf32>
    %137 = vector.extract_strided_slice %135 {offsets = [0, 0], sizes = [8, 256], strides = [1, 1]} : vector<8x384xf32> to vector<8x256xf32>
    %138 = arith.addf %136, %137 : vector<8x256xf32>
    %139 = arith.negf %138 : vector<8x256xf32>
    %140 = math.exp %139 : vector<8x256xf32>
    %cst_52 = arith.constant 1.000000e+00 : f32
    %141 = vector.broadcast %cst_52 : f32 to vector<8x256xf32>
    %142 = arith.addf %141, %140 : vector<8x256xf32>
    %143 = arith.divf %141, %142 : vector<8x256xf32>
    %144 = vector.extract_strided_slice %143 {offsets = [0, 0], sizes = [8, 128], strides = [1, 1]} : vector<8x256xf32> to vector<8x128xf32>
    %145 = vector.extract_strided_slice %143 {offsets = [0, 128], sizes = [8, 128], strides = [1, 1]} : vector<8x256xf32> to vector<8x128xf32>
    %146 = vector.extract_strided_slice %133 {offsets = [0, 256], sizes = [8, 128], strides = [1, 1]} : vector<8x384xf32> to vector<8x128xf32>
    %147 = vector.extract_strided_slice %135 {offsets = [0, 256], sizes = [8, 128], strides = [1, 1]} : vector<8x384xf32> to vector<8x128xf32>
    %148 = arith.addf %147, %22 : vector<8x128xf32>
    %149 = arith.mulf %144, %148 : vector<8x128xf32>
    %150 = arith.addf %146, %149 : vector<8x128xf32>
    %151 = math.tanh %150 : vector<8x128xf32>
    %cst_53 = arith.constant 1.000000e+00 : f32
    %152 = vector.broadcast %cst_53 : f32 to vector<8x128xf32>
    %153 = arith.subf %152, %145 : vector<8x128xf32>
    %154 = arith.mulf %153, %151 : vector<8x128xf32>
    %155 = arith.mulf %145, %130 : vector<8x128xf32>
    %156 = arith.addf %154, %155 : vector<8x128xf32>
    %c5_i32 = arith.constant 5 : i32
    %157 = arith.index_cast %c5_i32 : i32 to index
    %c0_54 = arith.constant 0 : index
    %c0_55 = arith.constant 0 : index
    %158 = vector.load %arg13[%157, %c0_54, %c0_55] : memref<8x8x384xf32, #tpu.memory_space<vmem>>, vector<1x8x384xf32>
    %159 = vector.shape_cast %158 : vector<1x8x384xf32> to vector<8x384xf32>
    %160 = arith.truncf %156 : vector<8x128xf32> to vector<8x128xbf16>
    %cst_56 = arith.constant dense<0.000000e+00> : vector<8x384xf32>
    %161 = tpu.matmul %160, %18, %cst_56 {dimension_numbers = #tpu.dot_dimension_numbers<[1], [0], [0], [1], [0, 0, 1, 1], [], []>} : vector<8x128xbf16>, vector<128x384xbf16>, vector<8x384xf32> -> vector<8x384xf32>
    %162 = vector.extract_strided_slice %159 {offsets = [0, 0], sizes = [8, 256], strides = [1, 1]} : vector<8x384xf32> to vector<8x256xf32>
    %163 = vector.extract_strided_slice %161 {offsets = [0, 0], sizes = [8, 256], strides = [1, 1]} : vector<8x384xf32> to vector<8x256xf32>
    %164 = arith.addf %162, %163 : vector<8x256xf32>
    %165 = arith.negf %164 : vector<8x256xf32>
    %166 = math.exp %165 : vector<8x256xf32>
    %cst_57 = arith.constant 1.000000e+00 : f32
    %167 = vector.broadcast %cst_57 : f32 to vector<8x256xf32>
    %168 = arith.addf %167, %166 : vector<8x256xf32>
    %169 = arith.divf %167, %168 : vector<8x256xf32>
    %170 = vector.extract_strided_slice %169 {offsets = [0, 0], sizes = [8, 128], strides = [1, 1]} : vector<8x256xf32> to vector<8x128xf32>
    %171 = vector.extract_strided_slice %169 {offsets = [0, 128], sizes = [8, 128], strides = [1, 1]} : vector<8x256xf32> to vector<8x128xf32>
    %172 = vector.extract_strided_slice %159 {offsets = [0, 256], sizes = [8, 128], strides = [1, 1]} : vector<8x384xf32> to vector<8x128xf32>
    %173 = vector.extract_strided_slice %161 {offsets = [0, 256], sizes = [8, 128], strides = [1, 1]} : vector<8x384xf32> to vector<8x128xf32>
    %174 = arith.addf %173, %22 : vector<8x128xf32>
    %175 = arith.mulf %170, %174 : vector<8x128xf32>
    %176 = arith.addf %172, %175 : vector<8x128xf32>
    %177 = math.tanh %176 : vector<8x128xf32>
    %cst_58 = arith.constant 1.000000e+00 : f32
    %178 = vector.broadcast %cst_58 : f32 to vector<8x128xf32>
    %179 = arith.subf %178, %171 : vector<8x128xf32>
    %180 = arith.mulf %179, %177 : vector<8x128xf32>
    %181 = arith.mulf %171, %156 : vector<8x128xf32>
    %182 = arith.addf %180, %181 : vector<8x128xf32>
    %c6_i32 = arith.constant 6 : i32
    %183 = arith.index_cast %c6_i32 : i32 to index
    %c0_59 = arith.constant 0 : index
    %c0_60 = arith.constant 0 : index
    %184 = vector.load %arg13[%183, %c0_59, %c0_60] : memref<8x8x384xf32, #tpu.memory_space<vmem>>, vector<1x8x384xf32>
    %185 = vector.shape_cast %184 : vector<1x8x384xf32> to vector<8x384xf32>
    %186 = arith.truncf %182 : vector<8x128xf32> to vector<8x128xbf16>
    %cst_61 = arith.constant dense<0.000000e+00> : vector<8x384xf32>
    %187 = tpu.matmul %186, %18, %cst_61 {dimension_numbers = #tpu.dot_dimension_numbers<[1], [0], [0], [1], [0, 0, 1, 1], [], []>} : vector<8x128xbf16>, vector<128x384xbf16>, vector<8x384xf32> -> vector<8x384xf32>
    %188 = vector.extract_strided_slice %185 {offsets = [0, 0], sizes = [8, 256], strides = [1, 1]} : vector<8x384xf32> to vector<8x256xf32>
    %189 = vector.extract_strided_slice %187 {offsets = [0, 0], sizes = [8, 256], strides = [1, 1]} : vector<8x384xf32> to vector<8x256xf32>
    %190 = arith.addf %188, %189 : vector<8x256xf32>
    %191 = arith.negf %190 : vector<8x256xf32>
    %192 = math.exp %191 : vector<8x256xf32>
    %cst_62 = arith.constant 1.000000e+00 : f32
    %193 = vector.broadcast %cst_62 : f32 to vector<8x256xf32>
    %194 = arith.addf %193, %192 : vector<8x256xf32>
    %195 = arith.divf %193, %194 : vector<8x256xf32>
    %196 = vector.extract_strided_slice %195 {offsets = [0, 0], sizes = [8, 128], strides = [1, 1]} : vector<8x256xf32> to vector<8x128xf32>
    %197 = vector.extract_strided_slice %195 {offsets = [0, 128], sizes = [8, 128], strides = [1, 1]} : vector<8x256xf32> to vector<8x128xf32>
    %198 = vector.extract_strided_slice %185 {offsets = [0, 256], sizes = [8, 128], strides = [1, 1]} : vector<8x384xf32> to vector<8x128xf32>
    %199 = vector.extract_strided_slice %187 {offsets = [0, 256], sizes = [8, 128], strides = [1, 1]} : vector<8x384xf32> to vector<8x128xf32>
    %200 = arith.addf %199, %22 : vector<8x128xf32>
    %201 = arith.mulf %196, %200 : vector<8x128xf32>
    %202 = arith.addf %198, %201 : vector<8x128xf32>
    %203 = math.tanh %202 : vector<8x128xf32>
    %cst_63 = arith.constant 1.000000e+00 : f32
    %204 = vector.broadcast %cst_63 : f32 to vector<8x128xf32>
    %205 = arith.subf %204, %197 : vector<8x128xf32>
    %206 = arith.mulf %205, %203 : vector<8x128xf32>
    %207 = arith.mulf %197, %182 : vector<8x128xf32>
    %208 = arith.addf %206, %207 : vector<8x128xf32>
    %c7_i32 = arith.constant 7 : i32
    %209 = arith.index_cast %c7_i32 : i32 to index
    %c0_64 = arith.constant 0 : index
    %c0_65 = arith.constant 0 : index
    %210 = vector.load %arg13[%209, %c0_64, %c0_65] : memref<8x8x384xf32, #tpu.memory_space<vmem>>, vector<1x8x384xf32>
    %211 = vector.shape_cast %210 : vector<1x8x384xf32> to vector<8x384xf32>
    %212 = arith.truncf %208 : vector<8x128xf32> to vector<8x128xbf16>
    %cst_66 = arith.constant dense<0.000000e+00> : vector<8x384xf32>
    %213 = tpu.matmul %212, %18, %cst_66 {dimension_numbers = #tpu.dot_dimension_numbers<[1], [0], [0], [1], [0, 0, 1, 1], [], []>} : vector<8x128xbf16>, vector<128x384xbf16>, vector<8x384xf32> -> vector<8x384xf32>
    %214 = vector.extract_strided_slice %211 {offsets = [0, 0], sizes = [8, 256], strides = [1, 1]} : vector<8x384xf32> to vector<8x256xf32>
    %215 = vector.extract_strided_slice %213 {offsets = [0, 0], sizes = [8, 256], strides = [1, 1]} : vector<8x384xf32> to vector<8x256xf32>
    %216 = arith.addf %214, %215 : vector<8x256xf32>
    %217 = arith.negf %216 : vector<8x256xf32>
    %218 = math.exp %217 : vector<8x256xf32>
    %cst_67 = arith.constant 1.000000e+00 : f32
    %219 = vector.broadcast %cst_67 : f32 to vector<8x256xf32>
    %220 = arith.addf %219, %218 : vector<8x256xf32>
    %221 = arith.divf %219, %220 : vector<8x256xf32>
    %222 = vector.extract_strided_slice %221 {offsets = [0, 0], sizes = [8, 128], strides = [1, 1]} : vector<8x256xf32> to vector<8x128xf32>
    %223 = vector.extract_strided_slice %221 {offsets = [0, 128], sizes = [8, 128], strides = [1, 1]} : vector<8x256xf32> to vector<8x128xf32>
    %224 = vector.extract_strided_slice %211 {offsets = [0, 256], sizes = [8, 128], strides = [1, 1]} : vector<8x384xf32> to vector<8x128xf32>
    %225 = vector.extract_strided_slice %213 {offsets = [0, 256], sizes = [8, 128], strides = [1, 1]} : vector<8x384xf32> to vector<8x128xf32>
    %226 = arith.addf %225, %22 : vector<8x128xf32>
    %227 = arith.mulf %222, %226 : vector<8x128xf32>
    %228 = arith.addf %224, %227 : vector<8x128xf32>
    %229 = math.tanh %228 : vector<8x128xf32>
    %cst_68 = arith.constant 1.000000e+00 : f32
    %230 = vector.broadcast %cst_68 : f32 to vector<8x128xf32>
    %231 = arith.subf %230, %223 : vector<8x128xf32>
    %232 = arith.mulf %231, %229 : vector<8x128xf32>
    %233 = arith.mulf %223, %208 : vector<8x128xf32>
    %234 = arith.addf %232, %233 : vector<8x128xf32>
    %c8_i32 = arith.constant 8 : i32
    %c0_i32_69 = arith.constant 0 : i32
    %235 = arith.index_cast %c0_i32_69 : i32 to index
    %c0_70 = arith.constant 0 : index
    %c0_71 = arith.constant 0 : index
    %236 = vector.load %arg14[%235, %c0_70, %c0_71] : memref<7x8x384xf32, #tpu.memory_space<vmem>>, vector<1x8x384xf32>
    %237 = vector.shape_cast %236 : vector<1x8x384xf32> to vector<8x384xf32>
    %238 = arith.truncf %234 : vector<8x128xf32> to vector<8x128xbf16>
    %cst_72 = arith.constant dense<0.000000e+00> : vector<8x384xf32>
    %239 = tpu.matmul %238, %19, %cst_72 {dimension_numbers = #tpu.dot_dimension_numbers<[1], [0], [0], [1], [0, 0, 1, 1], [], []>} : vector<8x128xbf16>, vector<128x384xbf16>, vector<8x384xf32> -> vector<8x384xf32>
    %240 = vector.extract_strided_slice %237 {offsets = [0, 0], sizes = [8, 256], strides = [1, 1]} : vector<8x384xf32> to vector<8x256xf32>
    %241 = vector.extract_strided_slice %239 {offsets = [0, 0], sizes = [8, 256], strides = [1, 1]} : vector<8x384xf32> to vector<8x256xf32>
    %242 = arith.addf %240, %241 : vector<8x256xf32>
    %243 = arith.negf %242 : vector<8x256xf32>
    %244 = math.exp %243 : vector<8x256xf32>
    %cst_73 = arith.constant 1.000000e+00 : f32
    %245 = vector.broadcast %cst_73 : f32 to vector<8x256xf32>
    %246 = arith.addf %245, %244 : vector<8x256xf32>
    %247 = arith.divf %245, %246 : vector<8x256xf32>
    %248 = vector.extract_strided_slice %247 {offsets = [0, 0], sizes = [8, 128], strides = [1, 1]} : vector<8x256xf32> to vector<8x128xf32>
    %249 = vector.extract_strided_slice %247 {offsets = [0, 128], sizes = [8, 128], strides = [1, 1]} : vector<8x256xf32> to vector<8x128xf32>
    %250 = vector.extract_strided_slice %237 {offsets = [0, 256], sizes = [8, 128], strides = [1, 1]} : vector<8x384xf32> to vector<8x128xf32>
    %251 = vector.extract_strided_slice %239 {offsets = [0, 256], sizes = [8, 128], strides = [1, 1]} : vector<8x384xf32> to vector<8x128xf32>
    %252 = arith.addf %251, %25 : vector<8x128xf32>
    %253 = arith.mulf %248, %252 : vector<8x128xf32>
    %254 = arith.addf %250, %253 : vector<8x128xf32>
    %255 = math.tanh %254 : vector<8x128xf32>
    %cst_74 = arith.constant 1.000000e+00 : f32
    %256 = vector.broadcast %cst_74 : f32 to vector<8x128xf32>
    %257 = arith.subf %256, %249 : vector<8x128xf32>
    %258 = arith.mulf %257, %255 : vector<8x128xf32>
    %259 = arith.mulf %249, %234 : vector<8x128xf32>
    %260 = arith.addf %258, %259 : vector<8x128xf32>
    %261 = arith.index_cast %c0_i32_69 : i32 to index
    %c0_75 = arith.constant 0 : index
    %c0_76 = arith.constant 0 : index
    %262 = vector.load %arg15[%261, %c0_75, %c0_76] : memref<7x8x128xf32, #tpu.memory_space<vmem>>, vector<1x8x128xf32>
    %263 = vector.shape_cast %262 : vector<1x8x128xf32> to vector<8x128xf32>
    %264 = vector.shape_cast %260 : vector<8x128xf32> to vector<1x8x128xf32>
    tpu.vector_store %arg15[%261, %c0_75, %c0_76], %264 {strides = array<i32>} : memref<7x8x128xf32, #tpu.memory_space<vmem>>, vector<1x8x128xf32>,
    %c1_i32_77 = arith.constant 1 : i32
    %265 = arith.index_cast %c1_i32_77 : i32 to index
    %c0_78 = arith.constant 0 : index
    %c0_79 = arith.constant 0 : index
    %266 = vector.load %arg14[%265, %c0_78, %c0_79] : memref<7x8x384xf32, #tpu.memory_space<vmem>>, vector<1x8x384xf32>
    %267 = vector.shape_cast %266 : vector<1x8x384xf32> to vector<8x384xf32>
    %268 = arith.truncf %260 : vector<8x128xf32> to vector<8x128xbf16>
    %cst_80 = arith.constant dense<0.000000e+00> : vector<8x384xf32>
    %269 = tpu.matmul %268, %19, %cst_80 {dimension_numbers = #tpu.dot_dimension_numbers<[1], [0], [0], [1], [0, 0, 1, 1], [], []>} : vector<8x128xbf16>, vector<128x384xbf16>, vector<8x384xf32> -> vector<8x384xf32>
    %270 = vector.extract_strided_slice %267 {offsets = [0, 0], sizes = [8, 256], strides = [1, 1]} : vector<8x384xf32> to vector<8x256xf32>
    %271 = vector.extract_strided_slice %269 {offsets = [0, 0], sizes = [8, 256], strides = [1, 1]} : vector<8x384xf32> to vector<8x256xf32>
    %272 = arith.addf %270, %271 : vector<8x256xf32>
    %273 = arith.negf %272 : vector<8x256xf32>
    %274 = math.exp %273 : vector<8x256xf32>
    %cst_81 = arith.constant 1.000000e+00 : f32
    %275 = vector.broadcast %cst_81 : f32 to vector<8x256xf32>
    %276 = arith.addf %275, %274 : vector<8x256xf32>
    %277 = arith.divf %275, %276 : vector<8x256xf32>
    %278 = vector.extract_strided_slice %277 {offsets = [0, 0], sizes = [8, 128], strides = [1, 1]} : vector<8x256xf32> to vector<8x128xf32>
    %279 = vector.extract_strided_slice %277 {offsets = [0, 128], sizes = [8, 128], strides = [1, 1]} : vector<8x256xf32> to vector<8x128xf32>
    %280 = vector.extract_strided_slice %267 {offsets = [0, 256], sizes = [8, 128], strides = [1, 1]} : vector<8x384xf32> to vector<8x128xf32>
    %281 = vector.extract_strided_slice %269 {offsets = [0, 256], sizes = [8, 128], strides = [1, 1]} : vector<8x384xf32> to vector<8x128xf32>
    %282 = arith.addf %281, %25 : vector<8x128xf32>
    %283 = arith.mulf %278, %282 : vector<8x128xf32>
    %284 = arith.addf %280, %283 : vector<8x128xf32>
    %285 = math.tanh %284 : vector<8x128xf32>
    %cst_82 = arith.constant 1.000000e+00 : f32
    %286 = vector.broadcast %cst_82 : f32 to vector<8x128xf32>
    %287 = arith.subf %286, %279 : vector<8x128xf32>
    %288 = arith.mulf %287, %285 : vector<8x128xf32>
    %289 = arith.mulf %279, %260 : vector<8x128xf32>
    %290 = arith.addf %288, %289 : vector<8x128xf32>
    %291 = arith.index_cast %c1_i32_77 : i32 to index
    %c0_83 = arith.constant 0 : index
    %c0_84 = arith.constant 0 : index
    %292 = vector.load %arg15[%291, %c0_83, %c0_84] : memref<7x8x128xf32, #tpu.memory_space<vmem>>, vector<1x8x128xf32>
    %293 = vector.shape_cast %292 : vector<1x8x128xf32> to vector<8x128xf32>
    %294 = vector.shape_cast %290 : vector<8x128xf32> to vector<1x8x128xf32>
    tpu.vector_store %arg15[%291, %c0_83, %c0_84], %294 {strides = array<i32>} : memref<7x8x128xf32, #tpu.memory_space<vmem>>, vector<1x8x128xf32>,
    %c2_i32_85 = arith.constant 2 : i32
    %295 = arith.index_cast %c2_i32_85 : i32 to index
    %c0_86 = arith.constant 0 : index
    %c0_87 = arith.constant 0 : index
    %296 = vector.load %arg14[%295, %c0_86, %c0_87] : memref<7x8x384xf32, #tpu.memory_space<vmem>>, vector<1x8x384xf32>
    %297 = vector.shape_cast %296 : vector<1x8x384xf32> to vector<8x384xf32>
    %298 = arith.truncf %290 : vector<8x128xf32> to vector<8x128xbf16>
    %cst_88 = arith.constant dense<0.000000e+00> : vector<8x384xf32>
    %299 = tpu.matmul %298, %19, %cst_88 {dimension_numbers = #tpu.dot_dimension_numbers<[1], [0], [0], [1], [0, 0, 1, 1], [], []>} : vector<8x128xbf16>, vector<128x384xbf16>, vector<8x384xf32> -> vector<8x384xf32>
    %300 = vector.extract_strided_slice %297 {offsets = [0, 0], sizes = [8, 256], strides = [1, 1]} : vector<8x384xf32> to vector<8x256xf32>
    %301 = vector.extract_strided_slice %299 {offsets = [0, 0], sizes = [8, 256], strides = [1, 1]} : vector<8x384xf32> to vector<8x256xf32>
    %302 = arith.addf %300, %301 : vector<8x256xf32>
    %303 = arith.negf %302 : vector<8x256xf32>
    %304 = math.exp %303 : vector<8x256xf32>
    %cst_89 = arith.constant 1.000000e+00 : f32
    %305 = vector.broadcast %cst_89 : f32 to vector<8x256xf32>
    %306 = arith.addf %305, %304 : vector<8x256xf32>
    %307 = arith.divf %305, %306 : vector<8x256xf32>
    %308 = vector.extract_strided_slice %307 {offsets = [0, 0], sizes = [8, 128], strides = [1, 1]} : vector<8x256xf32> to vector<8x128xf32>
    %309 = vector.extract_strided_slice %307 {offsets = [0, 128], sizes = [8, 128], strides = [1, 1]} : vector<8x256xf32> to vector<8x128xf32>
    %310 = vector.extract_strided_slice %297 {offsets = [0, 256], sizes = [8, 128], strides = [1, 1]} : vector<8x384xf32> to vector<8x128xf32>
    %311 = vector.extract_strided_slice %299 {offsets = [0, 256], sizes = [8, 128], strides = [1, 1]} : vector<8x384xf32> to vector<8x128xf32>
    %312 = arith.addf %311, %25 : vector<8x128xf32>
    %313 = arith.mulf %308, %312 : vector<8x128xf32>
    %314 = arith.addf %310, %313 : vector<8x128xf32>
    %315 = math.tanh %314 : vector<8x128xf32>
    %cst_90 = arith.constant 1.000000e+00 : f32
    %316 = vector.broadcast %cst_90 : f32 to vector<8x128xf32>
    %317 = arith.subf %316, %309 : vector<8x128xf32>
    %318 = arith.mulf %317, %315 : vector<8x128xf32>
    %319 = arith.mulf %309, %290 : vector<8x128xf32>
    %320 = arith.addf %318, %319 : vector<8x128xf32>
    %321 = arith.index_cast %c2_i32_85 : i32 to index
    %c0_91 = arith.constant 0 : index
    %c0_92 = arith.constant 0 : index
    %322 = vector.load %arg15[%321, %c0_91, %c0_92] : memref<7x8x128xf32, #tpu.memory_space<vmem>>, vector<1x8x128xf32>
    %323 = vector.shape_cast %322 : vector<1x8x128xf32> to vector<8x128xf32>
    %324 = vector.shape_cast %320 : vector<8x128xf32> to vector<1x8x128xf32>
    tpu.vector_store %arg15[%321, %c0_91, %c0_92], %324 {strides = array<i32>} : memref<7x8x128xf32, #tpu.memory_space<vmem>>, vector<1x8x128xf32>,
    %c3_i32_93 = arith.constant 3 : i32
    %325 = arith.index_cast %c3_i32_93 : i32 to index
    %c0_94 = arith.constant 0 : index
    %c0_95 = arith.constant 0 : index
    %326 = vector.load %arg14[%325, %c0_94, %c0_95] : memref<7x8x384xf32, #tpu.memory_space<vmem>>, vector<1x8x384xf32>
    %327 = vector.shape_cast %326 : vector<1x8x384xf32> to vector<8x384xf32>
    %328 = arith.truncf %320 : vector<8x128xf32> to vector<8x128xbf16>
    %cst_96 = arith.constant dense<0.000000e+00> : vector<8x384xf32>
    %329 = tpu.matmul %328, %19, %cst_96 {dimension_numbers = #tpu.dot_dimension_numbers<[1], [0], [0], [1], [0, 0, 1, 1], [], []>} : vector<8x128xbf16>, vector<128x384xbf16>, vector<8x384xf32> -> vector<8x384xf32>
    %330 = vector.extract_strided_slice %327 {offsets = [0, 0], sizes = [8, 256], strides = [1, 1]} : vector<8x384xf32> to vector<8x256xf32>
    %331 = vector.extract_strided_slice %329 {offsets = [0, 0], sizes = [8, 256], strides = [1, 1]} : vector<8x384xf32> to vector<8x256xf32>
    %332 = arith.addf %330, %331 : vector<8x256xf32>
    %333 = arith.negf %332 : vector<8x256xf32>
    %334 = math.exp %333 : vector<8x256xf32>
    %cst_97 = arith.constant 1.000000e+00 : f32
    %335 = vector.broadcast %cst_97 : f32 to vector<8x256xf32>
    %336 = arith.addf %335, %334 : vector<8x256xf32>
    %337 = arith.divf %335, %336 : vector<8x256xf32>
    %338 = vector.extract_strided_slice %337 {offsets = [0, 0], sizes = [8, 128], strides = [1, 1]} : vector<8x256xf32> to vector<8x128xf32>
    %339 = vector.extract_strided_slice %337 {offsets = [0, 128], sizes = [8, 128], strides = [1, 1]} : vector<8x256xf32> to vector<8x128xf32>
    %340 = vector.extract_strided_slice %327 {offsets = [0, 256], sizes = [8, 128], strides = [1, 1]} : vector<8x384xf32> to vector<8x128xf32>
    %341 = vector.extract_strided_slice %329 {offsets = [0, 256], sizes = [8, 128], strides = [1, 1]} : vector<8x384xf32> to vector<8x128xf32>
    %342 = arith.addf %341, %25 : vector<8x128xf32>
    %343 = arith.mulf %338, %342 : vector<8x128xf32>
    %344 = arith.addf %340, %343 : vector<8x128xf32>
    %345 = math.tanh %344 : vector<8x128xf32>
    %cst_98 = arith.constant 1.000000e+00 : f32
    %346 = vector.broadcast %cst_98 : f32 to vector<8x128xf32>
    %347 = arith.subf %346, %339 : vector<8x128xf32>
    %348 = arith.mulf %347, %345 : vector<8x128xf32>
    %349 = arith.mulf %339, %320 : vector<8x128xf32>
    %350 = arith.addf %348, %349 : vector<8x128xf32>
    %351 = arith.index_cast %c3_i32_93 : i32 to index
    %c0_99 = arith.constant 0 : index
    %c0_100 = arith.constant 0 : index
    %352 = vector.load %arg15[%351, %c0_99, %c0_100] : memref<7x8x128xf32, #tpu.memory_space<vmem>>, vector<1x8x128xf32>
    %353 = vector.shape_cast %352 : vector<1x8x128xf32> to vector<8x128xf32>
    %354 = vector.shape_cast %350 : vector<8x128xf32> to vector<1x8x128xf32>
    tpu.vector_store %arg15[%351, %c0_99, %c0_100], %354 {strides = array<i32>} : memref<7x8x128xf32, #tpu.memory_space<vmem>>, vector<1x8x128xf32>,
    %c4_i32_101 = arith.constant 4 : i32
    %355 = arith.index_cast %c4_i32_101 : i32 to index
    %c0_102 = arith.constant 0 : index
    %c0_103 = arith.constant 0 : index
    %356 = vector.load %arg14[%355, %c0_102, %c0_103] : memref<7x8x384xf32, #tpu.memory_space<vmem>>, vector<1x8x384xf32>
    %357 = vector.shape_cast %356 : vector<1x8x384xf32> to vector<8x384xf32>
    %358 = arith.truncf %350 : vector<8x128xf32> to vector<8x128xbf16>
    %cst_104 = arith.constant dense<0.000000e+00> : vector<8x384xf32>
    %359 = tpu.matmul %358, %19, %cst_104 {dimension_numbers = #tpu.dot_dimension_numbers<[1], [0], [0], [1], [0, 0, 1, 1], [], []>} : vector<8x128xbf16>, vector<128x384xbf16>, vector<8x384xf32> -> vector<8x384xf32>
    %360 = vector.extract_strided_slice %357 {offsets = [0, 0], sizes = [8, 256], strides = [1, 1]} : vector<8x384xf32> to vector<8x256xf32>
    %361 = vector.extract_strided_slice %359 {offsets = [0, 0], sizes = [8, 256], strides = [1, 1]} : vector<8x384xf32> to vector<8x256xf32>
    %362 = arith.addf %360, %361 : vector<8x256xf32>
    %363 = arith.negf %362 : vector<8x256xf32>
    %364 = math.exp %363 : vector<8x256xf32>
    %cst_105 = arith.constant 1.000000e+00 : f32
    %365 = vector.broadcast %cst_105 : f32 to vector<8x256xf32>
    %366 = arith.addf %365, %364 : vector<8x256xf32>
    %367 = arith.divf %365, %366 : vector<8x256xf32>
    %368 = vector.extract_strided_slice %367 {offsets = [0, 0], sizes = [8, 128], strides = [1, 1]} : vector<8x256xf32> to vector<8x128xf32>
    %369 = vector.extract_strided_slice %367 {offsets = [0, 128], sizes = [8, 128], strides = [1, 1]} : vector<8x256xf32> to vector<8x128xf32>
    %370 = vector.extract_strided_slice %357 {offsets = [0, 256], sizes = [8, 128], strides = [1, 1]} : vector<8x384xf32> to vector<8x128xf32>
    %371 = vector.extract_strided_slice %359 {offsets = [0, 256], sizes = [8, 128], strides = [1, 1]} : vector<8x384xf32> to vector<8x128xf32>
    %372 = arith.addf %371, %25 : vector<8x128xf32>
    %373 = arith.mulf %368, %372 : vector<8x128xf32>
    %374 = arith.addf %370, %373 : vector<8x128xf32>
    %375 = math.tanh %374 : vector<8x128xf32>
    %cst_106 = arith.constant 1.000000e+00 : f32
    %376 = vector.broadcast %cst_106 : f32 to vector<8x128xf32>
    %377 = arith.subf %376, %369 : vector<8x128xf32>
    %378 = arith.mulf %377, %375 : vector<8x128xf32>
    %379 = arith.mulf %369, %350 : vector<8x128xf32>
    %380 = arith.addf %378, %379 : vector<8x128xf32>
    %381 = arith.index_cast %c4_i32_101 : i32 to index
    %c0_107 = arith.constant 0 : index
    %c0_108 = arith.constant 0 : index
    %382 = vector.load %arg15[%381, %c0_107, %c0_108] : memref<7x8x128xf32, #tpu.memory_space<vmem>>, vector<1x8x128xf32>
    %383 = vector.shape_cast %382 : vector<1x8x128xf32> to vector<8x128xf32>
    %384 = vector.shape_cast %380 : vector<8x128xf32> to vector<1x8x128xf32>
    tpu.vector_store %arg15[%381, %c0_107, %c0_108], %384 {strides = array<i32>} : memref<7x8x128xf32, #tpu.memory_space<vmem>>, vector<1x8x128xf32>,
    %c5_i32_109 = arith.constant 5 : i32
    %385 = arith.index_cast %c5_i32_109 : i32 to index
    %c0_110 = arith.constant 0 : index
    %c0_111 = arith.constant 0 : index
    %386 = vector.load %arg14[%385, %c0_110, %c0_111] : memref<7x8x384xf32, #tpu.memory_space<vmem>>, vector<1x8x384xf32>
    %387 = vector.shape_cast %386 : vector<1x8x384xf32> to vector<8x384xf32>
    %388 = arith.truncf %380 : vector<8x128xf32> to vector<8x128xbf16>
    %cst_112 = arith.constant dense<0.000000e+00> : vector<8x384xf32>
    %389 = tpu.matmul %388, %19, %cst_112 {dimension_numbers = #tpu.dot_dimension_numbers<[1], [0], [0], [1], [0, 0, 1, 1], [], []>} : vector<8x128xbf16>, vector<128x384xbf16>, vector<8x384xf32> -> vector<8x384xf32>
    %390 = vector.extract_strided_slice %387 {offsets = [0, 0], sizes = [8, 256], strides = [1, 1]} : vector<8x384xf32> to vector<8x256xf32>
    %391 = vector.extract_strided_slice %389 {offsets = [0, 0], sizes = [8, 256], strides = [1, 1]} : vector<8x384xf32> to vector<8x256xf32>
    %392 = arith.addf %390, %391 : vector<8x256xf32>
    %393 = arith.negf %392 : vector<8x256xf32>
    %394 = math.exp %393 : vector<8x256xf32>
    %cst_113 = arith.constant 1.000000e+00 : f32
    %395 = vector.broadcast %cst_113 : f32 to vector<8x256xf32>
    %396 = arith.addf %395, %394 : vector<8x256xf32>
    %397 = arith.divf %395, %396 : vector<8x256xf32>
    %398 = vector.extract_strided_slice %397 {offsets = [0, 0], sizes = [8, 128], strides = [1, 1]} : vector<8x256xf32> to vector<8x128xf32>
    %399 = vector.extract_strided_slice %397 {offsets = [0, 128], sizes = [8, 128], strides = [1, 1]} : vector<8x256xf32> to vector<8x128xf32>
    %400 = vector.extract_strided_slice %387 {offsets = [0, 256], sizes = [8, 128], strides = [1, 1]} : vector<8x384xf32> to vector<8x128xf32>
    %401 = vector.extract_strided_slice %389 {offsets = [0, 256], sizes = [8, 128], strides = [1, 1]} : vector<8x384xf32> to vector<8x128xf32>
    %402 = arith.addf %401, %25 : vector<8x128xf32>
    %403 = arith.mulf %398, %402 : vector<8x128xf32>
    %404 = arith.addf %400, %403 : vector<8x128xf32>
    %405 = math.tanh %404 : vector<8x128xf32>
    %cst_114 = arith.constant 1.000000e+00 : f32
    %406 = vector.broadcast %cst_114 : f32 to vector<8x128xf32>
    %407 = arith.subf %406, %399 : vector<8x128xf32>
    %408 = arith.mulf %407, %405 : vector<8x128xf32>
    %409 = arith.mulf %399, %380 : vector<8x128xf32>
    %410 = arith.addf %408, %409 : vector<8x128xf32>
    %411 = arith.index_cast %c5_i32_109 : i32 to index
    %c0_115 = arith.constant 0 : index
    %c0_116 = arith.constant 0 : index
    %412 = vector.load %arg15[%411, %c0_115, %c0_116] : memref<7x8x128xf32, #tpu.memory_space<vmem>>, vector<1x8x128xf32>
    %413 = vector.shape_cast %412 : vector<1x8x128xf32> to vector<8x128xf32>
    %414 = vector.shape_cast %410 : vector<8x128xf32> to vector<1x8x128xf32>
    tpu.vector_store %arg15[%411, %c0_115, %c0_116], %414 {strides = array<i32>} : memref<7x8x128xf32, #tpu.memory_space<vmem>>, vector<1x8x128xf32>,
    %c6_i32_117 = arith.constant 6 : i32
    %415 = arith.index_cast %c6_i32_117 : i32 to index
    %c0_118 = arith.constant 0 : index
    %c0_119 = arith.constant 0 : index
    %416 = vector.load %arg14[%415, %c0_118, %c0_119] : memref<7x8x384xf32, #tpu.memory_space<vmem>>, vector<1x8x384xf32>
    %417 = vector.shape_cast %416 : vector<1x8x384xf32> to vector<8x384xf32>
    %418 = arith.truncf %410 : vector<8x128xf32> to vector<8x128xbf16>
    %cst_120 = arith.constant dense<0.000000e+00> : vector<8x384xf32>
    %419 = tpu.matmul %418, %19, %cst_120 {dimension_numbers = #tpu.dot_dimension_numbers<[1], [0], [0], [1], [0, 0, 1, 1], [], []>} : vector<8x128xbf16>, vector<128x384xbf16>, vector<8x384xf32> -> vector<8x384xf32>
    %420 = vector.extract_strided_slice %417 {offsets = [0, 0], sizes = [8, 256], strides = [1, 1]} : vector<8x384xf32> to vector<8x256xf32>
    %421 = vector.extract_strided_slice %419 {offsets = [0, 0], sizes = [8, 256], strides = [1, 1]} : vector<8x384xf32> to vector<8x256xf32>
    %422 = arith.addf %420, %421 : vector<8x256xf32>
    %423 = arith.negf %422 : vector<8x256xf32>
    %424 = math.exp %423 : vector<8x256xf32>
    %cst_121 = arith.constant 1.000000e+00 : f32
    %425 = vector.broadcast %cst_121 : f32 to vector<8x256xf32>
    %426 = arith.addf %425, %424 : vector<8x256xf32>
    %427 = arith.divf %425, %426 : vector<8x256xf32>
    %428 = vector.extract_strided_slice %427 {offsets = [0, 0], sizes = [8, 128], strides = [1, 1]} : vector<8x256xf32> to vector<8x128xf32>
    %429 = vector.extract_strided_slice %427 {offsets = [0, 128], sizes = [8, 128], strides = [1, 1]} : vector<8x256xf32> to vector<8x128xf32>
    %430 = vector.extract_strided_slice %417 {offsets = [0, 256], sizes = [8, 128], strides = [1, 1]} : vector<8x384xf32> to vector<8x128xf32>
    %431 = vector.extract_strided_slice %419 {offsets = [0, 256], sizes = [8, 128], strides = [1, 1]} : vector<8x384xf32> to vector<8x128xf32>
    %432 = arith.addf %431, %25 : vector<8x128xf32>
    %433 = arith.mulf %428, %432 : vector<8x128xf32>
    %434 = arith.addf %430, %433 : vector<8x128xf32>
    %435 = math.tanh %434 : vector<8x128xf32>
    %cst_122 = arith.constant 1.000000e+00 : f32
    %436 = vector.broadcast %cst_122 : f32 to vector<8x128xf32>
    %437 = arith.subf %436, %429 : vector<8x128xf32>
    %438 = arith.mulf %437, %435 : vector<8x128xf32>
    %439 = arith.mulf %429, %410 : vector<8x128xf32>
    %440 = arith.addf %438, %439 : vector<8x128xf32>
    %441 = arith.index_cast %c6_i32_117 : i32 to index
    %c0_123 = arith.constant 0 : index
    %c0_124 = arith.constant 0 : index
    %442 = vector.load %arg15[%441, %c0_123, %c0_124] : memref<7x8x128xf32, #tpu.memory_space<vmem>>, vector<1x8x128xf32>
    %443 = vector.shape_cast %442 : vector<1x8x128xf32> to vector<8x128xf32>
    %444 = vector.shape_cast %440 : vector<8x128xf32> to vector<1x8x128xf32>
    tpu.vector_store %arg15[%441, %c0_123, %c0_124], %444 {strides = array<i32>} : memref<7x8x128xf32, #tpu.memory_space<vmem>>, vector<1x8x128xf32>,
    %c7_i32_125 = arith.constant 7 : i32
    %c0_126 = arith.constant 0 : index
    %c0_127 = arith.constant 0 : index
    %c0_128 = arith.constant 0 : index
    %445 = vector.load %arg15[%c0_126, %c0_127, %c0_128] : memref<7x8x128xf32, #tpu.memory_space<vmem>>, vector<7x8x128xf32>
    %446 = vector.shape_cast %445 : vector<7x8x128xf32> to vector<56x128xf32>
    %447 = arith.truncf %446 : vector<56x128xf32> to vector<56x128xbf16>
    %c0_129 = arith.constant 0 : index
    %c0_130 = arith.constant 0 : index
    %448 = vector.load %arg10[%c0_129, %c0_130] : memref<128x128xbf16, #tpu.memory_space<vmem>>, vector<128x128xbf16>
    %cst_131 = arith.constant dense<0.000000e+00> : vector<56x128xf32>
    %449 = tpu.matmul %447, %448, %cst_131 {dimension_numbers = #tpu.dot_dimension_numbers<[1], [0], [0], [1], [0, 0, 1, 1], [], []>} : vector<56x128xbf16>, vector<128x128xbf16>, vector<56x128xf32> -> vector<56x128xf32>
    %c0_132 = arith.constant 0 : index
    %c0_133 = arith.constant 0 : index
    %450 = vector.load %arg11[%c0_132, %c0_133] : memref<1x128xf32, #tpu.memory_space<vmem>>, vector<1x128xf32>
    %451 = vector.broadcast %450 : vector<1x128xf32> to vector<56x128xf32>
    %452 = arith.addf %449, %451 : vector<56x128xf32>
    %453 = vector.shape_cast %452 : vector<56x128xf32> to vector<7x8x128xf32>
    %c0_134 = arith.constant 0 : index
    %c0_135 = arith.constant 0 : index
    %c0_136 = arith.constant 0 : index
    %454 = vector.load %arg12[%c0_134, %c0_135, %c0_136] : memref<7x8x128xf32, #tpu.memory_space<vmem>>, vector<7x8x128xf32>
    tpu.vector_store %arg12[%c0_134, %c0_135, %c0_136], %453 {strides = array<i32>} : memref<7x8x128xf32, #tpu.memory_space<vmem>>, vector<7x8x128xf32>,
    return
  }
}

</mosaic_0001>

<bundles_post_ra>
// kernel: seq2seq_forward.2
= control target key start
LH: loop header
LB: loop body
LE: loop exit
PB: predicated region body
PF: predicated region fallthrough
CT: control target
= control target key end

     0   :  { %s4884_s0 = inlined_call_operand.hbm [shape: bf16[128,384], index: 0, kind: input, shape index: {}]   ;;  %s4885_s1 = inlined_call_operand.hbm [shape: bf16[128,384], index: 1, kind: input, shape index: {}]   ;;  %s4886_s2 = inlined_call_operand.vmem [shape: f32[1,384], index: 2, kind: input, shape index: {}]   ;;  %s4887_s3 = inlined_call_operand.vmem [shape: f32[1,128], index: 3, kind: input, shape index: {}]   ;;  %s4888_s4 = inlined_call_operand.hbm [shape: bf16[128,384], index: 4, kind: input, shape index: {}]   ;;  %s4889_s5 = inlined_call_operand.hbm [shape: bf16[128,384], index: 5, kind: input, shape index: {}]   ;;  %s4890_s6 = inlined_call_operand.vmem [shape: f32[1,384], index: 6, kind: input, shape index: {}]   ;;  %s4891_s7 = inlined_call_operand.vmem [shape: f32[1,128], index: 7, kind: input, shape index: {}]   ;;  %s4892_s8 = inlined_call_operand.hbm [shape: bf16[128,128], index: 8, kind: input, shape index: {}]   ;;  %s4893_s9 = inlined_call_operand.vmem [shape: f32[1,128], index: 9, kind: input, shape index: {}]   ;;  %s4894_s10 = inlined_call_operand.vmem [shape: bf16[8,2,63], index: 10, kind: input, shape index: {}]   ;;  %s4895_s11 = inlined_call_operand.<no memory space> [shape: bf16[], index: 11, kind: input, shape index: {}]   ;;  %s4896_s12 = inlined_call_operand.vmem [shape: bf16[7,2,63], index: 12, kind: input, shape index: {}]   ;;  %s4897_s13 = inlined_call_operand.vmem [shape: f32[7,8,128], index: 13, kind: output, shape index: {}]  }
   0x1   :  { %v18_v0 = vstv %s4895_s11 }
   0x2   :  { %v3888_v1 = vunpack.i.l.bf16 %v18_v0 }
   0x3   :  { %28 = vsyncpa [#allocation16], 0 }
   0x4   :  { %29 = vsyncpa [#allocation18], 0 }
   0x5   :  { %30 = vsyncpa [#allocation21], 0  ;;  %s52_s29 = sshll.u32 %s4885_s1, 4  ;;  %s3805_s30 = smov [#allocation17]   ;;  %s53_s29 = int_to_ptr.hbm [resolvable:$true] %s52_s29 }
   0x6   :  { %s54_s14 = sshll.u32 %s3805_s30, 4  ;;  %s82_s17 = sshll.u32 %s4889_s5, 4  ;;  %s55_s14 = int_to_ptr.vmem [resolvable:$true] %s54_s14  ;;  %s83_s17 = int_to_ptr.hbm [resolvable:$true] %s82_s17 }
   0x7   :  { %s3806_s18 = smov 192   ;;  %s3807_s19 = smov 12  }
   0x8   :  { %60 = dma.hbm_to_vmem [thread:$0]  %s53_s29, 3072, %s55_s14, [#allocation18], %s3806_s18, %s3806_s18, %s3807_s19  }
   0x9   :  { %s3808_s11 = smov [#allocation20]   ;;  %s39_s23 = sshll.u32 %s4884_s0, 4  ;;  %s40_s23 = int_to_ptr.hbm [resolvable:$true] %s39_s23 }
   0xa   :  { %s84_s20 = sshll.u32 %s3808_s11, 4  ;;  %s69_s25 = sshll.u32 %s4888_s4, 4  ;;  %s85_s20 = int_to_ptr.vmem [resolvable:$true] %s84_s20  ;;  %s70_s25 = int_to_ptr.hbm [resolvable:$true] %s69_s25 }
   0xb   :  { %90 = dma.hbm_to_vmem [thread:$0]  %s83_s17, 3072, %s85_s20, [#allocation21], %s3806_s18, %s3806_s18, %s3807_s19  }
   0xc   :  { %s3809_s26 = smov [#allocation15]   ;;  %s3810_s5 = smov [#allocation19]  }
   0xd   :  { %s41_s27 = sshll.u32 %s3809_s26, 4  ;;  %s71_s28 = sshll.u32 %s3810_s5, 4  ;;  %s42_s27 = int_to_ptr.vmem [resolvable:$true] %s41_s27  ;;  %s72_s28 = int_to_ptr.vmem [resolvable:$true] %s71_s28 }
   0xe   :  { %47 = dma.hbm_to_vmem [thread:$0]  %s40_s23, 3072, %s42_s27, [#allocation16], %s3806_s18, %s3806_s18, %s3807_s19  }
   0xf   :  { %s99_s14 = sshll.u32 %s4892_s8, 4  ;;  %s3811_s0 = smov [#allocation22]   ;;  %s100_s14 = int_to_ptr.hbm [resolvable:$true] %s99_s14 }
  0x10   :  { %77 = dma.hbm_to_vmem [thread:$0]  %s70_s25, 3072, %s72_s28, [#allocation18], %s3806_s18, %s3806_s18, %s3807_s19  }
  0x11   :  { %s101_s15 = sshll.u32 %s3811_s0, 4  ;;  %s3812_s16 = smov 64   ;;  %s102_s15 = int_to_ptr.vmem [resolvable:$true] %s101_s15 }
  0x12   :  { %s3813_s17 = smov 4  }
  0x13   :  { %107 = dma.hbm_to_vmem [thread:$0]  %s100_s14, 1024, %s102_s15, [#allocation21], %s3812_s16, %s3812_s16, %s3813_s17  }
  0x14   :  { %3799 = dma.done.wait [#allocation16], 3072  }
  0x15   :  { %3800 = vsyncadd [#allocation16], 4294964224 }
  0x16   :  { %3801 = dma.done.wait [#allocation18], 6144  }
  0x17   :  { %3802 = vsyncadd [#allocation18], 4294961152 }
  0x18   :  { %3803 = dma.done.wait [#allocation21], 4096  }
  0x19   :  { %3804 = vsyncadd [#allocation21], 4294963200  ;;  %v136_v2 = vlaneseq  ;;  %v3421_v3 = vld [vmem:[#allocation15 + $0xac] sm:$0xf]  ;;  %v3026_v4 = vld [vmem:[#allocation15 + $0xb4] sm:$0xf0] }
  0x1a   :  { %v3418_v5 = vld [vmem:[#allocation15 + $0x94] sm:$0xf]  ;;  %v3029_v6 = vor.u32 %v3421_v3, %v3026_v4  ;;  %v3014_v7 = vld [vmem:[#allocation15 + $0x9c] sm:$0xf0]  ;;  %v3415_v11 = vld [vmem:[#allocation15 + $0x7c] sm:$0xf] }
  0x1b   :  { %v3905_v8 = vshrl.u32 %v136_v2, 7  ;;  %v3907_v9 = vand.u32 127, %v136_v2  ;;  %v3017_v10 = vor.u32 %v3418_v5, %v3014_v7  ;;  %v3002_v12 = vld [vmem:[#allocation15 + $0x84] sm:$0xf0]  ;;  %v133_v13 = vld [vmem:[%s4894_s10] sm:$0x1] }
  0x1c   :  { %686 = vmatpush.bf16.msra.mxu2 %v3029_v6  ;;  %3507 = vmatpush.bf16.msra.mxu3 %v3029_v6  ;;  %v2909_v14 = vld [vmem:[%s4894_s10 + $0x1] sm:$0x1]  ;;  %v134_v15 = vunpack.c.l.bf16 %v133_v13  ;;  %v2912_v17 = vld [vmem:[%s4894_s10 + $0x4] sm:$0x1]  ;;  %v2913_v18 = vld [vmem:[%s4894_s10 + $0x5] sm:$0x1]  ;;  %v3005_v19 = vor.u32 %v3415_v11, %v3002_v12 }
  0x1d   :  { %vm139_vm0 = vcmp.lt.s32.totalorder %v3905_v8, 2  ;;  %vm144_vm1 = vcmp.lt.s32.totalorder %v3907_v9, 63  ;;  %v155_v16 = vunpack.c.l.bf16 %v2909_v14  ;;  %v221_v20 = vunpack.c.l.bf16 %v2912_v17  ;;  %v3412_v22 = vld [vmem:[#allocation15 + $0x64] sm:$0xf]  ;;  %v2990_v23 = vld [vmem:[#allocation15 + $0x6c] sm:$0xf0] }
  0x1e   :  { %v243_v21 = vunpack.c.l.bf16 %v2913_v18  ;;  %v140_v24 = vsel %vm139_vm0, %v134_v15, %v3888_v1  ;;  %v2993_v34 = vor.u32 %v3412_v22, %v2990_v23  ;;  %v3409_v37 = vld [vmem:[#allocation15 + $0x4c] sm:$0xf]  ;;  %v2978_v38 = vld [vmem:[#allocation15 + $0x54] sm:$0xf0]  ;;  %v2910_v39 = vld [vmem:[%s4894_s10 + $0x2] sm:$0x1] }
  0x1f   :  { %v161_v25 = vsel %vm139_vm0, %v155_v16, %v3888_v1  ;;  %v145_v26 = vsel %vm144_vm1, %v140_v24, %v3888_v1  ;;  %v227_v28 = vsel %vm139_vm0, %v221_v20, %v3888_v1  ;;  %v2911_v40 = vld [vmem:[%s4894_s10 + $0x3] sm:$0x1]  ;;  %v177_v41 = vunpack.c.l.bf16 %v2910_v39  ;;  %v2914_v43 = vld [vmem:[%s4894_s10 + $0x6] sm:$0x1]  ;;  %v2915_v44 = vld [vmem:[%s4894_s10 + $0x7] sm:$0x1] }
  0x20   :  { %687 = vmatpush.bf16.msra.mxu2 %v3017_v10  ;;  %3508 = vmatpush.bf16.msra.mxu3 %v3017_v10  ;;  %v166_v27 = vsel %vm144_vm1, %v161_v25, %v3888_v1  ;;  %v249_v29 = vsel %vm139_vm0, %v243_v21, %v3888_v1  ;;  %v146_v30 = vpack.c.bf16 0.0, %v145_v26  ;;  %v232_v32 = vsel %vm144_vm1, %v227_v28, %v3888_v1  ;;  %v3406_v48 = vld [vmem:[#allocation15 + $0x34] sm:$0xf]  ;;  %v2966_v49 = vld [vmem:[#allocation15 + $0x3c] sm:$0xf0] }
  0x21   :  { %v168_v31 = vpack.c.bf16 0.0, %v166_v27  ;;  %v254_v33 = vsel %vm144_vm1, %v249_v29, %v3888_v1  ;;  %v234_v35 = vpack.c.bf16 0.0, %v232_v32  ;;  %v199_v42 = vunpack.c.l.bf16 %v2911_v40  ;;  %v307_v63 = vld [vmem:[%s4896_s12] sm:$0x1]  ;;  %v2916_v0 = vld [vmem:[%s4896_s12 + $0x1] sm:$0x1] }
  0x22   :  { %v256_v36 = vpack.c.bf16 0.0, %v254_v33  ;;  %149 = vst [vmem:[#allocation23] sm:$0xf] %v146_v30  ;;  %v2981_v45 = vor.u32 %v3409_v37, %v2978_v38  ;;  %v265_v46 = vunpack.c.l.bf16 %v2914_v43  ;;  %v287_v47 = vunpack.c.l.bf16 %v2915_v44  ;;  %v3403_v2 = vld [vmem:[#allocation15 + $0x1c] sm:$0xf] }
  0x23   :  { %171 = vst [vmem:[#allocation23 + $0x4] sm:$0xf] %v168_v31  ;;  %v183_v50 = vsel %vm139_vm0, %v177_v41, %v3888_v1  ;;  %v205_v51 = vsel %vm139_vm0, %v199_v42, %v3888_v1  ;;  %v2969_v60 = vor.u32 %v3406_v48, %v2966_v49  ;;  %v2954_v3 = vld [vmem:[#allocation15 + $0x24] sm:$0xf0]  ;;  %v308_v4 = vunpack.c.l.bf16 %v307_v63  ;;  %v3400_v11 = vld [vmem:[#allocation15 + $0x4] sm:$0xf] }
  0x24   :  { %688 = vmatpush.bf16.msra.mxu2 %v3005_v19  ;;  %3509 = vmatpush.bf16.msra.mxu3 %v3005_v19  ;;  %237 = vst [vmem:[#allocation23 + $0x10] sm:$0xf] %v234_v35  ;;  %v188_v52 = vsel %vm144_vm1, %v183_v50, %v3888_v1  ;;  %v210_v53 = vsel %vm144_vm1, %v205_v51, %v3888_v1  ;;  %v329_v5 = vunpack.c.l.bf16 %v2916_v0  ;;  %v2942_v14 = vld [vmem:[#allocation15 + $0xc] sm:$0xf0]  ;;  %v3423_v16 = vld [vmem:[#allocation15 + $0xb8] sm:$0xf0] }
  0x25   :  { %259 = vst [vmem:[#allocation23 + $0x14] sm:$0xf] %v256_v36  ;;  %v271_v54 = vsel %vm139_vm0, %v265_v46, %v3888_v1  ;;  %v293_v55 = vsel %vm139_vm0, %v287_v47, %v3888_v1  ;;  %v190_v56 = vpack.c.bf16 0.0, %v188_v52  ;;  %v212_v57 = vpack.c.bf16 0.0, %v210_v53  ;;  %v3032_v15 = vld [vmem:[#allocation15 + $0xb0] sm:$0xf] }
  0x26   :  { %v276_v58 = vsel %vm144_vm1, %v271_v54, %v3888_v1  ;;  %v298_v59 = vsel %vm144_vm1, %v293_v55, %v3888_v1  ;;  %v314_v6 = vsel %vm139_vm0, %v308_v4, %v3888_v1  ;;  %v335_v7 = vsel %vm139_vm0, %v329_v5, %v3888_v1  ;;  %v3132_v17 = vld [vmem:[#allocation19 + $0xa8] sm:$0xf]  ;;  %v3449_v18 = vld [vmem:[#allocation19 + $0xb0] sm:$0xf0]  ;;  %v3020_v24 = vld [vmem:[#allocation15 + $0x98] sm:$0xf] }
  0x27   :  { %v278_v61 = vpack.c.bf16 0.0, %v276_v58  ;;  %v300_v62 = vpack.c.bf16 0.0, %v298_v59  ;;  %193 = vst [vmem:[#allocation23 + $0x8] sm:$0xf] %v190_v56  ;;  %v2957_v10 = vor.u32 %v3403_v2, %v2954_v3  ;;  %v319_v12 = vsel %vm144_vm1, %v314_v6, %v3888_v1  ;;  %v3420_v25 = vld [vmem:[#allocation15 + $0xa0] sm:$0xf0] }
  0x28   :  { %689 = vmatpush.bf16.msra.mxu2 %v2993_v34  ;;  %3510 = vmatpush.bf16.msra.mxu3 %v2993_v34  ;;  %215 = vst [vmem:[#allocation23 + $0xc] sm:$0xf] %v212_v57  ;;  %v340_v13 = vsel %vm144_vm1, %v335_v7, %v3888_v1  ;;  %v320_v19 = vpack.c.bf16 0.0, %v319_v12  ;;  %v2945_v21 = vor.u32 %v3400_v11, %v2942_v14  ;;  %v3120_v26 = vld [vmem:[#allocation19 + $0x90] sm:$0xf] }
  0x29   :  { %281 = vst [vmem:[#allocation23 + $0x18] sm:$0xf] %v278_v61  ;;  %v342_v20 = vpack.c.bf16 0.0, %v340_v13  ;;  %v3033_v22 = vor.u32 %v3423_v16, %v3032_v15  ;;  %v3133_v23 = vor.u32 %v3449_v18, %v3132_v17  ;;  %v3446_v27 = vld [vmem:[#allocation19 + $0x98] sm:$0xf0]  ;;  %v3021_v30 = vor.u32 %v3420_v25, %v3020_v24 }
  0x2a   :  { %303 = vst [vmem:[#allocation23 + $0x1c] sm:$0xf] %v300_v62  ;;  %v4001_v28 = vld [vmem:[#allocation23] sm:$0xff]  ;;  %v3121_v31 = vor.u32 %v3446_v27, %v3120_v26  ;;  %v3417_v33 = vld [vmem:[#allocation15 + $0x88] sm:$0xf0] }
  0x2b   :  { %323 = vst [vmem:[#allocation24] sm:$0xf] %v320_v19  ;;  %v3008_v32 = vld [vmem:[#allocation15 + $0x80] sm:$0xf]  ;;  %v3108_v34 = vld [vmem:[#allocation19 + $0x78] sm:$0xf] }
  0x2c   :  { %690 = vmatpush.bf16.msra.mxu2 %v2981_v45  ;;  %3511 = vmatpush.bf16.msra.mxu3 %v2981_v45  ;;  %345 = vst [vmem:[#allocation24 + $0x4] sm:$0xf] %v342_v20  ;;  %v4003_v29 = vld [vmem:[#allocation23 + $0x10] sm:$0xff]  ;;  %v3443_v35 = vld [vmem:[#allocation19 + $0x80] sm:$0xf0]  ;;  %v3009_v37 = vor.u32 %v3417_v33, %v3008_v32 }
  0x2d   :  { %v2996_v36 = vld [vmem:[#allocation15 + $0x68] sm:$0xf]  ;;  %v3109_v38 = vor.u32 %v3443_v35, %v3108_v34  ;;  %v3414_v39 = vld [vmem:[#allocation15 + $0x70] sm:$0xf0]  ;;  %v2917_v40 = vld [vmem:[%s4896_s12 + $0x2] sm:$0x1] }
  0x2e   :  { %v2918_v41 = vld [vmem:[%s4896_s12 + $0x3] sm:$0x1]  ;;  %v3440_v43 = vld [vmem:[#allocation19 + $0x68] sm:$0xf0]  ;;  %v351_v44 = vunpack.c.l.bf16 %v2917_v40  ;;  %v2997_v46 = vor.u32 %v3414_v39, %v2996_v36  ;;  %v2984_v50 = vld [vmem:[#allocation15 + $0x50] sm:$0xf] }
  0x2f   :  { %v3096_v42 = vld [vmem:[#allocation19 + $0x60] sm:$0xf]  ;;  %v373_v45 = vunpack.c.l.bf16 %v2918_v41  ;;  %v3411_v51 = vld [vmem:[#allocation15 + $0x58] sm:$0xf0]  ;;  %v3084_v54 = vld [vmem:[#allocation19 + $0x48] sm:$0xf] }
  0x30   :  { %691 = vmatpush.bf16.msra.mxu2 %v2969_v60  ;;  %3512 = vmatpush.bf16.msra.mxu3 %v2969_v60  ;;  %v357_v47 = vsel %vm139_vm0, %v351_v44, %v3888_v1  ;;  %v3097_v49 = vor.u32 %v3440_v43, %v3096_v42  ;;  %v3437_v55 = vld [vmem:[#allocation19 + $0x50] sm:$0xf0]  ;;  %v2985_v58 = vor.u32 %v3411_v51, %v2984_v50  ;;  %v2972_v60 = vld [vmem:[#allocation15 + $0x38] sm:$0xf]  ;;  %v3408_v61 = vld [vmem:[#allocation15 + $0x40] sm:$0xf0] }
  0x31   :  { %v379_v48 = vsel %vm139_vm0, %v373_v45, %v3888_v1  ;;  %v362_v52 = vsel %vm144_vm1, %v357_v47, %v3888_v1  ;;  %v3085_v59 = vor.u32 %v3437_v55, %v3084_v54  ;;  %v3072_v62 = vld [vmem:[#allocation19 + $0x30] sm:$0xf]  ;;  %v3434_v63 = vld [vmem:[#allocation19 + $0x38] sm:$0xf0]  ;;  %v4025_v0 = vld [vmem:[#allocation23 + $0x8] sm:$0xff]  ;;  %v2973_v3 = vor.u32 %v3408_v61, %v2972_v60 }
  0x32   :  { %v384_v53 = vsel %vm144_vm1, %v379_v48, %v3888_v1  ;;  %v364_v56 = vpack.c.bf16 0.0, %v362_v52  ;;  %v4027_v2 = vld [vmem:[#allocation23 + $0x18] sm:$0xff]  ;;  %v3073_v4 = vor.u32 %v3434_v63, %v3072_v62  ;;  %v2960_v5 = vld [vmem:[#allocation15 + $0x20] sm:$0xf]  ;;  %v3405_v6 = vld [vmem:[#allocation15 + $0x28] sm:$0xf0] }
  0x33   :  { %v386_v57 = vpack.c.bf16 0.0, %v384_v53  ;;  %v3060_v7 = vld [vmem:[#allocation19 + $0x18] sm:$0xf]  ;;  %v2948_v11 = vld [vmem:[#allocation15 + $0x8] sm:$0xf]  ;;  %v2961_v14 = vor.u32 %v3405_v6, %v2960_v5  ;;  %v4053_v44 = vld [vmem:[#allocation24] sm:$0xff] }
  0x34   :  { %692 = vmatpush.bf16.msra.mxu2 %v2957_v10  ;;  %3513 = vmatpush.bf16.msra.mxu3 %v2957_v10  ;;  %367 = vst [vmem:[#allocation24 + $0x8] sm:$0xf] %v364_v56  ;;  %v3431_v10 = vld [vmem:[#allocation19 + $0x20] sm:$0xf0]  ;;  %v3402_v12 = vld [vmem:[#allocation15 + $0x10] sm:$0xf0] }
  0x35   :  { %389 = vst [vmem:[#allocation24 + $0xc] sm:$0xf] %v386_v57  ;;  %v3048_v13 = vld [vmem:[#allocation19] sm:$0xf]  ;;  %v3061_v15 = vor.u32 %v3431_v10, %v3060_v7  ;;  %v3428_v16 = vld [vmem:[#allocation19 + $0x8] sm:$0xf0] }
  0x36   :  { %v3228_v17 = vld [vmem:[#allocation17 + $0xa8] sm:$0xf]  ;;  %v3473_v18 = vld [vmem:[#allocation17 + $0xb0] sm:$0xf0]  ;;  %v2920_v26 = vld [vmem:[%s4896_s12 + $0x5] sm:$0x1] }
  0x37   :  { %v3024_v19 = vld [vmem:[#allocation15 + $0xa8] sm:$0xf]  ;;  %v3422_v20 = vld [vmem:[#allocation15 + $0xb0] sm:$0xf0]  ;;  %v417_v27 = vunpack.c.l.bf16 %v2920_v26  ;;  %v4040_v33 = vor.u32 %v3473_v18, %v3228_v17  ;;  %v3216_v34 = vld [vmem:[#allocation17 + $0x90] sm:$0xf] }
  0x38   :  { %693 = vmatpush.bf16.msra.mxu2 %v2945_v21  ;;  %3514 = vmatpush.bf16.msra.mxu3 %v2945_v21  ;;  %v2919_v21 = vld [vmem:[%s4896_s12 + $0x4] sm:$0x1]  ;;  %v3025_v24 = vor.u32 %v3422_v20, %v3024_v19  ;;  %v3470_v35 = vld [vmem:[#allocation17 + $0x98] sm:$0xf0]  ;;  %v3469_v39 = vld [vmem:[#allocation17 + $0x94] sm:$0xf] }
  0x39   :  { %v395_v25 = vunpack.c.l.bf16 %v2919_v21  ;;  %v3218_v40 = vld [vmem:[#allocation17 + $0x9c] sm:$0xf0]  ;;  %v4056_v45 = vor.u32 %v3470_v35, %v3216_v34  ;;  %v3467_v48 = vld [vmem:[#allocation17 + $0x80] sm:$0xf0]  ;;  %v3206_v50 = vld [vmem:[#allocation17 + $0x84] sm:$0xf0] }
  0x3a   :  { %657 = vmatpush.bf16.msra.mxu0 %v3025_v24  ;;  %v4059_v47 = vor.u32 %v3469_v39, %v3218_v40  ;;  %v2921_v51 = vld [vmem:[%s4896_s12 + $0x6] sm:$0x1]  ;;  %v3012_v52 = vld [vmem:[#allocation15 + $0x90] sm:$0xf]  ;;  %v3419_v53 = vld [vmem:[#allocation15 + $0x98] sm:$0xf0] }
  0x3b   :  { %694 = vmatmul.bf16.vlgmr.msra.gmra.mxu2 %v4001_v28  ;;  %704 = vmatmul.bf16.vlgmr.msra.gmra.mxu3 %v4003_v29  ;;  %v401_v32 = vsel %vm139_vm0, %v395_v25, %v3888_v1  ;;  %v439_v54 = vunpack.c.l.bf16 %v2921_v51  ;;  %v3013_v57 = vor.u32 %v3419_v53, %v3012_v52  ;;  %v3463_v60 = vld [vmem:[#allocation17 + $0x64] sm:$0xf]  ;;  %v3194_v62 = vld [vmem:[#allocation17 + $0x6c] sm:$0xf0]  ;;  %v3000_v63 = vld [vmem:[#allocation15 + $0x78] sm:$0xf] }
  0x3c   :  { %715 = vmatpush.bf16.msrb.mxu2 %v3033_v22  ;;  %965 = vmatpush.bf16.msrb.mxu3 %v3133_v23  ;;  %v3472_v22 = vld [vmem:[#allocation17 + $0xac] sm:$0xf]  ;;  %v3230_v23 = vld [vmem:[#allocation17 + $0xb4] sm:$0xf0]  ;;  %v3180_v10 = vld [vmem:[#allocation17 + $0x48] sm:$0xf] }
  0x3d   :  { %v4042_v36 = vor.u32 %v3472_v22, %v3230_v23  ;;  %v445_v61 = vsel %vm139_vm0, %v439_v54, %v3888_v1  ;;  %v2988_v8 = vld [vmem:[#allocation15 + $0x60] sm:$0xf]  ;;  %v3410_v9 = vld [vmem:[#allocation15 + $0x50] sm:$0xf0]  ;;  %v3168_v19 = vld [vmem:[#allocation17 + $0x30] sm:$0xf] }
  0x3e   :  { %658 = vmatpush.bf16.msra.mxu0 %v3013_v57  ;;  %v3458_v20 = vld [vmem:[#allocation17 + $0x38] sm:$0xf0]  ;;  %v4094_v23 = vld [vmem:[#allocation24 + $0x8] sm:$0xff]  ;;  %v3156_v24 = vld [vmem:[#allocation17 + $0x18] sm:$0xf] }
  0x3f   :  { %v4091_v22 = vor.u32 %v3458_v20, %v3168_v19  ;;  %v3455_v25 = vld [vmem:[#allocation17 + $0x20] sm:$0xf0]  ;;  %v2964_v26 = vld [vmem:[#allocation15 + $0x30] sm:$0xf]  ;;  %v3170_v34 = vld [vmem:[#allocation17 + $0x3c] sm:$0xf0] }
  0x40   :  { %716 = vmatpush.bf16.msrb.mxu2 %v3021_v30  ;;  %966 = vmatpush.bf16.msrb.mxu3 %v3121_v31  ;;  %v2949_v30 = vor.u32 %v3402_v12, %v2948_v11  ;;  %v3049_v31 = vor.u32 %v3428_v16, %v3048_v13  ;;  %v4082_v11 = vor.u32 %v3463_v60, %v3194_v62  ;;  %v3413_v12 = vld [vmem:[#allocation15 + $0x68] sm:$0xf0]  ;;  %v3461_v13 = vld [vmem:[#allocation17 + $0x50] sm:$0xf0]  ;;  %v3144_v35 = vld [vmem:[#allocation17] sm:$0xf] }
  0x41   :  { %v2989_v16 = vor.u32 %v3413_v12, %v2988_v8  ;;  %v4085_v17 = vor.u32 %v3461_v13, %v3180_v10  ;;  %v2952_v39 = vld [vmem:[#allocation15 + $0x18] sm:$0xf]  ;;  %v3404_v40 = vld [vmem:[#allocation15 + $0x20] sm:$0xf0]  ;;  %v3158_v51 = vld [vmem:[#allocation17 + $0x24] sm:$0xf0] }
  0x42   :  { %v3451_v54 = vld [vmem:[#allocation17 + $0x4] sm:$0xf]  ;;  %v3146_v60 = vld [vmem:[#allocation17 + $0xc] sm:$0xf0]  ;;  %v3465_v10 = vld [vmem:[#allocation17 + $0x70] sm:$0xf0] }
  0x43   :  { %v3188_v12 = vld [vmem:[#allocation17 + $0x50] sm:$0xf]  ;;  %v3462_v13 = vld [vmem:[#allocation17 + $0x58] sm:$0xf0]  ;;  %v3164_v19 = vld [vmem:[#allocation17 + $0x20] sm:$0xf] }
  0x44   :  { %717 = vmatpush.bf16.msrb.mxu2 %v3009_v37  ;;  %967 = vmatpush.bf16.msrb.mxu3 %v3109_v38  ;;  %v406_v37 = vsel %vm144_vm1, %v401_v32, %v3888_v1  ;;  %v423_v38 = vsel %vm139_vm0, %v417_v27, %v3888_v1  ;;  %v3407_v27 = vld [vmem:[#allocation15 + $0x38] sm:$0xf0]  ;;  %v3457_v32 = vld [vmem:[#allocation17 + $0x34] sm:$0xf]  ;;  %v3456_v20 = vld [vmem:[#allocation17 + $0x28] sm:$0xf0] }
  0x45   :  { %v408_v41 = vpack.c.bf16 0.0, %v406_v37  ;;  %v428_v42 = vsel %vm144_vm1, %v423_v38, %v3888_v1  ;;  %v4101_v37 = vor.u32 %v3457_v32, %v3170_v34  ;;  %v3452_v38 = vld [vmem:[#allocation17 + $0x8] sm:$0xf0]  ;;  %v4178_v32 = vld [vmem:[%s4886_s2] sm:$0x7] }
  0x46   :  { %v430_v43 = vpack.c.bf16 0.0, %v428_v42  ;;  %v3236_v42 = vld [vmem:[#allocation17 + $0xb0] sm:$0xf]  ;;  %v4181_v34 = vperm.slane %v4178_v32, 1 }
  0x47   :  { %411 = vst [vmem:[#allocation24 + $0x10] sm:$0xf] %v408_v41  ;;  %v2953_v41 = vor.u32 %v3404_v40, %v2952_v39  ;;  %v3445_v40 = vld [vmem:[#allocation19 + $0x94] sm:$0xf] }
  0x48   :  { %718 = vmatpush.bf16.msrb.mxu2 %v2997_v46  ;;  %968 = vmatpush.bf16.msrb.mxu3 %v3097_v49  ;;  %v3204_v46 = vld [vmem:[#allocation17 + $0x78] sm:$0xf]  ;;  %433 = vst [vmem:[#allocation24 + $0x14] sm:$0xf] %v430_v43  ;;  %v3466_v49 = vld [vmem:[#allocation17 + $0x7c] sm:$0xf] }
  0x49   :  { %v4065_v55 = vor.u32 %v3467_v48, %v3204_v46  ;;  %v4068_v56 = vor.u32 %v3466_v49, %v3206_v50  ;;  %v3474_v43 = vld [vmem:[#allocation17 + $0xb8] sm:$0xf0]  ;;  %v2940_v46 = vld [vmem:[#allocation15] sm:$0xf]  ;;  %v4105_v48 = vor.u32 %v3452_v38, %v3144_v35  ;;  %v3401_v49 = vld [vmem:[#allocation15 + $0x8] sm:$0xf0] }
  0x4a   :  { %v3454_v50 = vld [vmem:[#allocation17 + $0x1c] sm:$0xf]  ;;  %v4107_v52 = vor.u32 %v3474_v43, %v3236_v42  ;;  %v2941_v57 = vor.u32 %v3401_v49, %v2940_v46 }
  0x4b   :  { %699 = vmatmul.bf16.gmra.mxu2 %v4025_v0  ;;  %709 = vmatmul.bf16.gmra.mxu3 %v4027_v2  ;;  %v4109_v53 = vor.u32 %v3454_v50, %v3158_v51  ;;  %v3442_v49 = vld [vmem:[#allocation19 + $0x7c] sm:$0xf]  ;;  %v3110_v50 = vld [vmem:[#allocation19 + $0x84] sm:$0xf0] }
  0x4c   :  { %719 = vmatpush.bf16.msrb.mxu2 %v2985_v58  ;;  %969 = vmatpush.bf16.msrb.mxu3 %v3085_v59  ;;  %v3192_v58 = vld [vmem:[#allocation17 + $0x60] sm:$0xf]  ;;  %v3464_v59 = vld [vmem:[#allocation17 + $0x68] sm:$0xf0]  ;;  %v3113_v51 = vor.u32 %v3442_v49, %v3110_v50 }
  0x4d   :  { %v4079_v7 = vor.u32 %v3464_v59, %v3192_v58  ;;  %v3224_v58 = vld [vmem:[#allocation17 + $0x98] sm:$0xf]  ;;  %v3471_v59 = vld [vmem:[#allocation17 + $0xa0] sm:$0xf0] }
  0x4e   :  { %v4116_v62 = vor.u32 %v3471_v59, %v3224_v58 }
  0x50   :  { %720 = vmatpush.bf16.msrb.mxu2 %v2973_v3  ;;  %970 = vmatpush.bf16.msrb.mxu3 %v3073_v4  ;;  %v3416_v3 = vld [vmem:[#allocation15 + $0x80] sm:$0xf0]  ;;  %v450_v4 = vsel %vm144_vm1, %v445_v61, %v3888_v1  ;;  %v2976_v1 = vld [vmem:[#allocation15 + $0x48] sm:$0xf]  ;;  %v4113_v61 = vor.u32 %v3451_v54, %v3146_v60  ;;  %v3140_v54 = vld [vmem:[#allocation19 + $0xb0] sm:$0xf] }
  0x51   :  { %v3001_v5 = vor.u32 %v3416_v3, %v3000_v63  ;;  %v452_v6 = vpack.c.bf16 0.0, %v450_v4  ;;  %v2977_v21 = vor.u32 %v3410_v9, %v2976_v1  ;;  %v3212_v63 = vld [vmem:[#allocation17 + $0x80] sm:$0xf]  ;;  %v3468_v3 = vld [vmem:[#allocation17 + $0x88] sm:$0xf0]  ;;  %v4119_v4 = vld [vmem:[#allocation24 + $0x10] sm:$0xff] }
  0x53   :  { %659 = vmatpush.bf16.msra.mxu0 %v3001_v5  ;;  %455 = vst [vmem:[#allocation24 + $0x18] sm:$0xf] %v452_v6  ;;  %v4123_v5 = vor.u32 %v3468_v3, %v3212_v63  ;;  %v3200_v6 = vld [vmem:[#allocation17 + $0x68] sm:$0xf] }
  0x54   :  { %721 = vmatpush.bf16.msrb.mxu2 %v2961_v14  ;;  %971 = vmatpush.bf16.msrb.mxu3 %v3061_v15  ;;  %v3460_v14 = vld [vmem:[#allocation17 + $0x4c] sm:$0xf]  ;;  %v3182_v15 = vld [vmem:[#allocation17 + $0x54] sm:$0xf0]  ;;  %v4129_v8 = vor.u32 %v3465_v10, %v3200_v6  ;;  %v3447_v10 = vld [vmem:[#allocation19 + $0xa0] sm:$0xf0] }
  0x55   :  { %v4088_v18 = vor.u32 %v3460_v14, %v3182_v15  ;;  %v3176_v15 = vld [vmem:[#allocation17 + $0x38] sm:$0xf] }
  0x56   :  { %v3128_v6 = vld [vmem:[#allocation19 + $0x98] sm:$0xf] }
  0x57   :  { %660 = vmatpush.bf16.msra.mxu0 %v2989_v16  ;;  %v3459_v16 = vld [vmem:[#allocation17 + $0x40] sm:$0xf0] }
  0x58   :  { %722 = vmatpush.bf16.msrb.mxu2 %v2949_v30  ;;  %972 = vmatpush.bf16.msrb.mxu3 %v3049_v31  ;;  %v4097_v30 = vor.u32 %v3455_v25, %v3156_v24  ;;  %v2965_v31 = vor.u32 %v3407_v27, %v2964_v26  ;;  %v4137_v9 = vor.u32 %v3459_v16, %v3176_v15  ;;  %v3152_v25 = vld [vmem:[#allocation17 + $0x8] sm:$0xf]  ;;  %v3453_v26 = vld [vmem:[#allocation17 + $0x10] sm:$0xf0]  ;;  %v3116_v16 = vld [vmem:[#allocation19 + $0x80] sm:$0xf] }
  0x59   :  { %v4144_v24 = vor.u32 %v3456_v20, %v3164_v19  ;;  %v4150_v27 = vor.u32 %v3453_v26, %v3152_v25  ;;  %v3104_v26 = vld [vmem:[#allocation19 + $0x68] sm:$0xf] }
  0x5a   :  { %v774_v14 = vld [vmem:[#allocation24 + $0x18] sm:$0xf] }
  0x5b   :  { %723 = vmatmul.bf16.vlgmr.msrb.gmra.mxu2 %v4001_v28  ;;  %973 = vmatmul.bf16.vlgmr.msrb.gmra.mxu3 %v4053_v44  ;;  %v828_v1 = vunpack.c.l.b16 %v774_v14  ;;  %v3098_v14 = vld [vmem:[#allocation19 + $0x6c] sm:$0xf0] }
  0x5c   :  { %1273 = vmatpush.bf16.msra.mxu2 %v4040_v33  ;;  %1286 = vmatpush.bf16.msra.mxu3 %v4042_v36 }
  0x5d   :  { %661 = vmatpush.bf16.msra.mxu0 %v2977_v21  ;;  %v4140_v21 = vpack.c.b16 %v828_v1, %v828_v1  ;;  %v3444_v1 = vld [vmem:[#allocation19 + $0x88] sm:$0xf0] }
  0x5e   :  { %v3117_v19 = vor.u32 %v3444_v1, %v3116_v16 }
  0x60   :  { %1274 = vmatpush.bf16.msra.mxu2 %v4056_v45  ;;  %1287 = vmatpush.bf16.msra.mxu3 %v4059_v47 }
  0x61   :  { %662 = vmatpush.bf16.msra.mxu0 %v2965_v31  ;;  %v3134_v31 = vld [vmem:[#allocation19 + $0xb4] sm:$0xf0] }
  0x64   :  { %1275 = vmatpush.bf16.msra.mxu2 %v4065_v55  ;;  %1288 = vmatpush.bf16.msra.mxu3 %v4068_v56 }
  0x65   :  { %663 = vmatpush.bf16.msra.mxu0 %v2953_v41  ;;  %v3122_v41 = vld [vmem:[#allocation19 + $0x9c] sm:$0xf0] }
  0x66   :  { %v3125_v42 = vor.u32 %v3445_v40, %v3122_v41  ;;  %v3092_v40 = vld [vmem:[#allocation19 + $0x50] sm:$0xf]  ;;  %v3438_v41 = vld [vmem:[#allocation19 + $0x58] sm:$0xf0] }
  0x68   :  { %1276 = vmatpush.bf16.msra.mxu2 %v4079_v7  ;;  %1289 = vmatpush.bf16.msra.mxu3 %v4082_v11 }
  0x69   :  { %664 = vmatpush.bf16.msra.mxu0 %v2941_v57  ;;  %v3450_v57 = vld [vmem:[#allocation19 + $0xb8] sm:$0xf0] }
  0x6a   :  { %v3141_v58 = vor.u32 %v3450_v57, %v3140_v54  ;;  %v3074_v54 = vld [vmem:[#allocation19 + $0x3c] sm:$0xf0]  ;;  %v3080_v57 = vld [vmem:[#allocation19 + $0x38] sm:$0xf] }
  0x6b   :  { %728 = vmatmul.bf16.gmra.mxu2 %v4025_v0  ;;  %978 = vmatmul.bf16.gmra.mxu3 %v4094_v23 }
  0x6c   :  { %1277 = vmatpush.bf16.msra.mxu2 %v4085_v17  ;;  %1290 = vmatpush.bf16.msra.mxu3 %v4088_v18 }
  0x6d   :  { %665 = vmatmul.bf16.vlgmr.msra.gmra.mxu0 %v4001_v28  ;;  %v4133_v28 = vor.u32 %v3462_v13, %v3188_v12  ;;  %1021 = vmatpush.bf16.msra.mxu1 %v3141_v58  ;;  %v3439_v12 = vld [vmem:[#allocation19 + $0x64] sm:$0xf]  ;;  %v3129_v13 = vor.u32 %v3447_v10, %v3128_v6  ;;  %v3430_v6 = vld [vmem:[#allocation19 + $0x1c] sm:$0xf]  ;;  %v3062_v10 = vld [vmem:[#allocation19 + $0x24] sm:$0xf0] }
  0x6e   :  { %v3101_v15 = vor.u32 %v3439_v12, %v3098_v14  ;;  %v3068_v12 = vld [vmem:[#allocation19 + $0x20] sm:$0xf]  ;;  %v3432_v14 = vld [vmem:[#allocation19 + $0x28] sm:$0xf0] }
  0x6f   :  { %v3069_v1 = vor.u32 %v3432_v14, %v3068_v12 }
  0x70   :  { %1278 = vmatpush.bf16.msra.mxu2 %v4091_v22  ;;  %1291 = vmatpush.bf16.msra.mxu3 %v4101_v37 }
  0x71   :  { %1022 = vmatpush.bf16.msra.mxu1 %v3129_v13  ;;  %v3065_v13 = vor.u32 %v3430_v6, %v3062_v10 }
  0x74   :  { %1279 = vmatpush.bf16.msra.mxu2 %v4097_v30  ;;  %1292 = vmatpush.bf16.msra.mxu3 %v4109_v53 }
  0x75   :  { %1023 = vmatpush.bf16.msra.mxu1 %v3117_v19  ;;  %v3427_v19 = vld [vmem:[#allocation19 + $0x4] sm:$0xf] }
  0x78   :  { %1280 = vmatpush.bf16.msra.mxu2 %v4105_v48  ;;  %1293 = vmatpush.bf16.msra.mxu3 %v4113_v61 }
  0x7b   :  { %733 = vmatmul.bf16.gmra.mxu2 %v4003_v29  ;;  %983 = vmatmul.bf16.gmra.mxu3 %v4119_v4 }
  0x7c   :  { %1299 = vmatpush.bf16.msrb.mxu2 %v4107_v52  ;;  %1365 = vmatpush.bf16.msrb.mxu3 %v4040_v33 }
  0x7d   :  { %670 = vmatmul.bf16.gmra.mxu0 %v4025_v0  ;;  %v3814_v0 = vmov 0  }
  0x80   :  { %1300 = vmatpush.bf16.msrb.mxu2 %v4116_v62  ;;  %1366 = vmatpush.bf16.msrb.mxu3 %v4056_v45 }
  0x84   :  { %1301 = vmatpush.bf16.msrb.mxu2 %v4123_v5  ;;  %1367 = vmatpush.bf16.msrb.mxu3 %v4065_v55 }
  0x88   :  { %1302 = vmatpush.bf16.msrb.mxu2 %v4129_v8  ;;  %1368 = vmatpush.bf16.msrb.mxu3 %v4079_v7 }
  0x8b   :  { %738 = vmatmul.bf16.gmra.mxu2 %v4027_v2  ;;  %988 = vmatmul.bf16.gmra.mxu3 %v4140_v21 }
  0x8c   :  { %1303 = vmatpush.bf16.msrb.mxu2 %v4133_v28  ;;  %1369 = vmatpush.bf16.msrb.mxu3 %v4085_v17 }
  0x8d   :  { %675 = vmatmul.bf16.gmra.mxu0 %v4003_v29  ;;  %v3448_v29 = vld [vmem:[#allocation19 + $0xac] sm:$0xf] }
  0x90   :  { %1304 = vmatpush.bf16.msrb.mxu2 %v4137_v9  ;;  %1370 = vmatpush.bf16.msrb.mxu3 %v4091_v22 }
  0x94   :  { %1305 = vmatpush.bf16.msrb.mxu2 %v4144_v24  ;;  %1371 = vmatpush.bf16.msrb.mxu3 %v4097_v30 }
  0x98   :  { %1306 = vmatpush.bf16.msrb.mxu2 %v4150_v27  ;;  %1372 = vmatpush.bf16.msrb.mxu3 %v4105_v48 }
  0x9b   :  { %1281 = vmatmul.bf16.vlgmr.msra.gmra.mxu2 %v3814_v0  ;;  %1294 = vmatmul.bf16.vlgmr.msra.gmra.mxu3 %v3814_v0 }
  0x9c   :  { %1457 = vmatpush.bf16.msra.mxu2 %v4040_v33  ;;  %1470 = vmatpush.bf16.msra.mxu3 %v4042_v36 }
  0x9d   :  { %680 = vmatmul.bf16.gmra.mxu0 %v4027_v2  ;;  %v3137_v2 = vor.u32 %v3448_v29, %v3134_v31  ;;  %v3436_v29 = vld [vmem:[#allocation19 + $0x4c] sm:$0xf] }
  0x9f   :  { %993 = vmatpush.bf16.msrb.mxu0 %v3137_v2  ;;  %v3086_v2 = vld [vmem:[#allocation19 + $0x54] sm:$0xf0] }
  0xa0   :  { %1458 = vmatpush.bf16.msra.mxu2 %v4056_v45  ;;  %1471 = vmatpush.bf16.msra.mxu3 %v4059_v47 }
  0xa3   :  { %994 = vmatpush.bf16.msrb.mxu0 %v3125_v42  ;;  %v3093_v42 = vor.u32 %v3438_v41, %v3092_v40  ;;  %v4224_v40 = vperm.slane %v4178_v32, 2 }
  0xa4   :  { %1459 = vmatpush.bf16.msra.mxu2 %v4065_v55  ;;  %1472 = vmatpush.bf16.msra.mxu3 %v4068_v56 }
  0xa7   :  { %995 = vmatpush.bf16.msrb.mxu0 %v3113_v51  ;;  %v3433_v51 = vld [vmem:[#allocation19 + $0x34] sm:$0xf] }
  0xa8   :  { %1460 = vmatpush.bf16.msra.mxu2 %v4079_v7  ;;  %1473 = vmatpush.bf16.msra.mxu3 %v4082_v11  ;;  %v3077_v58 = vor.u32 %v3433_v51, %v3074_v54 }
  0xab   :  { %1307 = vmatmul.bf16.vlgmr.msrb.gmra.mxu2 %v3814_v0  ;;  %996 = vmatpush.bf16.msrb.mxu0 %v3101_v15  ;;  %v3441_v0 = vld [vmem:[#allocation19 + $0x70] sm:$0xf0] }
  0xac   :  { %1461 = vmatpush.bf16.msra.mxu2 %v4085_v17  ;;  %1474 = vmatpush.bf16.msra.mxu3 %v4088_v18  ;;  %v3105_v31 = vor.u32 %v3441_v0, %v3104_v26  ;;  %v3050_v26 = vld [vmem:[#allocation19 + $0xc] sm:$0xf0]  ;;  %v3056_v0 = vld [vmem:[#allocation19 + $0x8] sm:$0xf] }
  0xae   :  { %1024 = vmatpush.bf16.msra.mxu1 %v3105_v31  ;;  %v3429_v31 = vld [vmem:[#allocation19 + $0x10] sm:$0xf0] }
  0xb0   :  { %1462 = vmatpush.bf16.msra.mxu2 %v4091_v22  ;;  %1475 = vmatpush.bf16.msra.mxu3 %v4101_v37 }
  0xb2   :  { %1025 = vmatpush.bf16.msra.mxu1 %v3093_v42 }
  0xb4   :  { %1463 = vmatpush.bf16.msra.mxu2 %v4097_v30  ;;  %1476 = vmatpush.bf16.msra.mxu3 %v4109_v53 }
  0xb8   :  { %1464 = vmatpush.bf16.msra.mxu2 %v4105_v48  ;;  %1477 = vmatpush.bf16.msra.mxu3 %v4113_v61 }
  0xbc   :  { %1562 = vmatpush.bf16.msrb.mxu2 %v4042_v36 }
  0xbe   :  { %v4184_v35 = vpop.f32.mrf.mxu2  ;;  %v705_v38 = vpop.f32.mrf.mxu3 }
  0xbf   :  { %v4187_v39 = vadd.f32 %v705_v38, %v4181_v34  ;;  %v3089_v38 = vor.u32 %v3436_v29, %v3086_v2  ;;  %v3053_v29 = vor.u32 %v3427_v19, %v3050_v26  ;;  %v3057_v2 = vor.u32 %v3429_v31, %v3056_v0 }
  0xc0   :  { %1563 = vmatpush.bf16.msrb.mxu2 %v4059_v47 }
  0xc1   :  { %997 = vmatpush.bf16.msrb.mxu0 %v3089_v38  ;;  %v4220_v38 = vld [vmem:[%s4890_s6] sm:$0x7] }
  0xc2   :  { %v4227_v41 = vperm.slane %v4220_v38, 0 }
  0xc4   :  { %1564 = vmatpush.bf16.msrb.mxu2 %v4068_v56  ;;  %4907 = vst [vmem:[#allocation31_spill] sm:$0xff] %v4227_v41 }
  0xc5   :  { %998 = vmatpush.bf16.msrb.mxu0 %v3077_v58 }
  0xc6   :  { %v4191_v43 = vpop.f32.mrf.mxu2  ;;  %v4193_v46 = vpop.f32.mrf.mxu3 }
  0xc8   :  { %1565 = vmatpush.bf16.msrb.mxu2 %v4082_v11 }
  0xc9   :  { %999 = vmatpush.bf16.msrb.mxu0 %v3065_v13 }
  0xcc   :  { %1566 = vmatpush.bf16.msrb.mxu2 %v4088_v18 }
  0xcd   :  { %1000 = vmatpush.bf16.msrb.mxu0 %v3053_v29  ;;  %v4287_v29 = vperm.slane %v4178_v32, 0 }
  0xce   :  { %v700_v59 = vpop.f32.mrf.mxu2  ;;  %v710_v60 = vpop.f32.mrf.mxu3 }
  0xcf   :  { %v4198_v63 = vadd.f32 %v700_v59, %v4181_v34  ;;  %v4201_v3 = vadd.f32 %v710_v60, %v4181_v34  ;;  %v3435_v59 = vld [vmem:[#allocation19 + $0x40] sm:$0xf0] }
  0xd0   :  { %1567 = vmatpush.bf16.msrb.mxu2 %v4101_v37  ;;  %v3081_v60 = vor.u32 %v3435_v59, %v3080_v57  ;;  %1001 = vmatmul.bf16.vlgmr.msrb.gmra.mxu0 %v4053_v44 }
  0xd1   :  { %1378 = vmatpush.bf16.msra.mxu0 %v4042_v36 }
  0xd2   :  { %1026 = vmatpush.bf16.msra.mxu1 %v3081_v60 }
  0xd4   :  { %1568 = vmatpush.bf16.msrb.mxu2 %v4109_v53 }
  0xd5   :  { %1379 = vmatpush.bf16.msra.mxu0 %v4059_v47 }
  0xd6   :  { %v4205_v20 = vpop.f32.mrf.mxu2  ;;  %v4207_v25 = vpop.f32.mrf.mxu3  ;;  %1027 = vmatpush.bf16.msra.mxu1 %v3069_v1 }
  0xd7   :  { %4904 = vst [vmem:[#allocation28_spill] sm:$0xff] %v4207_v25 }
  0xd8   :  { %1569 = vmatpush.bf16.msrb.mxu2 %v4113_v61 }
  0xd9   :  { %1380 = vmatpush.bf16.msra.mxu0 %v4068_v56 }
  0xda   :  { %1028 = vmatpush.bf16.msra.mxu1 %v3057_v2  ;;  %v696_v2 = vadd.f32 %v4184_v35, %v4181_v34 }
  0xdd   :  { %1029 = vmatmul.bf16.vlgmr.msra.gmra.mxu1 %v4053_v44  ;;  %1381 = vmatpush.bf16.msra.mxu0 %v4082_v11 }
  0xde   :  { %v4209_v49 = vpop.f32.mrf.mxu2  ;;  %v4211_v50 = vpop.f32.mrf.mxu3  ;;  %1391 = vmatpush.bf16.msrb.mxu1 %v4107_v52 }
  0xdf   :  { %4905 = vst [vmem:[#allocation29_spill] sm:$0xff] %v4211_v50 }
  0xe0   :  { %1006 = vmatmul.bf16.gmra.mxu0 %v4094_v23 }
  0xe1   :  { %1382 = vmatpush.bf16.msra.mxu0 %v4088_v18 }
  0xe2   :  { %1392 = vmatpush.bf16.msrb.mxu1 %v4116_v62 }
  0xe5   :  { %1383 = vmatpush.bf16.msra.mxu0 %v4101_v37 }
  0xe6   :  { %v4213_v15 = vpop.f32.mrf.mxu2  ;;  %v4215_v16 = vpop.f32.mrf.mxu3  ;;  %1393 = vmatpush.bf16.msrb.mxu1 %v4123_v5 }
  0xe7   :  { %4906 = vst [vmem:[#allocation30_spill] sm:$0xff] %v4215_v16 }
  0xe9   :  { %1384 = vmatpush.bf16.msra.mxu0 %v4109_v53 }
  0xea   :  { %1394 = vmatpush.bf16.msrb.mxu1 %v4129_v8  ;;  %v666_v31 = vpop.f32.mrf.mxu0 }
  0xed   :  { %1034 = vmatmul.bf16.gmra.mxu1 %v4094_v23  ;;  %1385 = vmatpush.bf16.msra.mxu0 %v4113_v61 }
  0xee   :  { %v729_v42 = vpop.f32.mrf.mxu2  ;;  %v979_v51 = vpop.f32.mrf.mxu3  ;;  %1395 = vmatpush.bf16.msrb.mxu1 %v4133_v28 }
  0xef   :  { %v4232_v54 = vadd.f32 %v729_v42, %v4224_v40  ;;  %v4235_v57 = vadd.f32 %v979_v51, %v4227_v41 }
  0xf0   :  { %1011 = vmatmul.bf16.gmra.mxu0 %v4119_v4 }
  0xf1   :  { %4908 = vst [vmem:[#allocation32_spill] sm:$0xff] %v4235_v57  ;;  %1483 = vmatpush.bf16.msrb.mxu0 %v4107_v52 }
  0xf2   :  { %1396 = vmatpush.bf16.msrb.mxu1 %v4137_v9 }
  0xf5   :  { %1484 = vmatpush.bf16.msrb.mxu0 %v4116_v62 }
  0xf6   :  { %v4242_v58 = vpop.f32.mrf.mxu2  ;;  %v4244_v59 = vpop.f32.mrf.mxu3  ;;  %1397 = vmatpush.bf16.msrb.mxu1 %v4144_v24 }
  0xf7   :  { %4909 = vst [vmem:[#allocation33_spill] sm:$0xff] %v4244_v59 }
  0xf9   :  { %1485 = vmatpush.bf16.msrb.mxu0 %v4123_v5 }
  0xfa   :  { %1398 = vmatpush.bf16.msrb.mxu1 %v4150_v27 }
  0xfd   :  { %1039 = vmatmul.bf16.gmra.mxu1 %v4119_v4  ;;  %1486 = vmatpush.bf16.msrb.mxu0 %v4129_v8  ;;  %v667_v4 = vadd.f32 %v666_v31, %v4287_v29 }
  0xfe   :  { %v734_v44 = vpop.f32.mrf.mxu2  ;;  %v984_v60 = vpop.f32.mrf.mxu3  ;;  %1549 = vmatpush.bf16.msra.mxu1 %v4040_v33 }
  0xff   :  { %v4252_v6 = vadd.f32 %v734_v44, %v4224_v40  ;;  %v4255_v10 = vadd.f32 %v984_v60, %v4227_v41 }
 0x100   :  { %1016 = vmatmul.bf16.gmra.mxu0 %v4140_v21 }
 0x101   :  { %4910 = vst [vmem:[#allocation34_spill] sm:$0xff] %v4255_v10  ;;  %1487 = vmatpush.bf16.msrb.mxu0 %v4133_v28 }
 0x102   :  { %1550 = vmatpush.bf16.msra.mxu1 %v4056_v45 }
 0x105   :  { %1488 = vmatpush.bf16.msrb.mxu0 %v4137_v9 }
 0x106   :  { %v4262_v12 = vpop.f32.mrf.mxu2  ;;  %v4264_v13 = vpop.f32.mrf.mxu3  ;;  %1551 = vmatpush.bf16.msra.mxu1 %v4065_v55 }
 0x107   :  { %4911 = vst [vmem:[#allocation35_spill] sm:$0xff] %v4264_v13 }
 0x109   :  { %1489 = vmatpush.bf16.msrb.mxu0 %v4144_v24 }
 0x10a   :  { %1552 = vmatpush.bf16.msra.mxu1 %v4079_v7 }
 0x10d   :  { %1044 = vmatmul.bf16.gmra.mxu1 %v4140_v21  ;;  %1490 = vmatpush.bf16.msrb.mxu0 %v4150_v27 }
 0x10e   :  { %v739_v23 = vpop.f32.mrf.mxu2  ;;  %v989_v14 = vpop.f32.mrf.mxu3  ;;  %1553 = vmatpush.bf16.msra.mxu1 %v4085_v17 }
 0x10f   :  { %v4274_v1 = vadd.f32 %v739_v23, %v4224_v40  ;;  %v4277_v19 = vadd.f32 %v989_v14, %v4227_v41 }
 0x111   :  { %4912 = vst [vmem:[#allocation36_spill] sm:$0xff] %v4274_v1 }
 0x112   :  { %4913 = vst [vmem:[#allocation37_spill] sm:$0xff] %v4277_v19  ;;  %1554 = vmatpush.bf16.msra.mxu1 %v4091_v22 }
 0x116   :  { %v4283_v26 = vpop.f32.mrf.mxu2  ;;  %v991_v0 = vpop.f32.mrf.mxu3  ;;  %1555 = vmatpush.bf16.msra.mxu1 %v4097_v30 }
 0x117   :  { %4914 = vst [vmem:[#allocation38_spill] sm:$0xff] %v4283_v26  ;;  %v4302_v0 = vpop.f32.mrf.mxu0 }
 0x11a   :  { %1556 = vmatpush.bf16.msra.mxu1 %v4105_v48 }
 0x11e   :  { %v1282_v42 = vpop.f32.mrf.mxu2  ;;  %v1295_v51 = vpop.f32.mrf.mxu3 }
 0x11f   :  { %v1312_v32 = vadd.f32 %v1282_v42, %v667_v4  ;;  %v1313_v44 = vadd.f32 %v1295_v51, %v696_v2  ;;  %v4304_v51 = vpop.f32.mrf.mxu0 }
 0x121   :  { %v3238_v60 = vmul.f32 -1.442695, %v1312_v32  ;;  %v3239_v23 = vmul.f32 -1.442695, %v1313_v44 }
 0x123   :  { %3528 = vpow2.f32 %v3238_v60 }
 0x124   :  { %3530 = vpow2.f32 %v3239_v23 }
 0x126   :  { %v1284_v35 = vpop.f32.mrf.mxu2  ;;  %v1297_v14 = vpop.f32.mrf.mxu3 }
 0x127   :  { %v4309_v35 = vld [vmem:[%s4887_s3] ss:$0 sm:$0xff]  ;;  %v4312_v50 = vpop.f32.mrf.mxu0 }
 0x129   :  { %v3529_v31 = vpop.eup %3528 }
 0x12a   :  { %v3531_v4 = vpop.eup %3530  ;;  %v1320_v2 = vadd.f32 1.0, %v3529_v31 }
 0x12b   :  { %v1321_v21 = vadd.f32 1.0, %v3531_v4 }
 0x12c   :  { %3532 = vrcp.f32 %v1320_v2  ;;  %v1333_v13 = vand.u32 2147483648, %v1320_v2  ;;  %v1331_v4 = vand.u32 2147483647, %v1320_v2  ;;  %vm1327_vm3 = vweird.f32 %v1320_v2 }
 0x12d   :  { %3534 = vrcp.f32 %v1321_v21  ;;  %vm1342_vm7 = vweird.f32 %v1321_v21 }
 0x12e   :  { %v1308_v42 = vpop.f32.mrf.mxu2  ;;  %v1334_v41 = vor.u32 1.1754944e-38, %v1333_v13  ;;  %vm1332_vm5 = vcmp.eq.f32.partialorder %v1331_v4, 8.507059e+37 }
 0x12f   :  { %v1352_v16 = vadd.f32 %v4309_v35, %v1308_v42  ;;  %v4316_v13 = vpop.f32.mrf.mxu0 }
 0x132   :  { %v3533_v32 = vpop.eup %3532 }
 0x133   :  { %v3535_v44 = vpop.eup %3534  ;;  %v1323_v60 = vmul.f32 %v3533_v32, %v1320_v2  ;;  %vm1328_vm2 = vweird.f32 %v3533_v32 }
 0x134   :  { %v1338_v23 = vmul.f32 %v3535_v44, %v1321_v21  ;;  %vm1329_vm4 = vmor %vm1327_vm3, %vm1328_vm2  ;;  %vm1343_vm6 = vweird.f32 %v3535_v44 }
 0x135   :  { %v1324_v14 = vsub.f32 1.0, %v1323_v60  ;;  %vm1344_vm8 = vmor %vm1342_vm7, %vm1343_vm6 }
 0x136   :  { %v1339_v19 = vsub.f32 1.0, %v1338_v23  ;;  %v1310_v10 = vpop.f32.mrf.mxu2  ;;  %v1348_v23 = vand.u32 2147483648, %v1321_v21 }
 0x137   :  { %v1325_v31 = vmul.f32 %v3533_v32, %v1324_v14  ;;  %v725_v10 = vadd.f32 %v4209_v49, %v4224_v40  ;;  %v4322_v49 = vpop.f32.mrf.mxu0 }
 0x138   :  { %v1340_v59 = vmul.f32 %v3535_v44, %v1339_v19  ;;  %v1346_v19 = vand.u32 2147483647, %v1321_v21  ;;  %v1349_v42 = vor.u32 1.1754944e-38, %v1348_v23  ;;  %v4364_v23 = vperm.slane %v4220_v38, 2 }
 0x139   :  { %v1326_v57 = vadd.f32 %v3533_v32, %v1325_v31 }
 0x13a   :  { %v1341_v60 = vadd.f32 %v3535_v44, %v1340_v59  ;;  %vm1347_vm9 = vcmp.eq.f32.partialorder %v1346_v19, 8.507059e+37  ;;  %4921 = vst [vmem:[#allocation45_spill] sm:$0xff] %v4364_v23 }
 0x13b   :  { %v1330_v26 = vsel %vm1329_vm4, %v3533_v32, %v1326_v57 }
 0x13c   :  { %v1335_v25 = vsel %vm1332_vm5, %v1334_v41, %v1330_v26  ;;  %v1345_v31 = vsel %vm1344_vm8, %v3535_v44, %v1341_v60 }
 0x13d   :  { %v1353_v14 = vmul.f32 %v1352_v16, %v1335_v25  ;;  %v1350_v1 = vsel %vm1347_vm9, %v1349_v42, %v1345_v31 }
 0x13e   :  { %v1356_v57 = vsub.f32 1.0, %v1350_v1  ;;  %v1358_v59 = vmul.f32 0.0, %v1350_v1 }
 0x13f   :  { %v1354_v2 = vadd.f32 %v1353_v14, %v725_v10  ;;  %v4330_v16 = vpop.f32.mrf.mxu0  ;;  %v4361_v10 = vperm.slane %v4220_v38, 1 }
 0x141   :  { %3536 = vtanh.f32 %v1354_v2  ;;  %4920 = vst [vmem:[#allocation44_spill] sm:$0xff] %v4361_v10 }
 0x147   :  { %v3537_v32 = vpop.eup %3536  ;;  %v4341_v1 = vpop.f32.mrf.mxu0 }
 0x148   :  { %v1357_v41 = vmul.f32 %v3537_v32, %v1356_v57  ;;  %4915 = vst [vmem:[#allocation39_spill] sm:$0xff] %v4341_v1 }
 0x14a   :  { %v4318_v26 = vadd.f32 %v1358_v59, %v1357_v41 }
 0x14c   :  { %v1364_v25 = vpack.c.bf16 %v4318_v26, %v4318_v26 }
 0x14e   :  { %1373 = vmatmul.bf16.vlgmr.msrb.gmra.mxu3 %v1364_v25  ;;  %1386 = vmatmul.bf16.vlgmr.msra.gmra.mxu0 %v1364_v25 }
 0x14f   :  { %1399 = vmatmul.bf16.vlgmr.msrb.gmra.mxu1 %v1364_v25  ;;  %1575 = vmatpush.bf16.msrb.mxu3 %v4107_v52  ;;  %v4349_v21 = vpop.f32.mrf.mxu0 }
 0x150   :  { %1641 = vmatpush.bf16.msra.mxu0 %v4040_v33  ;;  %1654 = vmatpush.bf16.msrb.mxu1 %v4042_v36  ;;  %4916 = vst [vmem:[#allocation40_spill] sm:$0xff] %v4349_v21 }
 0x153   :  { %1576 = vmatpush.bf16.msrb.mxu3 %v4116_v62 }
 0x154   :  { %1642 = vmatpush.bf16.msra.mxu0 %v4056_v45  ;;  %1655 = vmatpush.bf16.msrb.mxu1 %v4059_v47 }
 0x157   :  { %1577 = vmatpush.bf16.msrb.mxu3 %v4123_v5  ;;  %v4356_v4 = vpop.f32.mrf.mxu0 }
 0x158   :  { %1643 = vmatpush.bf16.msra.mxu0 %v4065_v55  ;;  %1656 = vmatpush.bf16.msrb.mxu1 %v4068_v56  ;;  %4918 = vst [vmem:[#allocation42_spill] sm:$0xff] %v4356_v4 }
 0x15a   :  { %v4352_v44 = vpop.f32.mrf.mxu1 }
 0x15b   :  { %1578 = vmatpush.bf16.msrb.mxu3 %v4129_v8  ;;  %4917 = vst [vmem:[#allocation41_spill] sm:$0xff] %v4352_v44 }
 0x15c   :  { %1644 = vmatpush.bf16.msra.mxu0 %v4079_v7  ;;  %1657 = vmatpush.bf16.msrb.mxu1 %v4082_v11 }
 0x15f   :  { %1579 = vmatpush.bf16.msrb.mxu3 %v4133_v28  ;;  %v1007_v14 = vpop.f32.mrf.mxu0 }
 0x160   :  { %1645 = vmatpush.bf16.msra.mxu0 %v4085_v17  ;;  %1658 = vmatpush.bf16.msrb.mxu1 %v4088_v18  ;;  %v4367_v19 = vadd.f32 %v1007_v14, %v4361_v10 }
 0x162   :  { %v4358_v60 = vpop.f32.mrf.mxu1  ;;  %4922 = vst [vmem:[#allocation46_spill] sm:$0xff] %v4367_v19 }
 0x163   :  { %1580 = vmatpush.bf16.msrb.mxu3 %v4137_v9  ;;  %4919 = vst [vmem:[#allocation43_spill] sm:$0xff] %v4358_v60 }
 0x164   :  { %1646 = vmatpush.bf16.msra.mxu0 %v4091_v22  ;;  %1659 = vmatpush.bf16.msrb.mxu1 %v4101_v37 }
 0x167   :  { %1581 = vmatpush.bf16.msrb.mxu3 %v4144_v24  ;;  %v4372_v42 = vpop.f32.mrf.mxu0 }
 0x168   :  { %1647 = vmatpush.bf16.msra.mxu0 %v4097_v30  ;;  %1660 = vmatpush.bf16.msrb.mxu1 %v4109_v53  ;;  %4924 = vst [vmem:[#allocation48_spill] sm:$0xff] %v4372_v42 }
 0x16a   :  { %v1035_v2 = vpop.f32.mrf.mxu1 }
 0x16b   :  { %1582 = vmatpush.bf16.msrb.mxu3 %v4150_v27  ;;  %v4370_v31 = vadd.f32 %v1035_v2, %v4364_v23 }
 0x16c   :  { %1648 = vmatpush.bf16.msra.mxu0 %v4105_v48  ;;  %1661 = vmatpush.bf16.msrb.mxu1 %v4113_v61 }
 0x16d   :  { %4923 = vst [vmem:[#allocation47_spill] sm:$0xff] %v4370_v31 }
 0x16f   :  { %v1012_v32 = vpop.f32.mrf.mxu0 }
 0x170   :  { %v4377_v41 = vadd.f32 %v1012_v32, %v4361_v10  ;;  %v698_v32 = vadd.f32 %v4191_v43, %v4181_v34 }
 0x172   :  { %v4374_v57 = vpop.f32.mrf.mxu1  ;;  %4926 = vst [vmem:[#allocation50_spill] sm:$0xff] %v4377_v41 }
 0x173   :  { %4925 = vst [vmem:[#allocation49_spill] sm:$0xff] %v4374_v57 }
 0x177   :  { %v4382_v25 = vpop.f32.mrf.mxu0 }
 0x178   :  { %4928 = vst [vmem:[#allocation52_spill] sm:$0xff] %v4382_v25 }
 0x17a   :  { %v1040_v59 = vpop.f32.mrf.mxu1 }
 0x17b   :  { %v4380_v38 = vadd.f32 %v1040_v59, %v4364_v23 }
 0x17d   :  { %4927 = vst [vmem:[#allocation51_spill] sm:$0xff] %v4380_v38 }
 0x17f   :  { %v1017_v19 = vpop.f32.mrf.mxu0 }
 0x180   :  { %v4387_v2 = vadd.f32 %v1017_v19, %v4361_v10 }
 0x182   :  { %v4384_v14 = vpop.f32.mrf.mxu1  ;;  %4930 = vst [vmem:[#allocation54_spill] sm:$0xff] %v4387_v2 }
 0x183   :  { %4929 = vst [vmem:[#allocation53_spill] sm:$0xff] %v4384_v14  ;;  %v669_v14 = vadd.f32 %v4302_v0, %v4287_v29 }
 0x187   :  { %v1019_v57 = vpop.f32.mrf.mxu0 }
 0x18a   :  { %v1045_v31 = vpop.f32.mrf.mxu1 }
 0x18b   :  { %v4390_v42 = vadd.f32 %v1045_v31, %v4364_v23 }
 0x18d   :  { %4931 = vst [vmem:[#allocation55_spill] sm:$0xff] %v4390_v42 }
 0x192   :  { %v1047_v60 = vpop.f32.mrf.mxu1 }
 0x1cb   :  { %v1387_v41 = vpop.f32.mrf.mxu0 }
 0x1cc   :  { %v1405_v59 = vadd.f32 %v1387_v41, %v698_v32  ;;  %v1400_v38 = vpop.f32.mrf.mxu1 }
 0x1ce   :  { %v3241_v4 = vmul.f32 -1.442695, %v1405_v59 }
 0x1d0   :  { %3538 = vpow2.f32 %v3241_v4 }
 0x1d1   :  { %v1374_v25 = vpop.f32.mrf.mxu3 }
 0x1d2   :  { %v1404_v19 = vadd.f32 %v1374_v25, %v669_v14 }
 0x1d3   :  { %v1389_v2 = vpop.f32.mrf.mxu0 }
 0x1d4   :  { %v3240_v44 = vmul.f32 -1.442695, %v1404_v19  ;;  %v1402_v21 = vpop.f32.mrf.mxu1  ;;  %v1444_v2 = vadd.f32 %v4309_v35, %v1400_v38 }
 0x1d6   :  { %v3539_v31 = vpop.eup %3538  ;;  %3540 = vpow2.f32 %v3240_v44 }
 0x1d7   :  { %v1413_v57 = vadd.f32 1.0, %v3539_v31 }
 0x1d9   :  { %v1376_v60 = vpop.f32.mrf.mxu3  ;;  %3542 = vrcp.f32 %v1413_v57  ;;  %vm1434_vm15 = vweird.f32 %v1413_v57 }
 0x1da   :  { %v727_v60 = vadd.f32 %v4213_v15, %v4224_v40 }
 0x1dc   :  { %v3541_v42 = vpop.eup %3540 }
 0x1dd   :  { %v1412_v43 = vadd.f32 1.0, %v3541_v42 }
 0x1df   :  { %3544 = vrcp.f32 %v1412_v43  ;;  %v3543_v41 = vpop.eup %3542  ;;  %v1425_v4 = vand.u32 2147483648, %v1412_v43  ;;  %v1423_v25 = vand.u32 2147483647, %v1412_v43  ;;  %vm1419_vm11 = vweird.f32 %v1412_v43 }
 0x1e0   :  { %v1430_v32 = vmul.f32 %v3543_v41, %v1413_v57  ;;  %vm1435_vm14 = vweird.f32 %v3543_v41 }
 0x1e1   :  { %v1426_v44 = vor.u32 1.1754944e-38, %v1425_v4  ;;  %vm1424_vm13 = vcmp.eq.f32.partialorder %v1423_v25, 8.507059e+37  ;;  %vm1436_vm0 = vmor %vm1434_vm15, %vm1435_vm14 }
 0x1e2   :  { %v1431_v10 = vsub.f32 1.0, %v1430_v32 }
 0x1e4   :  { %v1432_v14 = vmul.f32 %v3543_v41, %v1431_v10 }
 0x1e5   :  { %v3545_v59 = vpop.eup %3544 }
 0x1e6   :  { %v1415_v23 = vmul.f32 %v3545_v59, %v1412_v43  ;;  %vm1420_vm10 = vweird.f32 %v3545_v59  ;;  %v1433_v31 = vadd.f32 %v3543_v41, %v1432_v14 }
 0x1e7   :  { %vm1421_vm12 = vmor %vm1419_vm11, %vm1420_vm10 }
 0x1e8   :  { %v1416_v0 = vsub.f32 1.0, %v1415_v23  ;;  %v1440_v23 = vand.u32 2147483648, %v1413_v57 }
 0x1ea   :  { %v1417_v1 = vmul.f32 %v3545_v59, %v1416_v0  ;;  %v1438_v0 = vand.u32 2147483647, %v1413_v57  ;;  %v1441_v43 = vor.u32 1.1754944e-38, %v1440_v23  ;;  %v672_v57 = vadd.f32 %v4304_v51, %v4287_v29 }
 0x1ec   :  { %v1418_v21 = vadd.f32 %v3545_v59, %v1417_v1  ;;  %v1437_v1 = vsel %vm1436_vm0, %v3543_v41, %v1433_v31  ;;  %vm1439_vm1 = vcmp.eq.f32.partialorder %v1438_v0, 8.507059e+37 }
 0x1ed   :  { %v1442_v4 = vsel %vm1439_vm1, %v1441_v43, %v1437_v1 }
 0x1ee   :  { %v1422_v19 = vsel %vm1421_vm12, %v3545_v59, %v1418_v21  ;;  %v1448_v38 = vsub.f32 1.0, %v1442_v4  ;;  %v1450_v21 = vmul.f32 %v1442_v4, %v4318_v26 }
 0x1ef   :  { %v1427_v42 = vsel %vm1424_vm13, %v1426_v44, %v1422_v19 }
 0x1f0   :  { %v1445_v32 = vmul.f32 %v1444_v2, %v1427_v42 }
 0x1f2   :  { %v1446_v10 = vadd.f32 %v1445_v32, %v727_v60 }
 0x1f4   :  { %3546 = vtanh.f32 %v1446_v10 }
 0x1fa   :  { %v3547_v59 = vpop.eup %3546 }
 0x1fb   :  { %v1449_v25 = vmul.f32 %v3547_v59, %v1448_v38 }
 0x1fd   :  { %v4400_v14 = vadd.f32 %v1450_v21, %v1449_v25 }
 0x1ff   :  { %v1456_v15 = vpack.c.bf16 %v4400_v14, %v4400_v14 }
 0x201   :  { %1465 = vmatmul.bf16.vlgmr.msra.gmra.mxu2 %v1456_v15  ;;  %1478 = vmatmul.bf16.vlgmr.msra.gmra.mxu3 %v1456_v15 }
 0x202   :  { %1491 = vmatmul.bf16.vlgmr.msrb.gmra.mxu0 %v1456_v15  ;;  %1667 = vmatpush.bf16.msra.mxu2 %v4107_v52 }
 0x203   :  { %1733 = vmatpush.bf16.msra.mxu3 %v4040_v33  ;;  %1746 = vmatpush.bf16.msrb.mxu0 %v4042_v36 }
 0x206   :  { %1668 = vmatpush.bf16.msra.mxu2 %v4116_v62 }
 0x207   :  { %1734 = vmatpush.bf16.msra.mxu3 %v4056_v45  ;;  %1747 = vmatpush.bf16.msrb.mxu0 %v4059_v47 }
 0x20a   :  { %1669 = vmatpush.bf16.msra.mxu2 %v4123_v5 }
 0x20b   :  { %1735 = vmatpush.bf16.msra.mxu3 %v4065_v55  ;;  %1748 = vmatpush.bf16.msrb.mxu0 %v4068_v56 }
 0x20e   :  { %1670 = vmatpush.bf16.msra.mxu2 %v4129_v8 }
 0x20f   :  { %1736 = vmatpush.bf16.msra.mxu3 %v4079_v7  ;;  %1749 = vmatpush.bf16.msrb.mxu0 %v4082_v11 }
 0x212   :  { %1671 = vmatpush.bf16.msra.mxu2 %v4133_v28 }
 0x213   :  { %1737 = vmatpush.bf16.msra.mxu3 %v4085_v17  ;;  %1750 = vmatpush.bf16.msrb.mxu0 %v4088_v18 }
 0x216   :  { %1672 = vmatpush.bf16.msra.mxu2 %v4137_v9 }
 0x217   :  { %1738 = vmatpush.bf16.msra.mxu3 %v4091_v22  ;;  %1751 = vmatpush.bf16.msrb.mxu0 %v4101_v37 }
 0x21a   :  { %1673 = vmatpush.bf16.msra.mxu2 %v4144_v24 }
 0x21b   :  { %1739 = vmatpush.bf16.msra.mxu3 %v4097_v30  ;;  %1752 = vmatpush.bf16.msrb.mxu0 %v4109_v53 }
 0x21e   :  { %1674 = vmatpush.bf16.msra.mxu2 %v4150_v27 }
 0x21f   :  { %1740 = vmatpush.bf16.msra.mxu3 %v4105_v48  ;;  %1753 = vmatpush.bf16.msrb.mxu0 %v4113_v61 }
 0x27f   :  { %v1492_v26 = vpop.f32.mrf.mxu0 }
 0x284   :  { %v1466_v41 = vpop.f32.mrf.mxu2  ;;  %v1479_v44 = vpop.f32.mrf.mxu3 }
 0x285   :  { %v1496_v2 = vadd.f32 %v1466_v41, %v672_v57  ;;  %v1497_v19 = vadd.f32 %v1479_v44, %v4198_v63 }
 0x287   :  { %v3242_v42 = vmul.f32 -1.442695, %v1496_v2  ;;  %v3243_v31 = vmul.f32 -1.442695, %v1497_v19  ;;  %v1494_v60 = vpop.f32.mrf.mxu0  ;;  %v1536_v19 = vadd.f32 %v4309_v35, %v1492_v26 }
 0x289   :  { %3548 = vpow2.f32 %v3242_v42 }
 0x28a   :  { %3550 = vpow2.f32 %v3243_v31 }
 0x28c   :  { %v1468_v23 = vpop.f32.mrf.mxu2  ;;  %v1481_v32 = vpop.f32.mrf.mxu3 }
 0x28f   :  { %v3549_v0 = vpop.eup %3548 }
 0x290   :  { %v3551_v10 = vpop.eup %3550  ;;  %v1504_v1 = vadd.f32 1.0, %v3549_v0 }
 0x291   :  { %v1505_v43 = vadd.f32 1.0, %v3551_v10 }
 0x292   :  { %3552 = vrcp.f32 %v1504_v1  ;;  %v1517_v21 = vand.u32 2147483648, %v1504_v1  ;;  %v1515_v57 = vand.u32 2147483647, %v1504_v1  ;;  %vm1511_vm3 = vweird.f32 %v1504_v1 }
 0x293   :  { %3554 = vrcp.f32 %v1505_v43  ;;  %v1532_v32 = vand.u32 2147483648, %v1505_v43  ;;  %vm1526_vm7 = vweird.f32 %v1505_v43  ;;  %v1530_v0 = vand.u32 2147483647, %v1505_v43 }
 0x294   :  { %v1518_v2 = vor.u32 1.1754944e-38, %v1517_v21  ;;  %vm1516_vm5 = vcmp.eq.f32.partialorder %v1515_v57, 8.507059e+37  ;;  %v703_v57 = vadd.f32 %v4205_v20, %v4181_v34 }
 0x295   :  { %vm1531_vm9 = vcmp.eq.f32.partialorder %v1530_v0, 8.507059e+37 }
 0x298   :  { %v3553_v4 = vpop.eup %3552 }
 0x299   :  { %v3555_v51 = vpop.eup %3554  ;;  %v1507_v38 = vmul.f32 %v3553_v4, %v1504_v1  ;;  %vm1512_vm2 = vweird.f32 %v3553_v4 }
 0x29a   :  { %v1522_v59 = vmul.f32 %v3555_v51, %v1505_v43  ;;  %vm1513_vm4 = vmor %vm1511_vm3, %vm1512_vm2  ;;  %vm1527_vm6 = vweird.f32 %v3555_v51 }
 0x29b   :  { %v1508_v25 = vsub.f32 1.0, %v1507_v38  ;;  %vm1528_vm8 = vmor %vm1526_vm7, %vm1527_vm6 }
 0x29c   :  { %v1523_v63 = vsub.f32 1.0, %v1522_v59  ;;  %v1533_v59 = vor.u32 1.1754944e-38, %v1532_v32 }
 0x29d   :  { %v1509_v15 = vmul.f32 %v3553_v4, %v1508_v25 }
 0x29e   :  { %v1524_v41 = vmul.f32 %v3555_v51, %v1523_v63 }
 0x29f   :  { %v1510_v44 = vadd.f32 %v3553_v4, %v1509_v15 }
 0x2a0   :  { %v1525_v60 = vadd.f32 %v3555_v51, %v1524_v41 }
 0x2a1   :  { %v1514_v42 = vsel %vm1513_vm4, %v3553_v4, %v1510_v44 }
 0x2a2   :  { %v1519_v31 = vsel %vm1516_vm5, %v1518_v2, %v1514_v42  ;;  %v1529_v38 = vsel %vm1528_vm8, %v3555_v51, %v1525_v60 }
 0x2a3   :  { %v1537_v23 = vmul.f32 %v1536_v19, %v1519_v31  ;;  %v1534_v1 = vsel %vm1531_vm9, %v1533_v59, %v1529_v38 }
 0x2a4   :  { %v1540_v25 = vsub.f32 1.0, %v1534_v1  ;;  %v1542_v4 = vmul.f32 %v1534_v1, %v4400_v14 }
 0x2a5   :  { %v1538_v10 = vadd.f32 %v1537_v23, %v4232_v54  ;;  %v674_v54 = vadd.f32 %v4312_v50, %v4287_v29 }
 0x2a7   :  { %3556 = vtanh.f32 %v1538_v10 }
 0x2ad   :  { %v3557_v21 = vpop.eup %3556 }
 0x2ae   :  { %v1541_v26 = vmul.f32 %v3557_v21, %v1540_v25 }
 0x2b0   :  { %v4434_v63 = vadd.f32 %v1542_v4, %v1541_v26 }
 0x2b2   :  { %v1548_v15 = vpack.c.bf16 %v4434_v63, %v4434_v63 }
 0x2b4   :  { %1557 = vmatmul.bf16.vlgmr.msra.gmra.mxu1 %v1548_v15  ;;  %1570 = vmatmul.bf16.vlgmr.msrb.gmra.mxu2 %v1548_v15 }
 0x2b5   :  { %1583 = vmatmul.bf16.vlgmr.msrb.gmra.mxu3 %v1548_v15  ;;  %1759 = vmatpush.bf16.msra.mxu1 %v4107_v52 }
 0x2b6   :  { %1825 = vmatpush.bf16.msrb.mxu2 %v4040_v33  ;;  %1838 = vmatpush.bf16.msrb.mxu3 %v4042_v36 }
 0x2b9   :  { %1760 = vmatpush.bf16.msra.mxu1 %v4116_v62 }
 0x2ba   :  { %1826 = vmatpush.bf16.msrb.mxu2 %v4056_v45  ;;  %1839 = vmatpush.bf16.msrb.mxu3 %v4059_v47 }
 0x2bd   :  { %1761 = vmatpush.bf16.msra.mxu1 %v4123_v5 }
 0x2be   :  { %1827 = vmatpush.bf16.msrb.mxu2 %v4065_v55  ;;  %1840 = vmatpush.bf16.msrb.mxu3 %v4068_v56 }
 0x2c1   :  { %1762 = vmatpush.bf16.msra.mxu1 %v4129_v8 }
 0x2c2   :  { %1828 = vmatpush.bf16.msrb.mxu2 %v4079_v7  ;;  %1841 = vmatpush.bf16.msrb.mxu3 %v4082_v11 }
 0x2c5   :  { %1763 = vmatpush.bf16.msra.mxu1 %v4133_v28 }
 0x2c6   :  { %1829 = vmatpush.bf16.msrb.mxu2 %v4085_v17  ;;  %1842 = vmatpush.bf16.msrb.mxu3 %v4088_v18 }
 0x2c9   :  { %1764 = vmatpush.bf16.msra.mxu1 %v4137_v9 }
 0x2ca   :  { %1830 = vmatpush.bf16.msrb.mxu2 %v4091_v22  ;;  %1843 = vmatpush.bf16.msrb.mxu3 %v4101_v37 }
 0x2cd   :  { %1765 = vmatpush.bf16.msra.mxu1 %v4144_v24 }
 0x2ce   :  { %1831 = vmatpush.bf16.msrb.mxu2 %v4097_v30  ;;  %1844 = vmatpush.bf16.msrb.mxu3 %v4109_v53 }
 0x2d1   :  { %1766 = vmatpush.bf16.msra.mxu1 %v4150_v27 }
 0x2d2   :  { %1832 = vmatpush.bf16.msrb.mxu2 %v4105_v48  ;;  %1845 = vmatpush.bf16.msrb.mxu3 %v4113_v61 }
 0x331   :  { %v1558_v14 = vpop.f32.mrf.mxu1 }
 0x332   :  { %v1588_v43 = vadd.f32 %v1558_v14, %v674_v54 }
 0x334   :  { %v3244_v51 = vmul.f32 -1.442695, %v1588_v43 }
 0x336   :  { %3558 = vpow2.f32 %v3244_v51  ;;  %v732_v51 = vadd.f32 %v4242_v58, %v4224_v40 }
 0x337   :  { %v1571_v41 = vpop.f32.mrf.mxu2 }
 0x338   :  { %v1589_v44 = vadd.f32 %v1571_v41, %v703_v57  ;;  %v1584_v2 = vpop.f32.mrf.mxu3 }
 0x339   :  { %v1560_v19 = vpop.f32.mrf.mxu1  ;;  %v1628_v43 = vadd.f32 %v4309_v35, %v1584_v2 }
 0x33a   :  { %v3245_v42 = vmul.f32 -1.442695, %v1589_v44 }
 0x33c   :  { %v3559_v31 = vpop.eup %3558  ;;  %3560 = vpow2.f32 %v3245_v42 }
 0x33d   :  { %v1596_v60 = vadd.f32 1.0, %v3559_v31 }
 0x33f   :  { %3562 = vrcp.f32 %v1596_v60  ;;  %v1573_v23 = vpop.f32.mrf.mxu2  ;;  %v1609_v1 = vand.u32 2147483648, %v1596_v60  ;;  %v1607_v25 = vand.u32 2147483647, %v1596_v60  ;;  %vm1603_vm11 = vweird.f32 %v1596_v60 }
 0x340   :  { %v1586_v32 = vpop.f32.mrf.mxu3 }
 0x341   :  { %v1610_v15 = vor.u32 1.1754944e-38, %v1609_v1  ;;  %vm1608_vm13 = vcmp.eq.f32.partialorder %v1607_v25, 8.507059e+37 }
 0x342   :  { %v3561_v0 = vpop.eup %3560 }
 0x343   :  { %v1597_v50 = vadd.f32 1.0, %v3561_v0 }
 0x345   :  { %v3563_v10 = vpop.eup %3562  ;;  %3564 = vrcp.f32 %v1597_v50  ;;  %v1624_v44 = vand.u32 2147483648, %v1597_v50  ;;  %v1622_v42 = vand.u32 2147483647, %v1597_v50  ;;  %vm1618_vm15 = vweird.f32 %v1597_v50 }
 0x346   :  { %v1599_v38 = vmul.f32 %v3563_v10, %v1596_v60  ;;  %vm1604_vm10 = vweird.f32 %v3563_v10 }
 0x347   :  { %vm1605_vm12 = vmor %vm1603_vm11, %vm1604_vm10  ;;  %v1625_v60 = vor.u32 1.1754944e-38, %v1624_v44  ;;  %vm1623_vm1 = vcmp.eq.f32.partialorder %v1622_v42, 8.507059e+37 }
 0x348   :  { %v1600_v59 = vsub.f32 1.0, %v1599_v38 }
 0x34a   :  { %v1601_v20 = vmul.f32 %v3563_v10, %v1600_v59 }
 0x34b   :  { %v3565_v21 = vpop.eup %3564 }
 0x34c   :  { %v1614_v26 = vmul.f32 %v3565_v21, %v1597_v50  ;;  %v1602_v4 = vadd.f32 %v3563_v10, %v1601_v20  ;;  %vm1619_vm14 = vweird.f32 %v3565_v21 }
 0x34d   :  { %vm1620_vm0 = vmor %vm1618_vm15, %vm1619_vm14 }
 0x34e   :  { %v1615_v54 = vsub.f32 1.0, %v1614_v26  ;;  %v1606_v14 = vsel %vm1605_vm12, %v3563_v10, %v1602_v4 }
 0x34f   :  { %v1611_v57 = vsel %vm1608_vm13, %v1610_v15, %v1606_v14 }
 0x350   :  { %v1616_v41 = vmul.f32 %v3565_v21, %v1615_v54  ;;  %v1629_v19 = vmul.f32 %v1628_v43, %v1611_v57 }
 0x352   :  { %v1630_v31 = vadd.f32 %v1629_v19, %v732_v51  ;;  %v1617_v23 = vadd.f32 %v3565_v21, %v1616_v41 }
 0x354   :  { %3566 = vtanh.f32 %v1630_v31  ;;  %v1621_v32 = vsel %vm1620_vm0, %v3565_v21, %v1617_v23 }
 0x355   :  { %v1626_v0 = vsel %vm1623_vm1, %v1625_v60, %v1621_v32 }
 0x356   :  { %v1632_v10 = vsub.f32 1.0, %v1626_v0  ;;  %v1634_v58 = vmul.f32 %v1626_v0, %v4434_v63 }
 0x35a   :  { %v3567_v2 = vpop.eup %3566 }
 0x35b   :  { %v1633_v38 = vmul.f32 %v3567_v2, %v1632_v10 }
 0x35d   :  { %v4470_v59 = vadd.f32 %v1634_v58, %v1633_v38 }
 0x35f   :  { %v1640_v1 = vpack.c.bf16 %v4470_v59, %v4470_v59 }
 0x361   :  { %1649 = vmatmul.bf16.vlgmr.msra.gmra.mxu0 %v1640_v1  ;;  %1662 = vmatmul.bf16.vlgmr.msrb.gmra.mxu1 %v1640_v1 }
 0x362   :  { %1675 = vmatmul.bf16.vlgmr.msra.gmra.mxu2 %v1640_v1  ;;  %1851 = vmatpush.bf16.msra.mxu0 %v4107_v52 }
 0x363   :  { %1917 = vmatpush.bf16.msrb.mxu1 %v4040_v33  ;;  %1930 = vmatpush.bf16.msra.mxu2 %v4042_v36  ;;  %v677_v33 = vadd.f32 %v4316_v13, %v4287_v29 }
 0x366   :  { %1852 = vmatpush.bf16.msra.mxu0 %v4116_v62 }
 0x367   :  { %1918 = vmatpush.bf16.msrb.mxu1 %v4056_v45  ;;  %1931 = vmatpush.bf16.msra.mxu2 %v4059_v47 }
 0x36a   :  { %1853 = vmatpush.bf16.msra.mxu0 %v4123_v5 }
 0x36b   :  { %1919 = vmatpush.bf16.msrb.mxu1 %v4065_v55  ;;  %1932 = vmatpush.bf16.msra.mxu2 %v4068_v56 }
 0x36e   :  { %1854 = vmatpush.bf16.msra.mxu0 %v4129_v8 }
 0x36f   :  { %1920 = vmatpush.bf16.msrb.mxu1 %v4079_v7  ;;  %1933 = vmatpush.bf16.msra.mxu2 %v4082_v11 }
 0x372   :  { %1855 = vmatpush.bf16.msra.mxu0 %v4133_v28 }
 0x373   :  { %1921 = vmatpush.bf16.msrb.mxu1 %v4085_v17  ;;  %1934 = vmatpush.bf16.msra.mxu2 %v4088_v18 }
 0x376   :  { %1856 = vmatpush.bf16.msra.mxu0 %v4137_v9 }
 0x377   :  { %1922 = vmatpush.bf16.msrb.mxu1 %v4091_v22  ;;  %1935 = vmatpush.bf16.msra.mxu2 %v4101_v37 }
 0x37a   :  { %1857 = vmatpush.bf16.msra.mxu0 %v4144_v24 }
 0x37b   :  { %1923 = vmatpush.bf16.msrb.mxu1 %v4097_v30  ;;  %1936 = vmatpush.bf16.msra.mxu2 %v4109_v53 }
 0x37e   :  { %1858 = vmatpush.bf16.msra.mxu0 %v4150_v27 }
 0x37f   :  { %1924 = vmatpush.bf16.msrb.mxu1 %v4105_v48  ;;  %1937 = vmatpush.bf16.msra.mxu2 %v4113_v61 }
 0x3de   :  { %v1650_v36 = vpop.f32.mrf.mxu0  ;;  %v1663_v45 = vpop.f32.mrf.mxu1 }
 0x3df   :  { %v1680_v47 = vadd.f32 %v1650_v36, %v677_v33  ;;  %v1681_v55 = vadd.f32 %v1663_v45, %v4187_v39 }
 0x3e1   :  { %v3246_v56 = vmul.f32 -1.442695, %v1680_v47  ;;  %v3247_v7 = vmul.f32 -1.442695, %v1681_v55 }
 0x3e3   :  { %3568 = vpow2.f32 %v3246_v56 }
 0x3e4   :  { %3570 = vpow2.f32 %v3247_v7 }
 0x3e5   :  { %v1676_v11 = vpop.f32.mrf.mxu2 }
 0x3e6   :  { %v1652_v17 = vpop.f32.mrf.mxu0  ;;  %v1665_v18 = vpop.f32.mrf.mxu1  ;;  %v1720_v43 = vadd.f32 %v4309_v35, %v1676_v11 }
 0x3e9   :  { %v3569_v22 = vpop.eup %3568 }
 0x3ea   :  { %v3571_v30 = vpop.eup %3570  ;;  %v1688_v37 = vadd.f32 1.0, %v3569_v22 }
 0x3eb   :  { %v1689_v48 = vadd.f32 1.0, %v3571_v30 }
 0x3ec   :  { %3572 = vrcp.f32 %v1688_v37  ;;  %v1701_v25 = vand.u32 2147483648, %v1688_v37  ;;  %v1699_v26 = vand.u32 2147483647, %v1688_v37  ;;  %vm1695_vm3 = vweird.f32 %v1688_v37 }
 0x3ed   :  { %3574 = vrcp.f32 %v1689_v48  ;;  %v1678_v53 = vpop.f32.mrf.mxu2  ;;  %v1716_v41 = vand.u32 2147483648, %v1689_v48  ;;  %vm1710_vm7 = vweird.f32 %v1689_v48  ;;  %v1714_v19 = vand.u32 2147483647, %v1689_v48 }
 0x3ee   :  { %v1702_v54 = vor.u32 1.1754944e-38, %v1701_v25  ;;  %vm1700_vm5 = vcmp.eq.f32.partialorder %v1699_v26, 8.507059e+37 }
 0x3ef   :  { %v1717_v23 = vor.u32 1.1754944e-38, %v1716_v41  ;;  %vm1715_vm9 = vcmp.eq.f32.partialorder %v1714_v19, 8.507059e+37 }
 0x3f2   :  { %v3573_v61 = vpop.eup %3572 }
 0x3f3   :  { %v3575_v13 = vpop.eup %3574  ;;  %v1691_v63 = vmul.f32 %v3573_v61, %v1688_v37  ;;  %vm1696_vm2 = vweird.f32 %v3573_v61 }
 0x3f4   :  { %v1706_v50 = vmul.f32 %v3575_v13, %v1689_v48  ;;  %vm1697_vm4 = vmor %vm1695_vm3, %vm1696_vm2  ;;  %vm1711_vm6 = vweird.f32 %v3575_v13 }
 0x3f5   :  { %v1692_v20 = vsub.f32 1.0, %v1691_v63  ;;  %vm1712_vm8 = vmor %vm1710_vm7, %vm1711_vm6 }
 0x3f6   :  { %v1707_v39 = vsub.f32 1.0, %v1706_v50 }
 0x3f7   :  { %v1693_v21 = vmul.f32 %v3573_v61, %v1692_v20  ;;  %v737_v20 = vadd.f32 %v4262_v12, %v4224_v40 }
 0x3f8   :  { %v1708_v4 = vmul.f32 %v3575_v13, %v1707_v39 }
 0x3f9   :  { %v1694_v15 = vadd.f32 %v3573_v61, %v1693_v21 }
 0x3fa   :  { %v1709_v57 = vadd.f32 %v3575_v13, %v1708_v4 }
 0x3fb   :  { %v1698_v14 = vsel %vm1697_vm4, %v3573_v61, %v1694_v15 }
 0x3fc   :  { %v1703_v51 = vsel %vm1700_vm5, %v1702_v54, %v1698_v14  ;;  %v1713_v31 = vsel %vm1712_vm8, %v3575_v13, %v1709_v57 }
 0x3fd   :  { %v1721_v44 = vmul.f32 %v1720_v43, %v1703_v51  ;;  %v1718_v60 = vsel %vm1715_vm9, %v1717_v23, %v1713_v31 }
 0x3fe   :  { %v1724_v32 = vsub.f32 1.0, %v1718_v60  ;;  %v1726_v2 = vmul.f32 %v1718_v60, %v4470_v59 }
 0x3ff   :  { %v1722_v42 = vadd.f32 %v1721_v44, %v4252_v6  ;;  %v708_v6 = vadd.f32 %v4193_v46, %v4181_v34  ;;  %v682_v44 = vadd.f32 %v4330_v16, %v4287_v29 }
 0x401   :  { %3576 = vtanh.f32 %v1722_v42 }
 0x407   :  { %v3577_v0 = vpop.eup %3576 }
 0x408   :  { %v1725_v10 = vmul.f32 %v3577_v0, %v1724_v32 }
 0x40a   :  { %v4504_v38 = vadd.f32 %v1726_v2, %v1725_v10 }
 0x40c   :  { %v1732_v58 = vpack.c.bf16 %v4504_v38, %v4504_v38 }
 0x40e   :  { %1741 = vmatmul.bf16.vlgmr.msra.gmra.mxu3 %v1732_v58  ;;  %1754 = vmatmul.bf16.vlgmr.msrb.gmra.mxu0 %v1732_v58 }
 0x40f   :  { %1767 = vmatmul.bf16.vlgmr.msra.gmra.mxu1 %v1732_v58  ;;  %1943 = vmatpush.bf16.msra.mxu3 %v4107_v52 }
 0x413   :  { %1944 = vmatpush.bf16.msra.mxu3 %v4116_v62  ;;  %v679_v62 = vadd.f32 %v4322_v49, %v4287_v29 }
 0x417   :  { %1945 = vmatpush.bf16.msra.mxu3 %v4123_v5 }
 0x41b   :  { %1946 = vmatpush.bf16.msra.mxu3 %v4129_v8 }
 0x41f   :  { %1947 = vmatpush.bf16.msra.mxu3 %v4133_v28 }
 0x423   :  { %1948 = vmatpush.bf16.msra.mxu3 %v4137_v9 }
 0x427   :  { %1949 = vmatpush.bf16.msra.mxu3 %v4144_v24 }
 0x42b   :  { %1950 = vmatpush.bf16.msra.mxu3 %v4150_v27 }
 0x48b   :  { %v1755_v59 = vpop.f32.mrf.mxu0 }
 0x48c   :  { %v1773_v1 = vadd.f32 %v1755_v59, %v708_v6  ;;  %v1768_v52 = vpop.f32.mrf.mxu1 }
 0x48d   :  { %v1812_v61 = vadd.f32 %v4309_v35, %v1768_v52 }
 0x48e   :  { %v3249_v33 = vmul.f32 -1.442695, %v1773_v1 }
 0x490   :  { %3578 = vpow2.f32 %v3249_v33 }
 0x491   :  { %v1742_v5 = vpop.f32.mrf.mxu3 }
 0x492   :  { %v1772_v8 = vadd.f32 %v1742_v5, %v679_v62 }
 0x493   :  { %v1757_v28 = vpop.f32.mrf.mxu0 }
 0x494   :  { %v3248_v36 = vmul.f32 -1.442695, %v1772_v8  ;;  %v1770_v9 = vpop.f32.mrf.mxu1 }
 0x496   :  { %v3579_v45 = vpop.eup %3578  ;;  %3580 = vpow2.f32 %v3248_v36 }
 0x497   :  { %v1781_v24 = vadd.f32 1.0, %v3579_v45 }
 0x499   :  { %v1744_v27 = vpop.f32.mrf.mxu3  ;;  %3582 = vrcp.f32 %v1781_v24  ;;  %v1808_v39 = vand.u32 2147483648, %v1781_v24  ;;  %vm1802_vm15 = vweird.f32 %v1781_v24  ;;  %v1806_v21 = vand.u32 2147483647, %v1781_v24 }
 0x49b   :  { %v1809_v15 = vor.u32 1.1754944e-38, %v1808_v39  ;;  %vm1807_vm1 = vcmp.eq.f32.partialorder %v1806_v21, 8.507059e+37  ;;  %v3496_v39 = vld [vmem:[#allocation20 + $0xac] sm:$0xf]  ;;  %v3342_v21 = vld [vmem:[#allocation20 + $0xb4] sm:$0xf0] }
 0x49c   :  { %v3581_v47 = vpop.eup %3580 }
 0x49d   :  { %v1780_v46 = vadd.f32 1.0, %v3581_v47 }
 0x49f   :  { %3584 = vrcp.f32 %v1780_v46  ;;  %v3583_v55 = vpop.eup %3582  ;;  %v1793_v18 = vand.u32 2147483648, %v1780_v46  ;;  %v1791_v30 = vand.u32 2147483647, %v1780_v46  ;;  %vm1787_vm11 = vweird.f32 %v1780_v46 }
 0x4a0   :  { %v1798_v56 = vmul.f32 %v3583_v55, %v1781_v24  ;;  %vm1803_vm14 = vweird.f32 %v3583_v55  ;;  %v4530_v24 = vld [vmem:[%s4887_s3] ss:$0 sm:$0xff] }
 0x4a1   :  { %v1794_v53 = vor.u32 1.1754944e-38, %v1793_v18  ;;  %vm1792_vm13 = vcmp.eq.f32.partialorder %v1791_v30, 8.507059e+37  ;;  %vm1804_vm0 = vmor %vm1802_vm15, %vm1803_vm14 }
 0x4a2   :  { %v1799_v17 = vsub.f32 1.0, %v1798_v56 }
 0x4a4   :  { %v1800_v37 = vmul.f32 %v3583_v55, %v1799_v17  ;;  %v4932_v17 = vld [vmem:[#allocation36_spill] sm:$0xff] }
 0x4a5   :  { %v3585_v7 = vpop.eup %3584 }
 0x4a6   :  { %v1783_v11 = vmul.f32 %v3585_v7, %v1780_v46  ;;  %vm1788_vm10 = vweird.f32 %v3585_v7  ;;  %v1801_v50 = vadd.f32 %v3583_v55, %v1800_v37 }
 0x4a7   :  { %vm1789_vm12 = vmor %vm1787_vm11, %vm1788_vm10 }
 0x4a8   :  { %v1784_v49 = vsub.f32 1.0, %v1783_v11  ;;  %v1805_v4 = vsel %vm1804_vm0, %v3583_v55, %v1801_v50  ;;  %v3340_v50 = vld [vmem:[#allocation20 + $0xa8] sm:$0xf] }
 0x4a9   :  { %v1810_v54 = vsel %vm1807_vm1, %v1809_v15, %v1805_v4  ;;  %v3498_v4 = vld [vmem:[#allocation20 + $0xb8] sm:$0xf0]  ;;  %v4540_v15 = vor.u32 %v3496_v39, %v3342_v21 }
 0x4aa   :  { %v1785_v22 = vmul.f32 %v3585_v7, %v1784_v49  ;;  %v1816_v35 = vsub.f32 1.0, %v1810_v54  ;;  %v1818_v51 = vmul.f32 %v1810_v54, %v4504_v38 }
 0x4ab   :  { %2149 = vmatpush.bf16.msra.mxu1 %v4540_v15 }
 0x4ac   :  { %v1786_v48 = vadd.f32 %v3585_v7, %v1785_v22 }
 0x4ae   :  { %v1790_v13 = vsel %vm1789_vm12, %v3585_v7, %v1786_v48 }
 0x4af   :  { %v1795_v63 = vsel %vm1792_vm13, %v1794_v53, %v1790_v13 }
 0x4b0   :  { %v1813_v25 = vmul.f32 %v1812_v61, %v1795_v63 }
 0x4b2   :  { %v1814_v26 = vadd.f32 %v1813_v25, %v737_v20  ;;  %v3497_v20 = vld [vmem:[#allocation20 + $0xb0] sm:$0xf0] }
 0x4b3   :  { %v4538_v25 = vor.u32 %v3497_v20, %v3340_v50 }
 0x4b4   :  { %3586 = vtanh.f32 %v1814_v26  ;;  %v3348_v26 = vld [vmem:[#allocation20 + $0xb0] sm:$0xf] }
 0x4b5   :  { %v4542_v54 = vor.u32 %v3498_v4, %v3348_v26  ;;  %2136 = vmatpush.bf16.msrb.mxu0 %v4538_v25  ;;  %v3268_v26 = vld [vmem:[#allocation20 + $0x18] sm:$0xf]  ;;  %v3479_v4 = vld [vmem:[#allocation20 + $0x20] sm:$0xf0] }
 0x4ba   :  { %v3587_v14 = vpop.eup %3586 }
 0x4bb   :  { %v1817_v43 = vmul.f32 %v3587_v14, %v1816_v35  ;;  %v3328_v35 = vld [vmem:[#allocation20 + $0x90] sm:$0xf]  ;;  %v3494_v14 = vld [vmem:[#allocation20 + $0x98] sm:$0xf0] }
 0x4bd   :  { %v1819_v57 = vadd.f32 %v1818_v51, %v1817_v43  ;;  %v3493_v43 = vld [vmem:[#allocation20 + $0x94] sm:$0xf]  ;;  %v4548_v51 = vor.u32 %v3494_v14, %v3328_v35  ;;  %v3478_v35 = vld [vmem:[#allocation20 + $0x1c] sm:$0xf]  ;;  %v4604_v14 = vor.u32 %v3479_v4, %v3268_v26 }
 0x4bf   :  { %v1824_v41 = vpack.c.bf16 %v1819_v57, %v1819_v57  ;;  %2137 = vmatpush.bf16.msrb.mxu0 %v4548_v51 }
 0x4c1   :  { %1833 = vmatmul.bf16.vlgmr.msrb.gmra.mxu2 %v1824_v41  ;;  %1846 = vmatmul.bf16.vlgmr.msrb.gmra.mxu3 %v1824_v41 }
 0x4c2   :  { %1859 = vmatmul.bf16.vlgmr.msra.gmra.mxu0 %v1824_v41  ;;  %2229 = vmatpush.bf16.msrb.mxu3 %v4538_v25  ;;  %v3336_v41 = vld [vmem:[#allocation20 + $0x98] sm:$0xf] }
 0x4c3   :  { %2162 = vmatpush.bf16.msrb.mxu2 %v4542_v54 }
 0x4c6   :  { %2230 = vmatpush.bf16.msrb.mxu3 %v4548_v51 }
 0x53f   :  { %v1860_v12 = vpop.f32.mrf.mxu0 }
 0x540   :  { %v1904_v27 = vadd.f32 %v4530_v24, %v1860_v12  ;;  %v3495_v12 = vld [vmem:[#allocation20 + $0xa0] sm:$0xf0] }
 0x544   :  { %v1834_v19 = vpop.f32.mrf.mxu2  ;;  %v1847_v42 = vpop.f32.mrf.mxu3 }
 0x545   :  { %v1864_v31 = vadd.f32 %v1834_v19, %v682_v44  ;;  %v1865_v23 = vadd.f32 %v1847_v42, %v4201_v3  ;;  %v4552_v19 = vor.u32 %v3495_v12, %v3336_v41  ;;  %v3316_v42 = vld [vmem:[#allocation20 + $0x78] sm:$0xf]  ;;  %v3480_v41 = vld [vmem:[#allocation20 + $0x28] sm:$0xf0] }
 0x547   :  { %v3250_v60 = vmul.f32 -1.442695, %v1864_v31  ;;  %v3251_v32 = vmul.f32 -1.442695, %v1865_v23  ;;  %v1862_v0 = vpop.f32.mrf.mxu0  ;;  %2163 = vmatpush.bf16.msrb.mxu2 %v4552_v19  ;;  %v3491_v31 = vld [vmem:[#allocation20 + $0x80] sm:$0xf0] }
 0x548   :  { %v3490_v23 = vld [vmem:[#allocation20 + $0x7c] sm:$0xf]  ;;  %v3324_v0 = vld [vmem:[#allocation20 + $0x80] sm:$0xf] }
 0x549   :  { %3588 = vpow2.f32 %v3250_v60  ;;  %v4558_v60 = vor.u32 %v3491_v31, %v3316_v42 }
 0x54a   :  { %3590 = vpow2.f32 %v3251_v32  ;;  %v3318_v32 = vld [vmem:[#allocation20 + $0x84] sm:$0xf0] }
 0x54b   :  { %2138 = vmatpush.bf16.msrb.mxu0 %v4558_v60  ;;  %2231 = vmatpush.bf16.msrb.mxu3 %v4558_v60 }
 0x54c   :  { %v1836_v10 = vpop.f32.mrf.mxu2  ;;  %v1849_v2 = vpop.f32.mrf.mxu3 }
 0x54d   :  { %v3492_v10 = vld [vmem:[#allocation20 + $0x88] sm:$0xf0]  ;;  %v4560_v2 = vor.u32 %v3490_v23, %v3318_v32  ;;  %v3256_v23 = vld [vmem:[#allocation20] sm:$0xf] }
 0x54e   :  { %v3476_v32 = vld [vmem:[#allocation20 + $0x8] sm:$0xf0] }
 0x54f   :  { %v3589_v38 = vpop.eup %3588 }
 0x550   :  { %v3591_v58 = vpop.eup %3590  ;;  %v1872_v6 = vadd.f32 1.0, %v3589_v38  ;;  %v4562_v38 = vor.u32 %v3492_v10, %v3324_v0  ;;  %v3475_v0 = vld [vmem:[#allocation20 + $0x4] sm:$0xf] }
 0x551   :  { %v1873_v59 = vadd.f32 1.0, %v3591_v58  ;;  %v3304_v58 = vld [vmem:[#allocation20 + $0x60] sm:$0xf] }
 0x552   :  { %3592 = vrcp.f32 %v1872_v6  ;;  %v1885_v5 = vand.u32 2147483648, %v1872_v6  ;;  %v1883_v28 = vand.u32 2147483647, %v1872_v6  ;;  %vm1879_vm3 = vweird.f32 %v1872_v6  ;;  %2164 = vmatpush.bf16.msrb.mxu2 %v4562_v38 }
 0x553   :  { %3594 = vrcp.f32 %v1873_v59  ;;  %v1900_v7 = vand.u32 2147483648, %v1873_v59  ;;  %vm1894_vm7 = vweird.f32 %v1873_v59  ;;  %v1898_v11 = vand.u32 2147483647, %v1873_v59 }
 0x554   :  { %v1886_v45 = vor.u32 1.1754944e-38, %v1885_v5  ;;  %vm1884_vm5 = vcmp.eq.f32.partialorder %v1883_v28, 8.507059e+37  ;;  %v3292_v28 = vld [vmem:[#allocation20 + $0x48] sm:$0xf] }
 0x555   :  { %v1901_v22 = vor.u32 1.1754944e-38, %v1900_v7  ;;  %vm1899_vm9 = vcmp.eq.f32.partialorder %v1898_v11, 8.507059e+37 }
 0x558   :  { %v3593_v1 = vpop.eup %3592 }
 0x559   :  { %v3595_v16 = vpop.eup %3594  ;;  %v1875_v52 = vmul.f32 %v3593_v1, %v1872_v6  ;;  %vm1880_vm2 = vweird.f32 %v3593_v1  ;;  %v3488_v6 = vld [vmem:[#allocation20 + $0x68] sm:$0xf0] }
 0x55a   :  { %v1890_v33 = vmul.f32 %v3595_v16, %v1873_v59  ;;  %vm1881_vm4 = vmor %vm1879_vm3, %vm1880_vm2  ;;  %vm1895_vm6 = vweird.f32 %v3595_v16  ;;  %v3487_v59 = vld [vmem:[#allocation20 + $0x64] sm:$0xf] }
 0x55b   :  { %v1876_v62 = vsub.f32 1.0, %v1875_v52  ;;  %vm1896_vm8 = vmor %vm1894_vm7, %vm1895_vm6  ;;  %v3312_v52 = vld [vmem:[#allocation20 + $0x68] sm:$0xf] }
 0x55c   :  { %v1891_v3 = vsub.f32 1.0, %v1890_v33  ;;  %v3489_v33 = vld [vmem:[#allocation20 + $0x70] sm:$0xf0] }
 0x55d   :  { %v1877_v8 = vmul.f32 %v3593_v1, %v1876_v62  ;;  %v4572_v5 = vor.u32 %v3489_v33, %v3312_v52 }
 0x55e   :  { %v1892_v36 = vmul.f32 %v3595_v16, %v1891_v3  ;;  %v4933_v3 = vld [vmem:[#allocation39_spill] sm:$0xff] }
 0x55f   :  { %v1878_v9 = vadd.f32 %v3593_v1, %v1877_v8  ;;  %v684_v8 = vadd.f32 %v4933_v3, %v4287_v29  ;;  %2165 = vmatpush.bf16.msrb.mxu2 %v4572_v5 }
 0x560   :  { %v1893_v55 = vadd.f32 %v3595_v16, %v1892_v36  ;;  %v3485_v36 = vld [vmem:[#allocation20 + $0x50] sm:$0xf0] }
 0x561   :  { %v1882_v47 = vsel %vm1881_vm4, %v3593_v1, %v1878_v9  ;;  %v4568_v1 = vor.u32 %v3488_v6, %v3304_v58  ;;  %v3484_v9 = vld [vmem:[#allocation20 + $0x4c] sm:$0xf]  ;;  %v4613_v58 = vor.u32 %v3476_v32, %v3256_v23  ;;  %v3258_v6 = vld [vmem:[#allocation20 + $0xc] sm:$0xf0] }
 0x562   :  { %v1887_v46 = vsel %vm1884_vm5, %v1886_v45, %v1882_v47  ;;  %v1897_v18 = vsel %vm1896_vm8, %v3595_v16, %v1893_v55  ;;  %v3306_v16 = vld [vmem:[#allocation20 + $0x6c] sm:$0xf0]  ;;  %v3294_v47 = vld [vmem:[#allocation20 + $0x54] sm:$0xf0]  ;;  %v3486_v55 = vld [vmem:[#allocation20 + $0x58] sm:$0xf0]  ;;  %v4616_v33 = vor.u32 %v3475_v0, %v3258_v6 }
 0x563   :  { %v1905_v56 = vmul.f32 %v1904_v27, %v1887_v46  ;;  %v1902_v30 = vsel %vm1899_vm9, %v1901_v22, %v1897_v18  ;;  %v4570_v62 = vor.u32 %v3487_v59, %v3306_v16  ;;  %2139 = vmatpush.bf16.msrb.mxu0 %v4568_v1  ;;  %2232 = vmatpush.bf16.msrb.mxu3 %v4568_v1  ;;  %v3300_v46 = vld [vmem:[#allocation20 + $0x50] sm:$0xf]  ;;  %v3481_v22 = vld [vmem:[#allocation20 + $0x34] sm:$0xf]  ;;  %v3264_v59 = vld [vmem:[#allocation20 + $0x8] sm:$0xf] }
 0x564   :  { %v1908_v37 = vsub.f32 1.0, %v1902_v30  ;;  %v1910_v61 = vmul.f32 %v1902_v30, %v1819_v57  ;;  %v3330_v57 = vld [vmem:[#allocation20 + $0x9c] sm:$0xf0]  ;;  %v4580_v27 = vor.u32 %v3485_v36, %v3292_v28  ;;  %v4582_v7 = vor.u32 %v3484_v9, %v3294_v47  ;;  %v3477_v16 = vld [vmem:[#allocation20 + $0x10] sm:$0xf0]  ;;  %v4937_v6 = vld [vmem:[#allocation29_spill] sm:$0xff] }
 0x565   :  { %v1906_v49 = vadd.f32 %v1905_v56, %v4932_v17  ;;  %v4550_v44 = vor.u32 %v3493_v43, %v3330_v57  ;;  %v4584_v11 = vor.u32 %v3486_v55, %v3300_v46  ;;  %v3280_v17 = vld [vmem:[#allocation20 + $0x30] sm:$0xf]  ;;  %v3282_v30 = vld [vmem:[#allocation20 + $0x3c] sm:$0xf0]  ;;  %v3270_v43 = vld [vmem:[#allocation20 + $0x24] sm:$0xf0]  ;;  %v4618_v3 = vor.u32 %v3477_v16, %v3264_v59 }
 0x566   :  { %v3276_v57 = vld [vmem:[#allocation20 + $0x20] sm:$0xf]  ;;  %v4606_v42 = vor.u32 %v3478_v35, %v3270_v43 }
 0x567   :  { %3596 = vtanh.f32 %v1906_v49  ;;  %2150 = vmatpush.bf16.msra.mxu1 %v4550_v44  ;;  %2140 = vmatpush.bf16.msrb.mxu0 %v4580_v27  ;;  %v3482_v49 = vld [vmem:[#allocation20 + $0x38] sm:$0xf0]  ;;  %v4608_v31 = vor.u32 %v3480_v41, %v3276_v57 }
 0x568   :  { %2233 = vmatpush.bf16.msrb.mxu3 %v4580_v27  ;;  %2166 = vmatpush.bf16.msrb.mxu2 %v4584_v11  ;;  %v4590_v18 = vor.u32 %v3482_v49, %v3280_v17  ;;  %v4938_v16 = vld [vmem:[#allocation44_spill] sm:$0xff] }
 0x56b   :  { %2151 = vmatpush.bf16.msra.mxu1 %v4560_v2  ;;  %2141 = vmatpush.bf16.msrb.mxu0 %v4590_v18 }
 0x56c   :  { %2234 = vmatpush.bf16.msrb.mxu3 %v4590_v18 }
 0x56d   :  { %v3597_v48 = vpop.eup %3596 }
 0x56e   :  { %v1909_v53 = vmul.f32 %v3597_v48, %v1908_v37  ;;  %v3288_v37 = vld [vmem:[#allocation20 + $0x38] sm:$0xf]  ;;  %v4934_v48 = vld [vmem:[#allocation28_spill] sm:$0xff] }
 0x56f   :  { %2152 = vmatpush.bf16.msra.mxu1 %v4570_v62  ;;  %2142 = vmatpush.bf16.msrb.mxu0 %v4604_v14 }
 0x570   :  { %v4534_v13 = vadd.f32 %v1910_v61, %v1909_v53  ;;  %v713_v53 = vadd.f32 %v4934_v48, %v4181_v34  ;;  %v4594_v61 = vor.u32 %v3481_v22, %v3282_v30  ;;  %2235 = vmatpush.bf16.msrb.mxu3 %v4604_v14 }
 0x572   :  { %v1916_v63 = vpack.c.bf16 %v4534_v13, %v4534_v13 }
 0x573   :  { %2153 = vmatpush.bf16.msra.mxu1 %v4582_v7  ;;  %2143 = vmatpush.bf16.msrb.mxu0 %v4613_v58 }
 0x574   :  { %1925 = vmatmul.bf16.vlgmr.msrb.gmra.mxu1 %v1916_v63  ;;  %1938 = vmatmul.bf16.vlgmr.msra.gmra.mxu2 %v1916_v63 }
 0x575   :  { %1951 = vmatmul.bf16.vlgmr.msra.gmra.mxu3 %v1916_v63  ;;  %v3483_v63 = vld [vmem:[#allocation20 + $0x40] sm:$0xf0] }
 0x576   :  { %v4597_v20 = vor.u32 %v3483_v63, %v3288_v37  ;;  %2236 = vmatpush.bf16.msrb.mxu3 %v4613_v58  ;;  %v4935_v63 = vld [vmem:[#allocation38_spill] sm:$0xff] }
 0x577   :  { %2154 = vmatpush.bf16.msra.mxu1 %v4594_v61  ;;  %2242 = vmatpush.bf16.msra.mxu0 %v4540_v15 }
 0x578   :  { %2167 = vmatpush.bf16.msrb.mxu2 %v4597_v20 }
 0x57a   :  { %2336 = vmatpush.bf16.msra.mxu3 %v4540_v15 }
 0x57b   :  { %2155 = vmatpush.bf16.msra.mxu1 %v4606_v42  ;;  %2243 = vmatpush.bf16.msra.mxu0 %v4550_v44 }
 0x57c   :  { %2168 = vmatpush.bf16.msrb.mxu2 %v4608_v31 }
 0x57e   :  { %2337 = vmatpush.bf16.msra.mxu3 %v4550_v44 }
 0x57f   :  { %2156 = vmatpush.bf16.msra.mxu1 %v4616_v33  ;;  %2244 = vmatpush.bf16.msra.mxu0 %v4560_v2 }
 0x580   :  { %2169 = vmatpush.bf16.msrb.mxu2 %v4618_v3 }
 0x582   :  { %2338 = vmatpush.bf16.msra.mxu3 %v4560_v2 }
 0x583   :  { %2255 = vmatpush.bf16.msrb.mxu1 %v4542_v54  ;;  %2245 = vmatpush.bf16.msra.mxu0 %v4570_v62 }
 0x584   :  { %2323 = vmatpush.bf16.msra.mxu2 %v4538_v25 }
 0x586   :  { %2339 = vmatpush.bf16.msra.mxu3 %v4570_v62 }
 0x587   :  { %2256 = vmatpush.bf16.msrb.mxu1 %v4552_v19  ;;  %2246 = vmatpush.bf16.msra.mxu0 %v4582_v7 }
 0x588   :  { %2324 = vmatpush.bf16.msra.mxu2 %v4548_v51 }
 0x58a   :  { %2340 = vmatpush.bf16.msra.mxu3 %v4582_v7 }
 0x58b   :  { %2257 = vmatpush.bf16.msrb.mxu1 %v4562_v38  ;;  %2247 = vmatpush.bf16.msra.mxu0 %v4594_v61 }
 0x58c   :  { %2325 = vmatpush.bf16.msra.mxu2 %v4558_v60 }
 0x58e   :  { %2341 = vmatpush.bf16.msra.mxu3 %v4594_v61 }
 0x58f   :  { %2258 = vmatpush.bf16.msrb.mxu1 %v4572_v5  ;;  %2248 = vmatpush.bf16.msra.mxu0 %v4606_v42 }
 0x590   :  { %2326 = vmatpush.bf16.msra.mxu2 %v4568_v1 }
 0x592   :  { %2342 = vmatpush.bf16.msra.mxu3 %v4606_v42 }
 0x593   :  { %2259 = vmatpush.bf16.msrb.mxu1 %v4584_v11  ;;  %2249 = vmatpush.bf16.msra.mxu0 %v4616_v33 }
 0x594   :  { %2327 = vmatpush.bf16.msra.mxu2 %v4580_v27 }
 0x596   :  { %2343 = vmatpush.bf16.msra.mxu3 %v4616_v33 }
 0x597   :  { %2260 = vmatpush.bf16.msrb.mxu1 %v4597_v20 }
 0x598   :  { %2328 = vmatpush.bf16.msra.mxu2 %v4590_v18 }
 0x59b   :  { %2261 = vmatpush.bf16.msrb.mxu1 %v4608_v31 }
 0x59c   :  { %2329 = vmatpush.bf16.msra.mxu2 %v4604_v14 }
 0x59f   :  { %2262 = vmatpush.bf16.msrb.mxu1 %v4618_v3 }
 0x5a0   :  { %2330 = vmatpush.bf16.msra.mxu2 %v4613_v58 }
 0x5f1   :  { %v1926_v45 = vpop.f32.mrf.mxu1 }
 0x5f2   :  { %v1956_v56 = vadd.f32 %v1926_v45, %v684_v8 }
 0x5f4   :  { %v3252_v29 = vmul.f32 -1.442695, %v1956_v56 }
 0x5f6   :  { %3598 = vpow2.f32 %v3252_v29 }
 0x5f7   :  { %v1939_v50 = vpop.f32.mrf.mxu2 }
 0x5f8   :  { %v1957_v39 = vadd.f32 %v1939_v50, %v713_v53  ;;  %v4600_v21 = vpop.f32.mrf.mxu3  ;;  %v742_v50 = vadd.f32 %v4935_v63, %v4224_v40 }
 0x5f9   :  { %v1928_v34 = vpop.f32.mrf.mxu1  ;;  %v1996_v53 = vadd.f32 %v4530_v24, %v4600_v21 }
 0x5fa   :  { %v3253_v12 = vmul.f32 -1.442695, %v1957_v39 }
 0x5fc   :  { %v3599_v10 = vpop.eup %3598  ;;  %3600 = vpow2.f32 %v3253_v12 }
 0x5fd   :  { %v1964_v52 = vadd.f32 1.0, %v3599_v10 }
 0x5ff   :  { %3602 = vrcp.f32 %v1964_v52  ;;  %v1941_v8 = vpop.f32.mrf.mxu2  ;;  %v1977_v55 = vand.u32 2147483648, %v1964_v52  ;;  %v1975_v29 = vand.u32 2147483647, %v1964_v52  ;;  %vm1971_vm11 = vweird.f32 %v1964_v52 }
 0x600   :  { %v1954_v28 = vpop.f32.mrf.mxu3 }
 0x601   :  { %v1978_v30 = vor.u32 1.1754944e-38, %v1977_v55  ;;  %vm1976_vm13 = vcmp.eq.f32.partialorder %v1975_v29, 8.507059e+37 }
 0x602   :  { %v3601_v36 = vpop.eup %3600 }
 0x603   :  { %v1965_v9 = vadd.f32 1.0, %v3601_v36 }
 0x605   :  { %v3603_v45 = vpop.eup %3602  ;;  %3604 = vrcp.f32 %v1965_v9  ;;  %v1992_v4 = vand.u32 2147483648, %v1965_v9  ;;  %v1990_v34 = vand.u32 2147483647, %v1965_v9  ;;  %vm1986_vm15 = vweird.f32 %v1965_v9 }
 0x606   :  { %v1967_v47 = vmul.f32 %v3603_v45, %v1964_v52  ;;  %vm1972_vm10 = vweird.f32 %v3603_v45  ;;  %v4939_v52 = vld [vmem:[#allocation40_spill] sm:$0xff] }
 0x607   :  { %vm1973_vm12 = vmor %vm1971_vm11, %vm1972_vm10  ;;  %v1993_v21 = vor.u32 1.1754944e-38, %v1992_v4  ;;  %vm1991_vm1 = vcmp.eq.f32.partialorder %v1990_v34, 8.507059e+37  ;;  %v1003_v8 = vadd.f32 %v4939_v52, %v4938_v16 }
 0x608   :  { %v1968_v46 = vsub.f32 1.0, %v1967_v47 }
 0x60a   :  { %v1969_v56 = vmul.f32 %v3603_v45, %v1968_v46 }
 0x60b   :  { %v3605_v17 = vpop.eup %3604 }
 0x60c   :  { %v1982_v49 = vmul.f32 %v3605_v17, %v1965_v9  ;;  %v1970_v22 = vadd.f32 %v3603_v45, %v1969_v56  ;;  %vm1987_vm14 = vweird.f32 %v3605_v17 }
 0x60d   :  { %vm1988_vm0 = vmor %vm1986_vm15, %vm1987_vm14 }
 0x60e   :  { %v1983_v37 = vsub.f32 1.0, %v1982_v49  ;;  %v1974_v48 = vsel %vm1973_vm12, %v3603_v45, %v1970_v22 }
 0x60f   :  { %v1979_v39 = vsel %vm1976_vm13, %v1978_v30, %v1974_v48 }
 0x610   :  { %v1984_v26 = vmul.f32 %v3605_v17, %v1983_v37  ;;  %v1997_v35 = vmul.f32 %v1996_v53, %v1979_v39 }
 0x612   :  { %v1985_v43 = vadd.f32 %v3605_v17, %v1984_v26  ;;  %v1998_v24 = vadd.f32 %v1997_v35, %v742_v50  ;;  %v4696_v35 = vld [vmem:[%s4891_s7] ss:$0 sm:$0xff] }
 0x614   :  { %v1989_v40 = vsel %vm1988_vm0, %v3605_v17, %v1985_v43  ;;  %3606 = vtanh.f32 %v1998_v24 }
 0x615   :  { %v1994_v57 = vsel %vm1991_vm1, %v1993_v21, %v1989_v40 }
 0x616   :  { %v2000_v41 = vsub.f32 1.0, %v1994_v57  ;;  %v2002_v32 = vmul.f32 %v1994_v57, %v4534_v13  ;;  %v4936_v13 = vld [vmem:[#allocation31_spill] sm:$0xff] }
 0x617   :  { %v975_v59 = vadd.f32 %v4937_v6, %v4936_v13 }
 0x61a   :  { %v3607_v12 = vpop.eup %3606 }
 0x61b   :  { %v2001_v23 = vmul.f32 %v3607_v12, %v2000_v41 }
 0x61d   :  { %v4658_v0 = vadd.f32 %v2002_v32, %v2001_v23  ;;  %v4940_v32 = vld [vmem:[#allocation45_spill] sm:$0xff] }
 0x61f   :  { %v2007_v10 = vpack.c.bf16 %v4658_v0, %v4658_v0 }
 0x621   :  { %2144 = vmatmul.bf16.vlgmr.msrb.gmra.mxu0 %v2007_v10  ;;  %2157 = vmatmul.bf16.vlgmr.msra.gmra.mxu1 %v2007_v10 }
 0x622   :  { %2170 = vmatmul.bf16.vlgmr.msrb.gmra.mxu2 %v2007_v10  ;;  %2349 = vmatpush.bf16.msrb.mxu0 %v4542_v54  ;;  %v4941_v10 = vld [vmem:[#allocation41_spill] sm:$0xff] }
 0x623   :  { %2417 = vmatpush.bf16.msra.mxu1 %v4538_v25  ;;  %2430 = vmatpush.bf16.msrb.mxu2 %v4540_v15  ;;  %v1031_v6 = vadd.f32 %v4941_v10, %v4940_v32 }
 0x626   :  { %2350 = vmatpush.bf16.msrb.mxu0 %v4552_v19 }
 0x627   :  { %2418 = vmatpush.bf16.msra.mxu1 %v4548_v51  ;;  %2431 = vmatpush.bf16.msrb.mxu2 %v4550_v44 }
 0x62a   :  { %2351 = vmatpush.bf16.msrb.mxu0 %v4562_v38 }
 0x62b   :  { %2419 = vmatpush.bf16.msra.mxu1 %v4558_v60  ;;  %2432 = vmatpush.bf16.msrb.mxu2 %v4560_v2 }
 0x62e   :  { %2352 = vmatpush.bf16.msrb.mxu0 %v4572_v5 }
 0x62f   :  { %2420 = vmatpush.bf16.msra.mxu1 %v4568_v1  ;;  %2433 = vmatpush.bf16.msrb.mxu2 %v4570_v62 }
 0x632   :  { %2353 = vmatpush.bf16.msrb.mxu0 %v4584_v11 }
 0x633   :  { %2421 = vmatpush.bf16.msra.mxu1 %v4580_v27  ;;  %2434 = vmatpush.bf16.msrb.mxu2 %v4582_v7 }
 0x636   :  { %2354 = vmatpush.bf16.msrb.mxu0 %v4597_v20 }
 0x637   :  { %2422 = vmatpush.bf16.msra.mxu1 %v4590_v18  ;;  %2435 = vmatpush.bf16.msrb.mxu2 %v4594_v61 }
 0x63a   :  { %2355 = vmatpush.bf16.msrb.mxu0 %v4608_v31 }
 0x63b   :  { %2423 = vmatpush.bf16.msra.mxu1 %v4604_v14  ;;  %2436 = vmatpush.bf16.msrb.mxu2 %v4606_v42 }
 0x63e   :  { %2356 = vmatpush.bf16.msrb.mxu0 %v4618_v3 }
 0x63f   :  { %2424 = vmatpush.bf16.msra.mxu1 %v4613_v58  ;;  %2437 = vmatpush.bf16.msrb.mxu2 %v4616_v33 }
 0x69e   :  { %v2145_v28 = vpop.f32.mrf.mxu0  ;;  %v2158_v36 = vpop.f32.mrf.mxu1 }
 0x69f   :  { %v2175_v9 = vadd.f32 %v2145_v28, %v975_v59  ;;  %v2176_v45 = vadd.f32 %v2158_v36, %v1003_v8 }
 0x6a1   :  { %v3350_v47 = vmul.f32 -1.442695, %v2175_v9  ;;  %v3351_v46 = vmul.f32 -1.442695, %v2176_v45 }
 0x6a3   :  { %3608 = vpow2.f32 %v3350_v47 }
 0x6a4   :  { %3610 = vpow2.f32 %v3351_v46 }
 0x6a5   :  { %v2171_v55 = vpop.f32.mrf.mxu2 }
 0x6a6   :  { %v2147_v56 = vpop.f32.mrf.mxu0  ;;  %v2160_v29 = vpop.f32.mrf.mxu1  ;;  %v2215_v41 = vadd.f32 %v4696_v35, %v2171_v55 }
 0x6a9   :  { %v3609_v17 = vpop.eup %3608 }
 0x6aa   :  { %v3611_v49 = vpop.eup %3610  ;;  %v2183_v22 = vadd.f32 1.0, %v3609_v17 }
 0x6ab   :  { %v2184_v30 = vadd.f32 1.0, %v3611_v49 }
 0x6ac   :  { %3612 = vrcp.f32 %v2183_v22  ;;  %v2196_v4 = vand.u32 2147483648, %v2183_v22  ;;  %v2194_v43 = vand.u32 2147483647, %v2183_v22  ;;  %vm2190_vm3 = vweird.f32 %v2183_v22 }
 0x6ad   :  { %3614 = vrcp.f32 %v2184_v30  ;;  %v2173_v37 = vpop.f32.mrf.mxu2  ;;  %v2211_v59 = vand.u32 2147483648, %v2184_v30  ;;  %vm2205_vm7 = vweird.f32 %v2184_v30  ;;  %v2209_v8 = vand.u32 2147483647, %v2184_v30 }
 0x6ae   :  { %v2197_v40 = vor.u32 1.1754944e-38, %v2196_v4  ;;  %vm2195_vm5 = vcmp.eq.f32.partialorder %v2194_v43, 8.507059e+37 }
 0x6af   :  { %v2212_v9 = vor.u32 1.1754944e-38, %v2211_v59  ;;  %vm2210_vm9 = vcmp.eq.f32.partialorder %v2209_v8, 8.507059e+37 }
 0x6b2   :  { %v3613_v48 = vpop.eup %3612 }
 0x6b3   :  { %v3615_v53 = vpop.eup %3614  ;;  %v2186_v63 = vmul.f32 %v3613_v48, %v2183_v22  ;;  %vm2191_vm2 = vweird.f32 %v3613_v48 }
 0x6b4   :  { %v2201_v50 = vmul.f32 %v3615_v53, %v2184_v30  ;;  %vm2192_vm4 = vmor %vm2190_vm3, %vm2191_vm2  ;;  %vm2206_vm6 = vweird.f32 %v3615_v53 }
 0x6b5   :  { %v2187_v39 = vsub.f32 1.0, %v2186_v63  ;;  %vm2207_vm8 = vmor %vm2205_vm7, %vm2206_vm6 }
 0x6b6   :  { %v2202_v26 = vsub.f32 1.0, %v2201_v50 }
 0x6b7   :  { %v2188_v34 = vmul.f32 %v3613_v48, %v2187_v39 }
 0x6b8   :  { %v2203_v24 = vmul.f32 %v3615_v53, %v2202_v26 }
 0x6b9   :  { %v2189_v21 = vadd.f32 %v3613_v48, %v2188_v34 }
 0x6ba   :  { %v2204_v12 = vadd.f32 %v3615_v53, %v2203_v24 }
 0x6bb   :  { %v2193_v57 = vsel %vm2192_vm4, %v3613_v48, %v2189_v21 }
 0x6bc   :  { %v2198_v23 = vsel %vm2195_vm5, %v2197_v40, %v2193_v57  ;;  %v2208_v36 = vsel %vm2207_vm8, %v3615_v53, %v2204_v12  ;;  %v4943_v53 = vld [vmem:[#allocation30_spill] sm:$0xff] }
 0x6bd   :  { %v2216_v52 = vmul.f32 %v2215_v41, %v2198_v23  ;;  %v2213_v45 = vsel %vm2210_vm9, %v2212_v9, %v2208_v36  ;;  %v977_v63 = vadd.f32 %v4943_v53, %v4936_v13 }
 0x6be   :  { %v2219_v47 = vsub.f32 1.0, %v2213_v45  ;;  %v2221_v56 = vmul.f32 %v2213_v45, %v4658_v0  ;;  %v4942_v0 = vld [vmem:[#allocation42_spill] sm:$0xff] }
 0x6bf   :  { %v2217_v28 = vadd.f32 %v2216_v52, %v1031_v6  ;;  %v1005_v49 = vadd.f32 %v4942_v0, %v4938_v16 }
 0x6c1   :  { %3616 = vtanh.f32 %v2217_v28 }
 0x6c7   :  { %v3617_v46 = vpop.eup %3616 }
 0x6c8   :  { %v2220_v55 = vmul.f32 %v3617_v46, %v2219_v47 }
 0x6ca   :  { %v4702_v29 = vadd.f32 %v2221_v56, %v2220_v55 }
 0x6cc   :  { %v2228_v17 = vpack.c.bf16 %v4702_v29, %v4702_v29 }
 0x6ce   :  { %2237 = vmatmul.bf16.vlgmr.msrb.gmra.mxu3 %v2228_v17  ;;  %2250 = vmatmul.bf16.vlgmr.msra.gmra.mxu0 %v2228_v17 }
 0x6cf   :  { %2263 = vmatmul.bf16.vlgmr.msrb.gmra.mxu1 %v2228_v17  ;;  %2443 = vmatpush.bf16.msrb.mxu3 %v4542_v54  ;;  %v4944_v17 = vld [vmem:[#allocation43_spill] sm:$0xff] }
 0x6d0   :  { %2511 = vmatpush.bf16.msra.mxu0 %v4538_v25  ;;  %2524 = vmatpush.bf16.msrb.mxu1 %v4540_v15  ;;  %v1033_v0 = vadd.f32 %v4944_v17, %v4940_v32 }
 0x6d3   :  { %2444 = vmatpush.bf16.msrb.mxu3 %v4552_v19 }
 0x6d4   :  { %2512 = vmatpush.bf16.msra.mxu0 %v4548_v51  ;;  %2525 = vmatpush.bf16.msrb.mxu1 %v4550_v44 }
 0x6d7   :  { %2445 = vmatpush.bf16.msrb.mxu3 %v4562_v38 }
 0x6d8   :  { %2513 = vmatpush.bf16.msra.mxu0 %v4558_v60  ;;  %2526 = vmatpush.bf16.msrb.mxu1 %v4560_v2 }
 0x6db   :  { %2446 = vmatpush.bf16.msrb.mxu3 %v4572_v5 }
 0x6dc   :  { %2514 = vmatpush.bf16.msra.mxu0 %v4568_v1  ;;  %2527 = vmatpush.bf16.msrb.mxu1 %v4570_v62 }
 0x6df   :  { %2447 = vmatpush.bf16.msrb.mxu3 %v4584_v11 }
 0x6e0   :  { %2515 = vmatpush.bf16.msra.mxu0 %v4580_v27  ;;  %2528 = vmatpush.bf16.msrb.mxu1 %v4582_v7 }
 0x6e3   :  { %2448 = vmatpush.bf16.msrb.mxu3 %v4597_v20 }
 0x6e4   :  { %2516 = vmatpush.bf16.msra.mxu0 %v4590_v18  ;;  %2529 = vmatpush.bf16.msrb.mxu1 %v4594_v61 }
 0x6e7   :  { %2449 = vmatpush.bf16.msrb.mxu3 %v4608_v31 }
 0x6e8   :  { %2517 = vmatpush.bf16.msra.mxu0 %v4604_v14  ;;  %2530 = vmatpush.bf16.msrb.mxu1 %v4606_v42 }
 0x6eb   :  { %2450 = vmatpush.bf16.msrb.mxu3 %v4618_v3 }
 0x6ec   :  { %2518 = vmatpush.bf16.msra.mxu0 %v4613_v58  ;;  %2531 = vmatpush.bf16.msrb.mxu1 %v4616_v33 }
 0x74b   :  { %v2251_v22 = vpop.f32.mrf.mxu0 }
 0x74c   :  { %v2269_v30 = vadd.f32 %v2251_v22, %v1005_v49  ;;  %v2264_v37 = vpop.f32.mrf.mxu1 }
 0x74d   :  { %v2308_v47 = vadd.f32 %v4696_v35, %v2264_v37 }
 0x74e   :  { %v3353_v48 = vmul.f32 -1.442695, %v2269_v30 }
 0x750   :  { %3618 = vpow2.f32 %v3353_v48 }
 0x751   :  { %v2238_v50 = vpop.f32.mrf.mxu3 }
 0x752   :  { %v2268_v39 = vadd.f32 %v2238_v50, %v977_v63 }
 0x753   :  { %v2253_v26 = vpop.f32.mrf.mxu0 }
 0x754   :  { %v3352_v4 = vmul.f32 -1.442695, %v2268_v39  ;;  %v2266_v34 = vpop.f32.mrf.mxu1 }
 0x756   :  { %v3619_v43 = vpop.eup %3618  ;;  %3620 = vpow2.f32 %v3352_v4 }
 0x757   :  { %v2277_v24 = vadd.f32 1.0, %v3619_v43 }
 0x759   :  { %v2240_v21 = vpop.f32.mrf.mxu3  ;;  %3622 = vrcp.f32 %v2277_v24  ;;  %v2304_v49 = vand.u32 2147483648, %v2277_v24  ;;  %vm2298_vm15 = vweird.f32 %v2277_v24  ;;  %v2302_v30 = vand.u32 2147483647, %v2277_v24 }
 0x75b   :  { %v2305_v63 = vor.u32 1.1754944e-38, %v2304_v49  ;;  %vm2303_vm1 = vcmp.eq.f32.partialorder %v2302_v30, 8.507059e+37 }
 0x75c   :  { %v3621_v40 = vpop.eup %3620 }
 0x75d   :  { %v2276_v57 = vadd.f32 1.0, %v3621_v40 }
 0x75f   :  { %3624 = vrcp.f32 %v2276_v57  ;;  %v3623_v41 = vpop.eup %3622  ;;  %v2289_v52 = vand.u32 2147483648, %v2276_v57  ;;  %v2287_v28 = vand.u32 2147483647, %v2276_v57  ;;  %vm2283_vm11 = vweird.f32 %v2276_v57 }
 0x760   :  { %v2294_v12 = vmul.f32 %v3623_v41, %v2277_v24  ;;  %vm2299_vm14 = vweird.f32 %v3623_v41 }
 0x761   :  { %v2290_v45 = vor.u32 1.1754944e-38, %v2289_v52  ;;  %vm2288_vm13 = vcmp.eq.f32.partialorder %v2287_v28, 8.507059e+37  ;;  %vm2300_vm0 = vmor %vm2298_vm15, %vm2299_vm14 }
 0x762   :  { %v2295_v6 = vsub.f32 1.0, %v2294_v12  ;;  %v4946_v12 = vld [vmem:[#allocation46_spill] sm:$0xff] }
 0x764   :  { %v2296_v36 = vmul.f32 %v3623_v41, %v2295_v6 }
 0x765   :  { %v3625_v23 = vpop.eup %3624 }
 0x766   :  { %v2279_v10 = vmul.f32 %v3625_v23, %v2276_v57  ;;  %vm2284_vm10 = vweird.f32 %v3625_v23  ;;  %v2297_v55 = vadd.f32 %v3623_v41, %v2296_v36  ;;  %v4945_v57 = vld [vmem:[#allocation32_spill] sm:$0xff] }
 0x767   :  { %vm2285_vm12 = vmor %vm2283_vm11, %vm2284_vm10 }
 0x768   :  { %v2280_v59 = vsub.f32 1.0, %v2279_v10  ;;  %v2301_v53 = vsel %vm2300_vm0, %v3623_v41, %v2297_v55 }
 0x769   :  { %v2306_v50 = vsel %vm2303_vm1, %v2305_v63, %v2301_v53 }
 0x76a   :  { %v2281_v8 = vmul.f32 %v3625_v23, %v2280_v59  ;;  %v2312_v37 = vsub.f32 1.0, %v2306_v50  ;;  %v2314_v4 = vmul.f32 %v2306_v50, %v4702_v29 }
 0x76c   :  { %v2282_v9 = vadd.f32 %v3625_v23, %v2281_v8 }
 0x76e   :  { %v2286_v46 = vsel %vm2285_vm12, %v3625_v23, %v2282_v9 }
 0x76f   :  { %v2291_v56 = vsel %vm2288_vm13, %v2290_v45, %v2286_v46 }
 0x770   :  { %v2309_v22 = vmul.f32 %v2308_v47, %v2291_v56 }
 0x772   :  { %v2310_v48 = vadd.f32 %v2309_v22, %v1033_v0 }
 0x774   :  { %3626 = vtanh.f32 %v2310_v48 }
 0x77a   :  { %v3627_v39 = vpop.eup %3626 }
 0x77b   :  { %v2313_v26 = vmul.f32 %v3627_v39, %v2312_v37 }
 0x77d   :  { %v4738_v34 = vadd.f32 %v2314_v4, %v2313_v26 }
 0x77f   :  { %v2322_v43 = vpack.c.bf16 %v4738_v34, %v4738_v34 }
 0x781   :  { %2331 = vmatmul.bf16.vlgmr.msra.gmra.mxu2 %v2322_v43  ;;  %2344 = vmatmul.bf16.vlgmr.msra.gmra.mxu3 %v2322_v43 }
 0x782   :  { %2357 = vmatmul.bf16.vlgmr.msrb.gmra.mxu0 %v2322_v43  ;;  %2537 = vmatpush.bf16.msra.mxu2 %v4542_v54 }
 0x783   :  { %2605 = vmatpush.bf16.msra.mxu3 %v4538_v25  ;;  %2618 = vmatpush.bf16.msrb.mxu0 %v4540_v15 }
 0x786   :  { %2538 = vmatpush.bf16.msra.mxu2 %v4552_v19 }
 0x787   :  { %2606 = vmatpush.bf16.msra.mxu3 %v4548_v51  ;;  %2619 = vmatpush.bf16.msrb.mxu0 %v4550_v44 }
 0x78a   :  { %2539 = vmatpush.bf16.msra.mxu2 %v4562_v38 }
 0x78b   :  { %2607 = vmatpush.bf16.msra.mxu3 %v4558_v60  ;;  %2620 = vmatpush.bf16.msrb.mxu0 %v4560_v2 }
 0x78e   :  { %2540 = vmatpush.bf16.msra.mxu2 %v4572_v5 }
 0x78f   :  { %2608 = vmatpush.bf16.msra.mxu3 %v4568_v1  ;;  %2621 = vmatpush.bf16.msrb.mxu0 %v4570_v62 }
 0x792   :  { %2541 = vmatpush.bf16.msra.mxu2 %v4584_v11 }
 0x793   :  { %2609 = vmatpush.bf16.msra.mxu3 %v4580_v27  ;;  %2622 = vmatpush.bf16.msrb.mxu0 %v4582_v7 }
 0x796   :  { %2542 = vmatpush.bf16.msra.mxu2 %v4597_v20 }
 0x797   :  { %2610 = vmatpush.bf16.msra.mxu3 %v4590_v18  ;;  %2623 = vmatpush.bf16.msrb.mxu0 %v4594_v61 }
 0x79a   :  { %2543 = vmatpush.bf16.msra.mxu2 %v4608_v31 }
 0x79b   :  { %2611 = vmatpush.bf16.msra.mxu3 %v4604_v14  ;;  %2624 = vmatpush.bf16.msrb.mxu0 %v4606_v42 }
 0x79e   :  { %2544 = vmatpush.bf16.msra.mxu2 %v4618_v3 }
 0x79f   :  { %2612 = vmatpush.bf16.msra.mxu3 %v4613_v58  ;;  %2625 = vmatpush.bf16.msrb.mxu0 %v4616_v33 }
 0x7ff   :  { %v2358_v24 = vpop.f32.mrf.mxu0 }
 0x800   :  { %v2402_v50 = vadd.f32 %v4696_v35, %v2358_v24 }
 0x804   :  { %v2332_v21 = vpop.f32.mrf.mxu2  ;;  %v2345_v40 = vpop.f32.mrf.mxu3 }
 0x805   :  { %v2362_v41 = vadd.f32 %v2332_v21, %v4945_v57  ;;  %v2363_v23 = vadd.f32 %v2345_v40, %v4946_v12  ;;  %v4947_v40 = vld [vmem:[#allocation47_spill] sm:$0xff] }
 0x807   :  { %v3354_v10 = vmul.f32 -1.442695, %v2362_v41  ;;  %v3355_v6 = vmul.f32 -1.442695, %v2363_v23  ;;  %v2360_v59 = vpop.f32.mrf.mxu0 }
 0x809   :  { %3628 = vpow2.f32 %v3354_v10 }
 0x80a   :  { %3630 = vpow2.f32 %v3355_v6 }
 0x80c   :  { %v2334_v52 = vpop.f32.mrf.mxu2  ;;  %v2347_v8 = vpop.f32.mrf.mxu3 }
 0x80f   :  { %v3629_v28 = vpop.eup %3628 }
 0x810   :  { %v3631_v36 = vpop.eup %3630  ;;  %v2370_v9 = vadd.f32 1.0, %v3629_v28 }
 0x811   :  { %v2371_v45 = vadd.f32 1.0, %v3631_v36 }
 0x812   :  { %3632 = vrcp.f32 %v2370_v9  ;;  %v2383_v0 = vand.u32 2147483648, %v2370_v9  ;;  %v2381_v30 = vand.u32 2147483647, %v2370_v9  ;;  %vm2377_vm3 = vweird.f32 %v2370_v9 }
 0x813   :  { %3634 = vrcp.f32 %v2371_v45  ;;  %v2398_v43 = vand.u32 2147483648, %v2371_v45  ;;  %vm2392_vm7 = vweird.f32 %v2371_v45  ;;  %v2396_v21 = vand.u32 2147483647, %v2371_v45 }
 0x814   :  { %v2384_v63 = vor.u32 1.1754944e-38, %v2383_v0  ;;  %vm2382_vm5 = vcmp.eq.f32.partialorder %v2381_v30, 8.507059e+37 }
 0x815   :  { %v2399_v12 = vor.u32 1.1754944e-38, %v2398_v43  ;;  %vm2397_vm9 = vcmp.eq.f32.partialorder %v2396_v21, 8.507059e+37 }
 0x818   :  { %v3633_v47 = vpop.eup %3632 }
 0x819   :  { %v3635_v46 = vpop.eup %3634  ;;  %v2373_v55 = vmul.f32 %v3633_v47, %v2370_v9  ;;  %vm2378_vm2 = vweird.f32 %v3633_v47 }
 0x81a   :  { %v2388_v56 = vmul.f32 %v3635_v46, %v2371_v45  ;;  %vm2379_vm4 = vmor %vm2377_vm3, %vm2378_vm2  ;;  %vm2393_vm6 = vweird.f32 %v3635_v46 }
 0x81b   :  { %v2374_v17 = vsub.f32 1.0, %v2373_v55  ;;  %vm2394_vm8 = vmor %vm2392_vm7, %vm2393_vm6 }
 0x81c   :  { %v2389_v49 = vsub.f32 1.0, %v2388_v56 }
 0x81d   :  { %v2375_v22 = vmul.f32 %v3633_v47, %v2374_v17 }
 0x81e   :  { %v2390_v48 = vmul.f32 %v3635_v46, %v2389_v49 }
 0x81f   :  { %v2376_v53 = vadd.f32 %v3633_v47, %v2375_v22 }
 0x820   :  { %v2391_v26 = vadd.f32 %v3635_v46, %v2390_v48 }
 0x821   :  { %v2380_v37 = vsel %vm2379_vm4, %v3633_v47, %v2376_v53 }
 0x822   :  { %v2385_v39 = vsel %vm2382_vm5, %v2384_v63, %v2380_v37  ;;  %v2395_v41 = vsel %vm2394_vm8, %v3635_v46, %v2391_v26  ;;  %v4950_v63 = vld [vmem:[#allocation49_spill] sm:$0xff] }
 0x823   :  { %v2403_v4 = vmul.f32 %v2402_v50, %v2385_v39  ;;  %v2400_v23 = vsel %vm2397_vm9, %v2399_v12, %v2395_v41  ;;  %v1038_v50 = vadd.f32 %v4950_v63, %v4940_v32 }
 0x824   :  { %v2406_v10 = vsub.f32 1.0, %v2400_v23  ;;  %v2408_v59 = vmul.f32 %v2400_v23, %v4738_v34 }
 0x825   :  { %v2404_v57 = vadd.f32 %v2403_v4, %v4947_v40 }
 0x827   :  { %3636 = vtanh.f32 %v2404_v57 }
 0x82d   :  { %v3637_v6 = vpop.eup %3636 }
 0x82e   :  { %v2407_v24 = vmul.f32 %v3637_v6, %v2406_v10 }
 0x830   :  { %v4771_v52 = vadd.f32 %v2408_v59, %v2407_v24 }
 0x832   :  { %v2416_v8 = vpack.c.bf16 %v4771_v52, %v4771_v52 }
 0x834   :  { %2425 = vmatmul.bf16.vlgmr.msra.gmra.mxu1 %v2416_v8  ;;  %2438 = vmatmul.bf16.vlgmr.msrb.gmra.mxu2 %v2416_v8 }
 0x835   :  { %2451 = vmatmul.bf16.vlgmr.msrb.gmra.mxu3 %v2416_v8  ;;  %2631 = vmatpush.bf16.msra.mxu1 %v4542_v54 }
 0x836   :  { %2699 = vmatpush.bf16.msrb.mxu2 %v4538_v25  ;;  %2712 = vmatpush.bf16.msrb.mxu3 %v4540_v15  ;;  %v4948_v25 = vld [vmem:[#allocation33_spill] sm:$0xff] }
 0x837   :  { %v982_v15 = vadd.f32 %v4948_v25, %v4936_v13 }
 0x839   :  { %2632 = vmatpush.bf16.msra.mxu1 %v4552_v19 }
 0x83a   :  { %2700 = vmatpush.bf16.msrb.mxu2 %v4548_v51  ;;  %2713 = vmatpush.bf16.msrb.mxu3 %v4550_v44 }
 0x83d   :  { %2633 = vmatpush.bf16.msra.mxu1 %v4562_v38 }
 0x83e   :  { %2701 = vmatpush.bf16.msrb.mxu2 %v4558_v60  ;;  %2714 = vmatpush.bf16.msrb.mxu3 %v4560_v2  ;;  %v4949_v2 = vld [vmem:[#allocation48_spill] sm:$0xff] }
 0x841   :  { %2634 = vmatpush.bf16.msra.mxu1 %v4572_v5 }
 0x842   :  { %2702 = vmatpush.bf16.msrb.mxu2 %v4568_v1  ;;  %2715 = vmatpush.bf16.msrb.mxu3 %v4570_v62  ;;  %v1010_v1 = vadd.f32 %v4949_v2, %v4938_v16 }
 0x845   :  { %2635 = vmatpush.bf16.msra.mxu1 %v4584_v11 }
 0x846   :  { %2703 = vmatpush.bf16.msrb.mxu2 %v4580_v27  ;;  %2716 = vmatpush.bf16.msrb.mxu3 %v4582_v7 }
 0x849   :  { %2636 = vmatpush.bf16.msra.mxu1 %v4597_v20 }
 0x84a   :  { %2704 = vmatpush.bf16.msrb.mxu2 %v4590_v18  ;;  %2717 = vmatpush.bf16.msrb.mxu3 %v4594_v61 }
 0x84d   :  { %2637 = vmatpush.bf16.msra.mxu1 %v4608_v31 }
 0x84e   :  { %2705 = vmatpush.bf16.msrb.mxu2 %v4604_v14  ;;  %2718 = vmatpush.bf16.msrb.mxu3 %v4606_v42 }
 0x851   :  { %2638 = vmatpush.bf16.msra.mxu1 %v4618_v3 }
 0x852   :  { %2706 = vmatpush.bf16.msrb.mxu2 %v4613_v58  ;;  %2719 = vmatpush.bf16.msrb.mxu3 %v4616_v33 }
 0x8b1   :  { %v2426_v51 = vpop.f32.mrf.mxu1 }
 0x8b2   :  { %v2456_v44 = vadd.f32 %v2426_v51, %v982_v15  ;;  %v3506_v51 = vld [vmem:[#allocation22 + $0x38] sm:$0xff] }
 0x8b4   :  { %v3356_v60 = vmul.f32 -1.442695, %v2456_v44  ;;  %v4951_v44 = vld [vmem:[#allocation34_spill] sm:$0xff] }
 0x8b6   :  { %3638 = vpow2.f32 %v3356_v60 }
 0x8b7   :  { %v2439_v62 = vpop.f32.mrf.mxu2 }
 0x8b8   :  { %v2457_v27 = vadd.f32 %v2439_v62, %v1010_v1  ;;  %v2452_v7 = vpop.f32.mrf.mxu3  ;;  %v3505_v1 = vld [vmem:[#allocation22 + $0x30] sm:$0xff] }
 0x8b9   :  { %v2428_v18 = vpop.f32.mrf.mxu1  ;;  %v2496_v53 = vadd.f32 %v4696_v35, %v2452_v7  ;;  %v3503_v7 = vld [vmem:[#allocation22 + $0x20] sm:$0xff] }
 0x8ba   :  { %v3357_v61 = vmul.f32 -1.442695, %v2457_v27 }
 0x8bc   :  { %v3639_v14 = vpop.eup %3638  ;;  %3640 = vpow2.f32 %v3357_v61 }
 0x8bd   :  { %v2464_v42 = vadd.f32 1.0, %v3639_v14  ;;  %v3502_v14 = vld [vmem:[#allocation22 + $0x18] sm:$0xff] }
 0x8bf   :  { %3642 = vrcp.f32 %v2464_v42  ;;  %v2441_v58 = vpop.f32.mrf.mxu2  ;;  %v2477_v46 = vand.u32 2147483648, %v2464_v42  ;;  %v2475_v56 = vand.u32 2147483647, %v2464_v42  ;;  %vm2471_vm11 = vweird.f32 %v2464_v42 }
 0x8c0   :  { %v2454_v33 = vpop.f32.mrf.mxu3 }
 0x8c1   :  { %v2478_v22 = vor.u32 1.1754944e-38, %v2477_v46  ;;  %vm2476_vm13 = vcmp.eq.f32.partialorder %v2475_v56, 8.507059e+37 }
 0x8c2   :  { %v3641_v28 = vpop.eup %3640 }
 0x8c3   :  { %v2465_v36 = vadd.f32 1.0, %v3641_v28 }
 0x8c5   :  { %v3643_v9 = vpop.eup %3642  ;;  %3644 = vrcp.f32 %v2465_v36  ;;  %v2492_v26 = vand.u32 2147483648, %v2465_v36  ;;  %v2490_v43 = vand.u32 2147483647, %v2465_v36  ;;  %vm2486_vm15 = vweird.f32 %v2465_v36 }
 0x8c6   :  { %v2467_v45 = vmul.f32 %v3643_v9, %v2464_v42  ;;  %vm2472_vm10 = vweird.f32 %v3643_v9  ;;  %v3501_v42 = vld [vmem:[#allocation22 + $0x10] sm:$0xff] }
 0x8c7   :  { %vm2473_vm12 = vmor %vm2471_vm11, %vm2472_vm10  ;;  %v2493_v57 = vor.u32 1.1754944e-38, %v2492_v26  ;;  %vm2491_vm1 = vcmp.eq.f32.partialorder %v2490_v43, 8.507059e+37  ;;  %v4953_v26 = vld [vmem:[#allocation51_spill] sm:$0xff] }
 0x8c8   :  { %v2468_v47 = vsub.f32 1.0, %v2467_v45 }
 0x8ca   :  { %v2469_v55 = vmul.f32 %v3643_v9, %v2468_v47 }
 0x8cb   :  { %v3645_v17 = vpop.eup %3644 }
 0x8cc   :  { %v2482_v0 = vmul.f32 %v3645_v17, %v2465_v36  ;;  %v2470_v49 = vadd.f32 %v3643_v9, %v2469_v55  ;;  %vm2487_vm14 = vweird.f32 %v3645_v17 }
 0x8cd   :  { %vm2488_vm0 = vmor %vm2486_vm15, %vm2487_vm14 }
 0x8ce   :  { %v2483_v30 = vsub.f32 1.0, %v2482_v0  ;;  %v2474_v48 = vsel %vm2473_vm12, %v3643_v9, %v2470_v49  ;;  %v3500_v9 = vld [vmem:[#allocation22 + $0x8] sm:$0xff]  ;;  %v3499_v0 = vld [vmem:[#allocation22] sm:$0xff] }
 0x8cf   :  { %v2479_v37 = vsel %vm2476_vm13, %v2478_v22, %v2474_v48 }
 0x8d0   :  { %v2484_v39 = vmul.f32 %v3645_v17, %v2483_v30  ;;  %v2497_v4 = vmul.f32 %v2496_v53, %v2479_v37 }
 0x8d2   :  { %v2485_v21 = vadd.f32 %v3645_v17, %v2484_v39  ;;  %v2498_v40 = vadd.f32 %v2497_v4, %v1038_v50 }
 0x8d4   :  { %v2489_v41 = vsel %vm2488_vm0, %v3645_v17, %v2485_v21  ;;  %3646 = vtanh.f32 %v2498_v40 }
 0x8d5   :  { %v2494_v12 = vsel %vm2491_vm1, %v2493_v57, %v2489_v41 }
 0x8d6   :  { %v2500_v23 = vsub.f32 1.0, %v2494_v12  ;;  %v2502_v24 = vmul.f32 %v2494_v12, %v4771_v52 }
 0x8da   :  { %v3647_v10 = vpop.eup %3646 }
 0x8db   :  { %v2501_v6 = vmul.f32 %v3647_v10, %v2500_v23 }
 0x8dd   :  { %v4807_v59 = vadd.f32 %v2502_v24, %v2501_v6  ;;  %v2795_v24 = vpack.c.bf16 %v4738_v34, %v4702_v29 }
 0x8df   :  { %v2510_v8 = vpack.c.bf16 %v4807_v59, %v4807_v59 }
 0x8e1   :  { %2519 = vmatmul.bf16.vlgmr.msra.gmra.mxu0 %v2510_v8  ;;  %2532 = vmatmul.bf16.vlgmr.msrb.gmra.mxu1 %v2510_v8 }
 0x8e2   :  { %2545 = vmatmul.bf16.vlgmr.msra.gmra.mxu2 %v2510_v8  ;;  %2725 = vmatpush.bf16.msra.mxu0 %v4542_v54  ;;  %v4952_v54 = vld [vmem:[#allocation50_spill] sm:$0xff]  ;;  %v2796_v8 = vpack.c.bf16 %v4807_v59, %v4771_v52 }
 0x8e3   :  { %2867 = vmatpush.bf16.msrb.mxu1 %v3506_v51 }
 0x8e6   :  { %2726 = vmatpush.bf16.msra.mxu0 %v4552_v19 }
 0x8e7   :  { %2868 = vmatpush.bf16.msrb.mxu1 %v3505_v1 }
 0x8ea   :  { %2727 = vmatpush.bf16.msra.mxu0 %v4562_v38 }
 0x8ee   :  { %2728 = vmatpush.bf16.msra.mxu0 %v4572_v5 }
 0x8f2   :  { %2729 = vmatpush.bf16.msra.mxu0 %v4584_v11 }
 0x8f6   :  { %2730 = vmatpush.bf16.msra.mxu0 %v4597_v20 }
 0x8fa   :  { %2731 = vmatpush.bf16.msra.mxu0 %v4608_v31  ;;  %v3504_v31 = vld [vmem:[#allocation22 + $0x28] sm:$0xff] }
 0x8fb   :  { %2869 = vmatpush.bf16.msrb.mxu1 %v3504_v31 }
 0x8fe   :  { %2732 = vmatpush.bf16.msra.mxu0 %v4618_v3 }
 0x8ff   :  { %2870 = vmatpush.bf16.msrb.mxu1 %v3503_v7 }
 0x903   :  { %2871 = vmatpush.bf16.msrb.mxu1 %v3502_v14 }
 0x907   :  { %2872 = vmatpush.bf16.msrb.mxu1 %v3501_v42 }
 0x90b   :  { %2873 = vmatpush.bf16.msrb.mxu1 %v3500_v9 }
 0x90f   :  { %2874 = vmatpush.bf16.msrb.mxu1 %v3499_v0 }
 0x95e   :  { %v2520_v25 = vpop.f32.mrf.mxu0  ;;  %v2533_v15 = vpop.f32.mrf.mxu1 }
 0x95f   :  { %v2550_v60 = vadd.f32 %v2520_v25, %v4951_v44  ;;  %v2551_v2 = vadd.f32 %v2533_v15, %v4952_v54  ;;  %v4954_v25 = vld [vmem:[#allocation52_spill] sm:$0xff] }
 0x960   :  { %v1015_v15 = vadd.f32 %v4954_v25, %v4938_v16  ;;  %v4839_v16 = vld [vmem:[%s4893_s9] ss:$0 sm:$0xff] }
 0x961   :  { %v3358_v19 = vmul.f32 -1.442695, %v2550_v60  ;;  %v3359_v38 = vmul.f32 -1.442695, %v2551_v2  ;;  %v4955_v2 = vld [vmem:[#allocation35_spill] sm:$0xff] }
 0x963   :  { %3648 = vpow2.f32 %v3358_v19  ;;  %v987_v19 = vadd.f32 %v4955_v2, %v4936_v13 }
 0x964   :  { %3650 = vpow2.f32 %v3359_v38 }
 0x965   :  { %v2546_v5 = vpop.f32.mrf.mxu2 }
 0x966   :  { %v2522_v11 = vpop.f32.mrf.mxu0  ;;  %v2535_v20 = vpop.f32.mrf.mxu1  ;;  %v2590_v48 = vadd.f32 %v4696_v35, %v2546_v5 }
 0x969   :  { %v3649_v3 = vpop.eup %3648 }
 0x96a   :  { %v3651_v62 = vpop.eup %3650  ;;  %v2558_v27 = vadd.f32 1.0, %v3649_v3 }
 0x96b   :  { %v2559_v18 = vadd.f32 1.0, %v3651_v62 }
 0x96c   :  { %3652 = vrcp.f32 %v2558_v27  ;;  %v2571_v46 = vand.u32 2147483648, %v2558_v27  ;;  %v2569_v56 = vand.u32 2147483647, %v2558_v27  ;;  %vm2565_vm3 = vweird.f32 %v2558_v27 }
 0x96d   :  { %3654 = vrcp.f32 %v2559_v18  ;;  %v2548_v61 = vpop.f32.mrf.mxu2  ;;  %v2586_v50 = vand.u32 2147483648, %v2559_v18  ;;  %vm2580_vm7 = vweird.f32 %v2559_v18  ;;  %v2584_v39 = vand.u32 2147483647, %v2559_v18 }
 0x96e   :  { %v2572_v22 = vor.u32 1.1754944e-38, %v2571_v46  ;;  %vm2570_vm5 = vcmp.eq.f32.partialorder %v2569_v56, 8.507059e+37 }
 0x96f   :  { %v2587_v21 = vor.u32 1.1754944e-38, %v2586_v50  ;;  %vm2585_vm9 = vcmp.eq.f32.partialorder %v2584_v39, 8.507059e+37 }
 0x972   :  { %v3653_v58 = vpop.eup %3652 }
 0x973   :  { %v3655_v33 = vpop.eup %3654  ;;  %v2561_v28 = vmul.f32 %v3653_v58, %v2558_v27  ;;  %vm2566_vm2 = vweird.f32 %v3653_v58 }
 0x974   :  { %v2576_v36 = vmul.f32 %v3655_v33, %v2559_v18  ;;  %vm2567_vm4 = vmor %vm2565_vm3, %vm2566_vm2  ;;  %vm2581_vm6 = vweird.f32 %v3655_v33 }
 0x975   :  { %v2562_v45 = vsub.f32 1.0, %v2561_v28  ;;  %vm2582_vm8 = vmor %vm2580_vm7, %vm2581_vm6 }
 0x976   :  { %v2577_v47 = vsub.f32 1.0, %v2576_v36 }
 0x977   :  { %v2563_v55 = vmul.f32 %v3653_v58, %v2562_v45 }
 0x978   :  { %v2578_v17 = vmul.f32 %v3655_v33, %v2577_v47 }
 0x979   :  { %v2564_v49 = vadd.f32 %v3653_v58, %v2563_v55 }
 0x97a   :  { %v2579_v53 = vadd.f32 %v3655_v33, %v2578_v17 }
 0x97b   :  { %v2568_v30 = vsel %vm2567_vm4, %v3653_v58, %v2564_v49 }
 0x97c   :  { %v2573_v63 = vsel %vm2570_vm5, %v2572_v22, %v2568_v30  ;;  %v2583_v43 = vsel %vm2582_vm8, %v3655_v33, %v2579_v53  ;;  %v4956_v22 = vld [vmem:[#allocation53_spill] sm:$0xff] }
 0x97d   :  { %v2591_v37 = vmul.f32 %v2590_v48, %v2573_v63  ;;  %v2588_v40 = vsel %vm2585_vm9, %v2587_v21, %v2583_v43  ;;  %v1043_v30 = vadd.f32 %v4956_v22, %v4940_v32 }
 0x97e   :  { %v2594_v57 = vsub.f32 1.0, %v2588_v40  ;;  %v2596_v23 = vmul.f32 %v2588_v40, %v4807_v59 }
 0x97f   :  { %v2592_v4 = vadd.f32 %v2591_v37, %v4953_v26 }
 0x981   :  { %3656 = vtanh.f32 %v2592_v4 }
 0x987   :  { %v3657_v41 = vpop.eup %3656 }
 0x988   :  { %v2595_v12 = vmul.f32 %v3657_v41, %v2594_v57 }
 0x98a   :  { %v4824_v10 = vadd.f32 %v2596_v23, %v2595_v12 }
 0x98c   :  { %v2604_v6 = vpack.c.bf16 %v4824_v10, %v4824_v10 }
 0x98e   :  { %2613 = vmatmul.bf16.vlgmr.msra.gmra.mxu3 %v2604_v6  ;;  %2626 = vmatmul.bf16.vlgmr.msrb.gmra.mxu0 %v2604_v6 }
 0x98f   :  { %2639 = vmatmul.bf16.vlgmr.msra.gmra.mxu1 %v2604_v6 }
 0x99f   :  { %2875 = vmatmul.bf16.vlgmr.msrb.gmra.mxu1 %v2795_v24 }
 0x9af   :  { %2880 = vmatmul.bf16.gmra.mxu1 %v2796_v8 }
 0xa0b   :  { %v2627_v51 = vpop.f32.mrf.mxu0 }
 0xa0c   :  { %v2645_v44 = vadd.f32 %v2627_v51, %v1015_v15  ;;  %v2640_v60 = vpop.f32.mrf.mxu1  ;;  %v4957_v51 = vld [vmem:[#allocation37_spill] sm:$0xff] }
 0xa0d   :  { %v2684_v56 = vadd.f32 %v4696_v35, %v2640_v60  ;;  %v4958_v60 = vld [vmem:[#allocation54_spill] sm:$0xff] }
 0xa0e   :  { %v3361_v54 = vmul.f32 -1.442695, %v2645_v44 }
 0xa10   :  { %3658 = vpow2.f32 %v3361_v54 }
 0xa11   :  { %v2614_v38 = vpop.f32.mrf.mxu3 }
 0xa12   :  { %v2644_v1 = vadd.f32 %v2614_v38, %v987_v19 }
 0xa13   :  { %v2629_v5 = vpop.f32.mrf.mxu0 }
 0xa14   :  { %v3360_v29 = vmul.f32 -1.442695, %v2644_v1  ;;  %v2642_v34 = vpop.f32.mrf.mxu1 }
 0xa16   :  { %v3659_v11 = vpop.eup %3658  ;;  %3660 = vpow2.f32 %v3360_v29 }
 0xa17   :  { %v2653_v52 = vadd.f32 1.0, %v3659_v11 }
 0xa19   :  { %v2616_v59 = vpop.f32.mrf.mxu3  ;;  %3662 = vrcp.f32 %v2653_v52  ;;  %v2680_v48 = vand.u32 2147483648, %v2653_v52  ;;  %vm2674_vm15 = vweird.f32 %v2653_v52  ;;  %v2678_v63 = vand.u32 2147483647, %v2653_v52 }
 0xa1b   :  { %v2681_v39 = vor.u32 1.1754944e-38, %v2680_v48  ;;  %vm2679_vm1 = vcmp.eq.f32.partialorder %v2678_v63, 8.507059e+37 }
 0xa1c   :  { %v3661_v20 = vpop.eup %3660  ;;  %v2876_v31 = vpop.f32.mrf.mxu1 }
 0xa1d   :  { %v2652_v3 = vadd.f32 1.0, %v3661_v20  ;;  %v2877_v13 = vadd.f32 %v4839_v16, %v2876_v31 }
 0xa1f   :  { %3664 = vrcp.f32 %v2652_v3  ;;  %2895 = vst [vmem:[%s4897_s13] sm:$0xff] %v2877_v13  ;;  %v3663_v62 = vpop.eup %3662  ;;  %v2665_v33 = vand.u32 2147483648, %v2652_v3  ;;  %v2663_v36 = vand.u32 2147483647, %v2652_v3  ;;  %vm2659_vm11 = vweird.f32 %v2652_v3 }
 0xa20   :  { %v2670_v27 = vmul.f32 %v3663_v62, %v2653_v52  ;;  %vm2675_vm14 = vweird.f32 %v3663_v62 }
 0xa21   :  { %v2666_v46 = vor.u32 1.1754944e-38, %v2665_v33  ;;  %vm2664_vm13 = vcmp.eq.f32.partialorder %v2663_v36, 8.507059e+37  ;;  %vm2676_vm0 = vmor %vm2674_vm15, %vm2675_vm14 }
 0xa22   :  { %v2671_v42 = vsub.f32 1.0, %v2670_v27 }
 0xa24   :  { %v2878_v7 = vpop.f32.mrf.mxu1  ;;  %v2672_v9 = vmul.f32 %v3663_v62, %v2671_v42 }
 0xa25   :  { %v3665_v18 = vpop.eup %3664  ;;  %v2879_v61 = vadd.f32 %v4839_v16, %v2878_v7 }
 0xa26   :  { %v2655_v14 = vmul.f32 %v3665_v18, %v2652_v3  ;;  %vm2660_vm10 = vweird.f32 %v3665_v18  ;;  %v2673_v0 = vadd.f32 %v3663_v62, %v2672_v9 }
 0xa27   :  { %2896 = vst [vmem:[%s4897_s13 + $0x8] sm:$0xff] %v2879_v61  ;;  %vm2661_vm12 = vmor %vm2659_vm11, %vm2660_vm10 }
 0xa28   :  { %v2656_v58 = vsub.f32 1.0, %v2655_v14  ;;  %v2677_v37 = vsel %vm2676_vm0, %v3663_v62, %v2673_v0 }
 0xa29   :  { %v2682_v43 = vsel %vm2679_vm1, %v2681_v39, %v2677_v37 }
 0xa2a   :  { %v2657_v28 = vmul.f32 %v3665_v18, %v2656_v58  ;;  %v2688_v21 = vsub.f32 1.0, %v2682_v43  ;;  %v2690_v57 = vmul.f32 %v2682_v43, %v4824_v10 }
 0xa2c   :  { %v2658_v45 = vadd.f32 %v3665_v18, %v2657_v28  ;;  %v2881_v47 = vpop.f32.mrf.mxu1 }
 0xa2d   :  { %v2882_v55 = vadd.f32 %v4839_v16, %v2881_v47 }
 0xa2e   :  { %v2662_v17 = vsel %vm2661_vm12, %v3665_v18, %v2658_v45 }
 0xa2f   :  { %v2667_v49 = vsel %vm2664_vm13, %v2666_v46, %v2662_v17  ;;  %2897 = vst [vmem:[%s4897_s13 + $0x10] sm:$0xff] %v2882_v55  ;;  %v4959_v55 = vld [vmem:[#allocation55_spill] sm:$0xff] }
 0xa30   :  { %v2685_v53 = vmul.f32 %v2684_v56, %v2667_v49 }
 0xa32   :  { %v2686_v50 = vadd.f32 %v2685_v53, %v1043_v30 }
 0xa34   :  { %3666 = vtanh.f32 %v2686_v50  ;;  %v2883_v26 = vpop.f32.mrf.mxu1 }
 0xa35   :  { %v2884_v4 = vadd.f32 %v4839_v16, %v2883_v26 }
 0xa37   :  { %2898 = vst [vmem:[%s4897_s13 + $0x18] sm:$0xff] %v2884_v4 }
 0xa3a   :  { %v3667_v32 = vpop.eup %3666 }
 0xa3b   :  { %v2689_v40 = vmul.f32 %v3667_v32, %v2688_v21 }
 0xa3d   :  { %v4861_v41 = vadd.f32 %v2690_v57, %v2689_v40 }
 0xa3f   :  { %v2698_v12 = vpack.c.bf16 %v4861_v41, %v4861_v41  ;;  %v2797_v23 = vpack.c.bf16 %v4861_v41, %v4824_v10 }
 0xa41   :  { %2707 = vmatmul.bf16.vlgmr.msrb.gmra.mxu2 %v2698_v12  ;;  %2720 = vmatmul.bf16.vlgmr.msrb.gmra.mxu3 %v2698_v12 }
 0xa42   :  { %2733 = vmatmul.bf16.vlgmr.msra.gmra.mxu0 %v2698_v12  ;;  %2885 = vmatmul.bf16.gmra.mxu1 %v2797_v23 }
 0xabf   :  { %v2734_v6 = vpop.f32.mrf.mxu0  ;;  %v2886_v24 = vpop.f32.mrf.mxu1 }
 0xac0   :  { %v2887_v8 = vadd.f32 %v4839_v16, %v2886_v24  ;;  %v2778_v33 = vadd.f32 %v4696_v35, %v2734_v6 }
 0xac2   :  { %2899 = vst [vmem:[%s4897_s13 + $0x20] sm:$0xff] %v2887_v8 }
 0xac4   :  { %v2708_v25 = vpop.f32.mrf.mxu2  ;;  %v2721_v15 = vpop.f32.mrf.mxu3 }
 0xac5   :  { %v2738_v44 = vadd.f32 %v2708_v25, %v4957_v51  ;;  %v2739_v54 = vadd.f32 %v2721_v15, %v4958_v60 }
 0xac7   :  { %v3362_v2 = vmul.f32 -1.442695, %v2738_v44  ;;  %v3363_v10 = vmul.f32 -1.442695, %v2739_v54  ;;  %v2736_v19 = vpop.f32.mrf.mxu0  ;;  %v2888_v38 = vpop.f32.mrf.mxu1 }
 0xac8   :  { %v2889_v1 = vadd.f32 %v4839_v16, %v2888_v38 }
 0xac9   :  { %3668 = vpow2.f32 %v3362_v2 }
 0xaca   :  { %3670 = vpow2.f32 %v3363_v10  ;;  %2900 = vst [vmem:[%s4897_s13 + $0x28] sm:$0xff] %v2889_v1 }
 0xacc   :  { %v2710_v5 = vpop.f32.mrf.mxu2  ;;  %v2723_v29 = vpop.f32.mrf.mxu3 }
 0xacf   :  { %v3669_v34 = vpop.eup %3668 }
 0xad0   :  { %v3671_v11 = vpop.eup %3670  ;;  %v2746_v52 = vadd.f32 1.0, %v3669_v34 }
 0xad1   :  { %v2747_v59 = vadd.f32 1.0, %v3671_v11 }
 0xad2   :  { %3672 = vrcp.f32 %v2746_v52  ;;  %v2759_v27 = vand.u32 2147483648, %v2746_v52  ;;  %v2757_v61 = vand.u32 2147483647, %v2746_v52  ;;  %vm2753_vm3 = vweird.f32 %v2746_v52 }
 0xad3   :  { %3674 = vrcp.f32 %v2747_v59  ;;  %v2774_v45 = vand.u32 2147483648, %v2747_v59  ;;  %vm2768_vm7 = vweird.f32 %v2747_v59  ;;  %v2772_v46 = vand.u32 2147483647, %v2747_v59 }
 0xad4   :  { %v2760_v58 = vor.u32 1.1754944e-38, %v2759_v27  ;;  %vm2758_vm5 = vcmp.eq.f32.partialorder %v2757_v61, 8.507059e+37 }
 0xad5   :  { %v2775_v0 = vor.u32 1.1754944e-38, %v2774_v45  ;;  %vm2773_vm9 = vcmp.eq.f32.partialorder %v2772_v46, 8.507059e+37 }
 0xad8   :  { %v3673_v20 = vpop.eup %3672 }
 0xad9   :  { %v3675_v31 = vpop.eup %3674  ;;  %v2749_v3 = vmul.f32 %v3673_v20, %v2746_v52  ;;  %vm2754_vm2 = vweird.f32 %v3673_v20 }
 0xada   :  { %v2764_v13 = vmul.f32 %v3675_v31, %v2747_v59  ;;  %vm2755_vm4 = vmor %vm2753_vm3, %vm2754_vm2  ;;  %vm2769_vm6 = vweird.f32 %v3675_v31 }
 0xadb   :  { %v2750_v62 = vsub.f32 1.0, %v2749_v3  ;;  %vm2770_vm8 = vmor %vm2768_vm7, %vm2769_vm6 }
 0xadc   :  { %v2765_v7 = vsub.f32 1.0, %v2764_v13 }
 0xadd   :  { %v2751_v18 = vmul.f32 %v3673_v20, %v2750_v62 }
 0xade   :  { %v2766_v14 = vmul.f32 %v3675_v31, %v2765_v7 }
 0xadf   :  { %v2752_v42 = vadd.f32 %v3673_v20, %v2751_v18 }
 0xae0   :  { %v2767_v9 = vadd.f32 %v3675_v31, %v2766_v14 }
 0xae1   :  { %v2756_v28 = vsel %vm2755_vm4, %v3673_v20, %v2752_v42 }
 0xae2   :  { %v2761_v36 = vsel %vm2758_vm5, %v2760_v58, %v2756_v28  ;;  %v2771_v17 = vsel %vm2770_vm8, %v3675_v31, %v2767_v9 }
 0xae3   :  { %v2779_v47 = vmul.f32 %v2778_v33, %v2761_v36  ;;  %v2776_v49 = vsel %vm2773_vm9, %v2775_v0, %v2771_v17 }
 0xae4   :  { %v2782_v22 = vsub.f32 1.0, %v2776_v49  ;;  %v2784_v48 = vmul.f32 %v2776_v49, %v4861_v41 }
 0xae5   :  { %v2780_v56 = vadd.f32 %v2779_v47, %v4959_v55 }
 0xae7   :  { %3676 = vtanh.f32 %v2780_v56 }
 0xaed   :  { %v3677_v30 = vpop.eup %3676 }
 0xaee   :  { %v2783_v35 = vmul.f32 %v3677_v30, %v2782_v22 }
 0xaf0   :  { %v2785_v53 = vadd.f32 %v2784_v48, %v2783_v35 }
 0xaf2   :  { %v2798_v63 = vpack.c.bf16 %v2785_v53, %v2785_v53 }
 0xaf4   :  { %2890 = vmatmul.bf16.gmra.mxu1 %v2798_v63 }
 0xb71   :  { %v2891_v50 = vpop.f32.mrf.mxu1 }
 0xb72   :  { %v2892_v37 = vadd.f32 %v4839_v16, %v2891_v50 }
 0xb74   :  { %2901 = vst [vmem:[%s4897_s13 + $0x30] sm:$0xff] %v2892_v37 }
 0xb79   :  { %v2893_v39 = vpop.f32.mrf.mxu1 }
 0xb7a   :  { %2906 = vsyncpa [#allocation16], 1 }
 0xb7b   :  { %2907 = vsyncpa [#allocation18], 1 }
 0xb7c   :  { %2908 = vsyncpa [#allocation21], 1 }

</bundles_post_ra>
